<compile_context>
chip_gen: v5e
topology: v5e:2x2
jax: 0.10.0
libtpu: 0.0.40
codegen_flags: <defaults>
</compile_context>

<pallas_src>
import jax
import jax.numpy as jnp
from jax import lax
from jax.experimental import pallas as pl
from jax.experimental.pallas import tpu as pltpu

# ----------------------------------------------------------------------------
# Config (small shapes consistent with the module)
# ----------------------------------------------------------------------------
BATCH         = 2
SEQ_LEN       = 8
EMBED_DIM     = 32
NUM_HEADS     = 4
HEAD_DIM      = EMBED_DIM // NUM_HEADS
FFN_DIM       = 64
NUM_LAYERS    = 2
MAX_SEQ_LEN   = 16
USE_CLS_TOKEN = True
LN_EPS        = 1e-5
NEG_INF       = -1e30


def _layer_norm(v, g, b):
    m = jnp.mean(v, axis=-1, keepdims=True)
    var = jnp.mean((v - m) ** 2, axis=-1, keepdims=True)
    return (v - m) * lax.rsqrt(var + LN_EPS) * g + b


# ----------------------------------------------------------------------------
# Fused kernel: whole encoder stack in one pallas_call
# ----------------------------------------------------------------------------
def encoder_stack_kernel(src_ref, pad_ref, pos_ref, cls_ref,
                         wqkv_ref, bqkv_ref, wo_ref, bo_ref,
                         ln1g_ref, ln1b_ref, ln2g_ref, ln2b_ref,
                         w1_ref, b1_ref, w2_ref, b2_ref,
                         ng_ref, nb_ref,
                         o_ref):
    """src_ref: (B, S, D) raw input.  pad_ref: (B, S) float (1.0 = padded key).
       pos_ref: (MAX_SEQ_LEN, D) learned table.  cls_ref: (1, D).
       Per-layer weights stacked on a leading layer axis.
       o_ref: (B*S_pad, D) lane-dense output slab (pad rows sliced off outside)."""
    B, S, D = src_ref.shape
    S_pad = o_ref.shape[0] // B
    L = wqkv_ref.shape[0]
    H = NUM_HEADS
    Dh = D // H
    CLS = 1 if USE_CLS_TOKEN else 0
    n_pad = S_pad - S - CLS
    scale = 1.0 / jnp.sqrt(jnp.float32(Dh))

    pos = pos_ref[0:S, :]                                          # (S, D)

    # ---- compose activations inside the kernel: [cls ; src+pos ; 0-pad] per batch,
    #      stacked on sublanes into a single (B*S_pad, D) slab.
    blocks = []
    for b in range(B):                                             # static unroll
        rows = []
        if CLS:
            rows.append(cls_ref[...])                              # (1, D)
        rows.append(src_ref[b] + pos)                              # (S, D)
        if n_pad:
            rows.append(jnp.zeros((n_pad, D), jnp.float32))        # (n_pad, D)
        blocks.append(jnp.concatenate(rows, axis=0))               # (S_pad, D)
    x = jnp.concatenate(blocks, axis=0)                            # (B*S_pad, D)

    # ---- key-padding additive bias, built ONCE: (B, S_pad)
    #      column 0 (cls) valid, real keys use the user mask, pad columns = -inf.
    kp_parts = []
    if CLS:
        kp_parts.append(jnp.zeros((B, CLS), jnp.float32))
    kp_parts.append(pad_ref[...] * NEG_INF)
    if n_pad:
        kp_parts.append(jnp.full((B, n_pad), NEG_INF, jnp.float32))
    kp = jnp.concatenate(kp_parts, axis=-1)                        # (B, S_pad)

    for l in range(L):                                             # static unroll over layers
        # ---- fused QKV projection for ALL batches: one (B*S_pad, D)@(D, 3D) dot
        qkv = jnp.dot(x, wqkv_ref[l],
                      preferred_element_type=jnp.float32) + bqkv_ref[l]

        # ---- scores / softmax / PV per (batch, head); heads re-packed on lanes
        o_rows = []
        for b in range(B):
            r0 = b * S_pad                                         # sublane-aligned offset
            kp_b = kp[b:b + 1, :]                                  # (1, S_pad)
            heads = []
            for h in range(H):
                q = qkv[r0:r0 + S_pad, h * Dh:(h + 1) * Dh]                  # (S_pad, Dh)
                k = qkv[r0:r0 + S_pad, D + h * Dh:D + (h + 1) * Dh]          # (S_pad, Dh)
                v = qkv[r0:r0 + S_pad, 2 * D + h * Dh:2 * D + (h + 1) * Dh]  # (S_pad, Dh)
                s = lax.dot_general(q, k, (((1,), (1,)), ((), ())),
                                    preferred_element_type=jnp.float32) * scale
                s = s + kp_b                                       # key-padding bias
                s = s - jnp.max(s, axis=-1, keepdims=True)
                p = jnp.exp(s)
                p = p * pl.reciprocal(jnp.sum(p, axis=-1, keepdims=True),
                                      approx=True)
                heads.append(jnp.dot(p, v, preferred_element_type=jnp.float32))
            o_rows.append(jnp.concatenate(heads, axis=-1))          # (S_pad, D)
        o_cat = jnp.concatenate(o_rows, axis=0)                     # (B*S_pad, D)

        # ---- single out-projection dot for all batches/heads
        attn = jnp.dot(o_cat, wo_ref[l],
                       preferred_element_type=jnp.float32) + bo_ref[l]
        # residual + LN1 (post-LN, PyTorch default norm_first=False)
        x = _layer_norm(x + attn, ln1g_ref[l], ln1b_ref[l])

        # ---- feed-forward on the full (B*S_pad, D) slab: 2 dots per layer
        hid = jnp.maximum(
            jnp.dot(x, w1_ref[l], preferred_element_type=jnp.float32)
            + b1_ref[l], 0.0)
        y = jnp.dot(hid, w2_ref[l],
                    preferred_element_type=jnp.float32) + b2_ref[l]
        x = _layer_norm(x + y, ln2g_ref[l], ln2b_ref[l])

    # final `norm` module; one lane-dense unmasked store of the whole slab
    o_ref[...] = _layer_norm(x, ng_ref[...], nb_ref[...])


# ----------------------------------------------------------------------------
# Forward wrapper
# ----------------------------------------------------------------------------
def transformer_encoder_forward(params, src, src_key_padding_mask, mask=None):
    assert mask is None  # TODO(synk): additive src_mask not wired into fused kernel
    B, S, D = src.shape
    CLS = 1 if USE_CLS_TOKEN else 0
    S_tot = S + CLS
    S_pad = -(-S_tot // 8) * 8                     # round up to sublane multiple (9 -> 16)

    pad_f = src_key_padding_mask.reshape(B, -1).astype(jnp.float32)   # .flatten(1)
    cls = params["cls_token"] if params["cls_token"] is not None else \
        jnp.zeros((1, D), jnp.float32)

    n_inputs = 18
    vmem_spec = pl.BlockSpec(memory_space=pltpu.MemorySpace.VMEM)

    out2d = pl.pallas_call(
        encoder_stack_kernel,
        out_shape=jax.ShapeDtypeStruct((B * S_pad, D), jnp.float32),
        in_specs=[vmem_spec] * n_inputs,
        out_specs=vmem_spec,
    )(src.astype(jnp.float32), pad_f, params["pos_embed"], cls,
      params["wqkv"], params["bqkv"], params["wo"], params["bo"],
      params["ln1_g"], params["ln1_b"], params["ln2_g"], params["ln2_b"],
      params["w1"], params["b1"], params["w2"], params["b2"],
      params["norm_g"], params["norm_b"])

    return out2d.reshape(B, S_pad, D)[:, :S_tot, :]


# ----------------------------------------------------------------------------
# Deterministic parameter init (per-layer weights pre-stacked; QKV pre-fused)
# ----------------------------------------------------------------------------
def init_params(key):
    D, F, L = EMBED_DIM, FFN_DIM, NUM_LAYERS
    ks = iter(jax.random.split(key, 32))

    def w(shape, scale=0.02):
        return scale * jax.random.normal(next(ks), shape, jnp.float32)

    return dict(
        wqkv=w((L, D, 3 * D)), bqkv=jnp.zeros((L, 1, 3 * D), jnp.float32),
        wo=w((L, D, D)),       bo=jnp.zeros((L, 1, D), jnp.float32),
        ln1_g=jnp.ones((L, 1, D), jnp.float32), ln1_b=jnp.zeros((L, 1, D), jnp.float32),
        ln2_g=jnp.ones((L, 1, D), jnp.float32), ln2_b=jnp.zeros((L, 1, D), jnp.float32),
        w1=w((L, D, F)), b1=jnp.zeros((L, 1, F), jnp.float32),
        w2=w((L, F, D)), b2=jnp.zeros((L, 1, D), jnp.float32),
        norm_g=jnp.ones((1, D), jnp.float32), norm_b=jnp.zeros((1, D), jnp.float32),
        pos_embed=w((MAX_SEQ_LEN, D)),
        cls_token=w((1, D)) if USE_CLS_TOKEN else None,
    )


# ----------------------------------------------------------------------------
# Main
# ----------------------------------------------------------------------------
if __name__ == "__main__":
    key = jax.random.PRNGKey(0)
    k_params, k_src = jax.random.split(key, 2)

    params = init_params(k_params)
    src = jax.random.normal(k_src, (BATCH, SEQ_LEN, EMBED_DIM), jnp.float32)
    # key padding mask: True = padded. Batch 1 has its last 2 positions padded.
    pad_mask = jnp.zeros((BATCH, SEQ_LEN), bool).at[1, SEQ_LEN - 2:].set(True)

    fwd = jax.jit(transformer_encoder_forward)
    out = fwd(params, src, pad_mask)
    jax.block_until_ready(out)

    s_total = SEQ_LEN + (1 if USE_CLS_TOKEN else 0)
    assert out.shape == (BATCH, s_total, EMBED_DIM)
    assert out.dtype == jnp.float32
    assert bool(jnp.all(jnp.isfinite(out)))
    print("KERNEL_OK")
</pallas_src>

<mosaic_0001>
module attributes {stable_mosaic.version = 11 : i64} {
  func.func @encoder_stack_kernel(%arg0: memref<2x8x32xf32, #tpu.memory_space<vmem>>, %arg1: memref<2x8xf32, #tpu.memory_space<vmem>>, %arg2: memref<16x32xf32, #tpu.memory_space<vmem>>, %arg3: memref<1x32xf32, #tpu.memory_space<vmem>>, %arg4: memref<2x32x96xf32, #tpu.memory_space<vmem>>, %arg5: memref<2x1x96xf32, #tpu.memory_space<vmem>>, %arg6: memref<2x32x32xf32, #tpu.memory_space<vmem>>, %arg7: memref<2x1x32xf32, #tpu.memory_space<vmem>>, %arg8: memref<2x1x32xf32, #tpu.memory_space<vmem>>, %arg9: memref<2x1x32xf32, #tpu.memory_space<vmem>>, %arg10: memref<2x1x32xf32, #tpu.memory_space<vmem>>, %arg11: memref<2x1x32xf32, #tpu.memory_space<vmem>>, %arg12: memref<2x32x64xf32, #tpu.memory_space<vmem>>, %arg13: memref<2x1x64xf32, #tpu.memory_space<vmem>>, %arg14: memref<2x64x32xf32, #tpu.memory_space<vmem>>, %arg15: memref<2x1x32xf32, #tpu.memory_space<vmem>>, %arg16: memref<1x32xf32, #tpu.memory_space<vmem>>, %arg17: memref<1x32xf32, #tpu.memory_space<vmem>>, %arg18: memref<32x32xf32, #tpu.memory_space<vmem>>) attributes {dimension_semantics = [], scalar_prefetch = 0 : i64, scratch_operands = 0 : i64, tpu.core_type = #tpu.core_type<tc>} {
    %cst = arith.constant 8.000000e+00 : f32
    %0 = math.sqrt %cst : f32
    %cst_0 = arith.constant 1.000000e+00 : f32
    %1 = arith.divf %cst_0, %0 : f32
    %c0 = arith.constant 0 : index
    %c0_1 = arith.constant 0 : index
    %2 = vector.load %arg2[%c0, %c0_1] : memref<16x32xf32, #tpu.memory_space<vmem>>, vector<8x32xf32>
    %c0_2 = arith.constant 0 : index
    %c0_3 = arith.constant 0 : index
    %3 = vector.load %arg3[%c0_2, %c0_3] : memref<1x32xf32, #tpu.memory_space<vmem>>, vector<1x32xf32>
    %c0_4 = arith.constant 0 : index
    %c0_5 = arith.constant 0 : index
    %c0_6 = arith.constant 0 : index
    %4 = vector.load %arg0[%c0_4, %c0_5, %c0_6] : memref<2x8x32xf32, #tpu.memory_space<vmem>>, vector<1x8x32xf32>
    %5 = vector.shape_cast %4 : vector<1x8x32xf32> to vector<8x32xf32>
    %6 = arith.addf %5, %2 : vector<8x32xf32>
    %cst_7 = arith.constant 0.000000e+00 : f32
    %7 = vector.broadcast %cst_7 : f32 to vector<7x32xf32>
    %8 = tpu.concatenate %3, %6, %7 in 0 : vector<1x32xf32>, vector<8x32xf32>, vector<7x32xf32> -> vector<16x32xf32>
    %c0_8 = arith.constant 0 : index
    %c0_9 = arith.constant 0 : index
    %9 = vector.load %arg3[%c0_8, %c0_9] : memref<1x32xf32, #tpu.memory_space<vmem>>, vector<1x32xf32>
    %c1 = arith.constant 1 : index
    %c0_10 = arith.constant 0 : index
    %c0_11 = arith.constant 0 : index
    %10 = vector.load %arg0[%c1, %c0_10, %c0_11] : memref<2x8x32xf32, #tpu.memory_space<vmem>>, vector<1x8x32xf32>
    %11 = vector.shape_cast %10 : vector<1x8x32xf32> to vector<8x32xf32>
    %12 = arith.addf %11, %2 : vector<8x32xf32>
    %cst_12 = arith.constant 0.000000e+00 : f32
    %13 = vector.broadcast %cst_12 : f32 to vector<7x32xf32>
    %14 = tpu.concatenate %9, %12, %13 in 0 : vector<1x32xf32>, vector<8x32xf32>, vector<7x32xf32> -> vector<16x32xf32>
    %15 = tpu.concatenate %8, %14 in 0 : vector<16x32xf32>, vector<16x32xf32> -> vector<32x32xf32>
    %cst_13 = arith.constant 0.000000e+00 : f32
    %16 = vector.broadcast %cst_13 : f32 to vector<2x1xf32>
    %c0_14 = arith.constant 0 : index
    %c0_15 = arith.constant 0 : index
    %17 = vector.load %arg1[%c0_14, %c0_15] : memref<2x8xf32, #tpu.memory_space<vmem>>, vector<2x8xf32>
    %cst_16 = arith.constant -1.000000e+30 : f32
    %18 = vector.broadcast %cst_16 : f32 to vector<2x8xf32>
    %19 = arith.mulf %17, %18 : vector<2x8xf32>
    %cst_17 = arith.constant -1.000000e+30 : f32
    %20 = vector.broadcast %cst_17 : f32 to vector<2x7xf32>
    %21 = tpu.concatenate %16, %19, %20 in 1 : vector<2x1xf32>, vector<2x8xf32>, vector<2x7xf32> -> vector<2x16xf32>
    %c0_18 = arith.constant 0 : index
    %c0_19 = arith.constant 0 : index
    %c0_20 = arith.constant 0 : index
    %22 = vector.load %arg4[%c0_18, %c0_19, %c0_20] : memref<2x32x96xf32, #tpu.memory_space<vmem>>, vector<1x32x96xf32>
    %23 = vector.shape_cast %22 : vector<1x32x96xf32> to vector<32x96xf32>
    %cst_21 = arith.constant dense<0.000000e+00> : vector<32x96xf32>
    %24 = tpu.matmul %15, %23, %cst_21 {dimension_numbers = #tpu.dot_dimension_numbers<[1], [0], [0], [1], [0, 0, 1, 1], [], []>} : vector<32x32xf32>, vector<32x96xf32>, vector<32x96xf32> -> vector<32x96xf32>
    %c0_22 = arith.constant 0 : index
    %c0_23 = arith.constant 0 : index
    %c0_24 = arith.constant 0 : index
    %25 = vector.load %arg5[%c0_22, %c0_23, %c0_24] : memref<2x1x96xf32, #tpu.memory_space<vmem>>, vector<1x1x96xf32>
    %26 = vector.shape_cast %25 : vector<1x1x96xf32> to vector<1x96xf32>
    %27 = vector.broadcast %26 : vector<1x96xf32> to vector<32x96xf32>
    %28 = arith.addf %24, %27 : vector<32x96xf32>
    %29 = vector.extract_strided_slice %21 {offsets = [0, 0], sizes = [1, 16], strides = [1, 1]} : vector<2x16xf32> to vector<1x16xf32>
    %30 = vector.extract_strided_slice %28 {offsets = [0, 0], sizes = [16, 8], strides = [1, 1]} : vector<32x96xf32> to vector<16x8xf32>
    %31 = vector.extract_strided_slice %28 {offsets = [0, 32], sizes = [16, 8], strides = [1, 1]} : vector<32x96xf32> to vector<16x8xf32>
    %32 = vector.extract_strided_slice %28 {offsets = [0, 64], sizes = [16, 8], strides = [1, 1]} : vector<32x96xf32> to vector<16x8xf32>
    %cst_25 = arith.constant dense<0.000000e+00> : vector<16x16xf32>
    %33 = tpu.matmul %30, %31, %cst_25 {dimension_numbers = #tpu.dot_dimension_numbers<[1], [1], [0], [0], [0, 0, 1, 0], [], []>} : vector<16x8xf32>, vector<16x8xf32>, vector<16x16xf32> -> vector<16x16xf32>
    %34 = vector.broadcast %1 : f32 to vector<16x16xf32>
    %35 = arith.mulf %33, %34 : vector<16x16xf32>
    %36 = vector.broadcast %29 : vector<1x16xf32> to vector<16x16xf32>
    %37 = arith.addf %35, %36 : vector<16x16xf32>
    %cst_26 = arith.constant dense<0xFF800000> : vector<16xf32>
    %38 = vector.multi_reduction <maximumf>, %37, %cst_26 [1] : vector<16x16xf32> to vector<16xf32>
    %39 = vector.shape_cast %38 : vector<16xf32> to vector<16x1xf32>
    %40 = vector.broadcast %39 : vector<16x1xf32> to vector<16x16xf32>
    %41 = arith.subf %37, %40 : vector<16x16xf32>
    %42 = math.exp %41 : vector<16x16xf32>
    %cst_27 = arith.constant dense<0.000000e+00> : vector<16xf32>
    %43 = vector.multi_reduction <add>, %42, %cst_27 [1] : vector<16x16xf32> to vector<16xf32>
    %44 = vector.shape_cast %43 : vector<16xf32> to vector<16x1xf32>
    %45 = tpu.reciprocal %44 {approx = true} : vector<16x1xf32> -> vector<16x1xf32>
    %46 = vector.broadcast %45 : vector<16x1xf32> to vector<16x16xf32>
    %47 = arith.mulf %42, %46 : vector<16x16xf32>
    %cst_28 = arith.constant dense<0.000000e+00> : vector<16x8xf32>
    %48 = tpu.matmul %47, %32, %cst_28 {dimension_numbers = #tpu.dot_dimension_numbers<[1], [0], [0], [1], [0, 0, 1, 1], [], []>} : vector<16x16xf32>, vector<16x8xf32>, vector<16x8xf32> -> vector<16x8xf32>
    %49 = vector.extract_strided_slice %28 {offsets = [0, 8], sizes = [16, 8], strides = [1, 1]} : vector<32x96xf32> to vector<16x8xf32>
    %50 = vector.extract_strided_slice %28 {offsets = [0, 40], sizes = [16, 8], strides = [1, 1]} : vector<32x96xf32> to vector<16x8xf32>
    %51 = vector.extract_strided_slice %28 {offsets = [0, 72], sizes = [16, 8], strides = [1, 1]} : vector<32x96xf32> to vector<16x8xf32>
    %cst_29 = arith.constant dense<0.000000e+00> : vector<16x16xf32>
    %52 = tpu.matmul %49, %50, %cst_29 {dimension_numbers = #tpu.dot_dimension_numbers<[1], [1], [0], [0], [0, 0, 1, 0], [], []>} : vector<16x8xf32>, vector<16x8xf32>, vector<16x16xf32> -> vector<16x16xf32>
    %53 = vector.broadcast %1 : f32 to vector<16x16xf32>
    %54 = arith.mulf %52, %53 : vector<16x16xf32>
    %55 = vector.broadcast %29 : vector<1x16xf32> to vector<16x16xf32>
    %56 = arith.addf %54, %55 : vector<16x16xf32>
    %cst_30 = arith.constant dense<0xFF800000> : vector<16xf32>
    %57 = vector.multi_reduction <maximumf>, %56, %cst_30 [1] : vector<16x16xf32> to vector<16xf32>
    %58 = vector.shape_cast %57 : vector<16xf32> to vector<16x1xf32>
    %59 = vector.broadcast %58 : vector<16x1xf32> to vector<16x16xf32>
    %60 = arith.subf %56, %59 : vector<16x16xf32>
    %61 = math.exp %60 : vector<16x16xf32>
    %cst_31 = arith.constant dense<0.000000e+00> : vector<16xf32>
    %62 = vector.multi_reduction <add>, %61, %cst_31 [1] : vector<16x16xf32> to vector<16xf32>
    %63 = vector.shape_cast %62 : vector<16xf32> to vector<16x1xf32>
    %64 = tpu.reciprocal %63 {approx = true} : vector<16x1xf32> -> vector<16x1xf32>
    %65 = vector.broadcast %64 : vector<16x1xf32> to vector<16x16xf32>
    %66 = arith.mulf %61, %65 : vector<16x16xf32>
    %cst_32 = arith.constant dense<0.000000e+00> : vector<16x8xf32>
    %67 = tpu.matmul %66, %51, %cst_32 {dimension_numbers = #tpu.dot_dimension_numbers<[1], [0], [0], [1], [0, 0, 1, 1], [], []>} : vector<16x16xf32>, vector<16x8xf32>, vector<16x8xf32> -> vector<16x8xf32>
    %68 = vector.extract_strided_slice %28 {offsets = [0, 16], sizes = [16, 8], strides = [1, 1]} : vector<32x96xf32> to vector<16x8xf32>
    %69 = vector.extract_strided_slice %28 {offsets = [0, 48], sizes = [16, 8], strides = [1, 1]} : vector<32x96xf32> to vector<16x8xf32>
    %70 = vector.extract_strided_slice %28 {offsets = [0, 80], sizes = [16, 8], strides = [1, 1]} : vector<32x96xf32> to vector<16x8xf32>
    %cst_33 = arith.constant dense<0.000000e+00> : vector<16x16xf32>
    %71 = tpu.matmul %68, %69, %cst_33 {dimension_numbers = #tpu.dot_dimension_numbers<[1], [1], [0], [0], [0, 0, 1, 0], [], []>} : vector<16x8xf32>, vector<16x8xf32>, vector<16x16xf32> -> vector<16x16xf32>
    %72 = vector.broadcast %1 : f32 to vector<16x16xf32>
    %73 = arith.mulf %71, %72 : vector<16x16xf32>
    %74 = vector.broadcast %29 : vector<1x16xf32> to vector<16x16xf32>
    %75 = arith.addf %73, %74 : vector<16x16xf32>
    %cst_34 = arith.constant dense<0xFF800000> : vector<16xf32>
    %76 = vector.multi_reduction <maximumf>, %75, %cst_34 [1] : vector<16x16xf32> to vector<16xf32>
    %77 = vector.shape_cast %76 : vector<16xf32> to vector<16x1xf32>
    %78 = vector.broadcast %77 : vector<16x1xf32> to vector<16x16xf32>
    %79 = arith.subf %75, %78 : vector<16x16xf32>
    %80 = math.exp %79 : vector<16x16xf32>
    %cst_35 = arith.constant dense<0.000000e+00> : vector<16xf32>
    %81 = vector.multi_reduction <add>, %80, %cst_35 [1] : vector<16x16xf32> to vector<16xf32>
    %82 = vector.shape_cast %81 : vector<16xf32> to vector<16x1xf32>
    %83 = tpu.reciprocal %82 {approx = true} : vector<16x1xf32> -> vector<16x1xf32>
    %84 = vector.broadcast %83 : vector<16x1xf32> to vector<16x16xf32>
    %85 = arith.mulf %80, %84 : vector<16x16xf32>
    %cst_36 = arith.constant dense<0.000000e+00> : vector<16x8xf32>
    %86 = tpu.matmul %85, %70, %cst_36 {dimension_numbers = #tpu.dot_dimension_numbers<[1], [0], [0], [1], [0, 0, 1, 1], [], []>} : vector<16x16xf32>, vector<16x8xf32>, vector<16x8xf32> -> vector<16x8xf32>
    %87 = vector.extract_strided_slice %28 {offsets = [0, 24], sizes = [16, 8], strides = [1, 1]} : vector<32x96xf32> to vector<16x8xf32>
    %88 = vector.extract_strided_slice %28 {offsets = [0, 56], sizes = [16, 8], strides = [1, 1]} : vector<32x96xf32> to vector<16x8xf32>
    %89 = vector.extract_strided_slice %28 {offsets = [0, 88], sizes = [16, 8], strides = [1, 1]} : vector<32x96xf32> to vector<16x8xf32>
    %cst_37 = arith.constant dense<0.000000e+00> : vector<16x16xf32>
    %90 = tpu.matmul %87, %88, %cst_37 {dimension_numbers = #tpu.dot_dimension_numbers<[1], [1], [0], [0], [0, 0, 1, 0], [], []>} : vector<16x8xf32>, vector<16x8xf32>, vector<16x16xf32> -> vector<16x16xf32>
    %91 = vector.broadcast %1 : f32 to vector<16x16xf32>
    %92 = arith.mulf %90, %91 : vector<16x16xf32>
    %93 = vector.broadcast %29 : vector<1x16xf32> to vector<16x16xf32>
    %94 = arith.addf %92, %93 : vector<16x16xf32>
    %cst_38 = arith.constant dense<0xFF800000> : vector<16xf32>
    %95 = vector.multi_reduction <maximumf>, %94, %cst_38 [1] : vector<16x16xf32> to vector<16xf32>
    %96 = vector.shape_cast %95 : vector<16xf32> to vector<16x1xf32>
    %97 = vector.broadcast %96 : vector<16x1xf32> to vector<16x16xf32>
    %98 = arith.subf %94, %97 : vector<16x16xf32>
    %99 = math.exp %98 : vector<16x16xf32>
    %cst_39 = arith.constant dense<0.000000e+00> : vector<16xf32>
    %100 = vector.multi_reduction <add>, %99, %cst_39 [1] : vector<16x16xf32> to vector<16xf32>
    %101 = vector.shape_cast %100 : vector<16xf32> to vector<16x1xf32>
    %102 = tpu.reciprocal %101 {approx = true} : vector<16x1xf32> -> vector<16x1xf32>
    %103 = vector.broadcast %102 : vector<16x1xf32> to vector<16x16xf32>
    %104 = arith.mulf %99, %103 : vector<16x16xf32>
    %cst_40 = arith.constant dense<0.000000e+00> : vector<16x8xf32>
    %105 = tpu.matmul %104, %89, %cst_40 {dimension_numbers = #tpu.dot_dimension_numbers<[1], [0], [0], [1], [0, 0, 1, 1], [], []>} : vector<16x16xf32>, vector<16x8xf32>, vector<16x8xf32> -> vector<16x8xf32>
    %106 = tpu.concatenate %48, %67, %86, %105 in 1 : vector<16x8xf32>, vector<16x8xf32>, vector<16x8xf32>, vector<16x8xf32> -> vector<16x32xf32>
    %107 = vector.extract_strided_slice %21 {offsets = [1, 0], sizes = [1, 16], strides = [1, 1]} : vector<2x16xf32> to vector<1x16xf32>
    %108 = vector.extract_strided_slice %28 {offsets = [16, 0], sizes = [16, 8], strides = [1, 1]} : vector<32x96xf32> to vector<16x8xf32>
    %109 = vector.extract_strided_slice %28 {offsets = [16, 32], sizes = [16, 8], strides = [1, 1]} : vector<32x96xf32> to vector<16x8xf32>
    %110 = vector.extract_strided_slice %28 {offsets = [16, 64], sizes = [16, 8], strides = [1, 1]} : vector<32x96xf32> to vector<16x8xf32>
    %cst_41 = arith.constant dense<0.000000e+00> : vector<16x16xf32>
    %111 = tpu.matmul %108, %109, %cst_41 {dimension_numbers = #tpu.dot_dimension_numbers<[1], [1], [0], [0], [0, 0, 1, 0], [], []>} : vector<16x8xf32>, vector<16x8xf32>, vector<16x16xf32> -> vector<16x16xf32>
    %112 = vector.broadcast %1 : f32 to vector<16x16xf32>
    %113 = arith.mulf %111, %112 : vector<16x16xf32>
    %114 = vector.broadcast %107 : vector<1x16xf32> to vector<16x16xf32>
    %115 = arith.addf %113, %114 : vector<16x16xf32>
    %cst_42 = arith.constant dense<0xFF800000> : vector<16xf32>
    %116 = vector.multi_reduction <maximumf>, %115, %cst_42 [1] : vector<16x16xf32> to vector<16xf32>
    %117 = vector.shape_cast %116 : vector<16xf32> to vector<16x1xf32>
    %118 = vector.broadcast %117 : vector<16x1xf32> to vector<16x16xf32>
    %119 = arith.subf %115, %118 : vector<16x16xf32>
    %120 = math.exp %119 : vector<16x16xf32>
    %cst_43 = arith.constant dense<0.000000e+00> : vector<16xf32>
    %121 = vector.multi_reduction <add>, %120, %cst_43 [1] : vector<16x16xf32> to vector<16xf32>
    %122 = vector.shape_cast %121 : vector<16xf32> to vector<16x1xf32>
    %123 = tpu.reciprocal %122 {approx = true} : vector<16x1xf32> -> vector<16x1xf32>
    %124 = vector.broadcast %123 : vector<16x1xf32> to vector<16x16xf32>
    %125 = arith.mulf %120, %124 : vector<16x16xf32>
    %cst_44 = arith.constant dense<0.000000e+00> : vector<16x8xf32>
    %126 = tpu.matmul %125, %110, %cst_44 {dimension_numbers = #tpu.dot_dimension_numbers<[1], [0], [0], [1], [0, 0, 1, 1], [], []>} : vector<16x16xf32>, vector<16x8xf32>, vector<16x8xf32> -> vector<16x8xf32>
    %127 = vector.extract_strided_slice %28 {offsets = [16, 8], sizes = [16, 8], strides = [1, 1]} : vector<32x96xf32> to vector<16x8xf32>
    %128 = vector.extract_strided_slice %28 {offsets = [16, 40], sizes = [16, 8], strides = [1, 1]} : vector<32x96xf32> to vector<16x8xf32>
    %129 = vector.extract_strided_slice %28 {offsets = [16, 72], sizes = [16, 8], strides = [1, 1]} : vector<32x96xf32> to vector<16x8xf32>
    %cst_45 = arith.constant dense<0.000000e+00> : vector<16x16xf32>
    %130 = tpu.matmul %127, %128, %cst_45 {dimension_numbers = #tpu.dot_dimension_numbers<[1], [1], [0], [0], [0, 0, 1, 0], [], []>} : vector<16x8xf32>, vector<16x8xf32>, vector<16x16xf32> -> vector<16x16xf32>
    %131 = vector.broadcast %1 : f32 to vector<16x16xf32>
    %132 = arith.mulf %130, %131 : vector<16x16xf32>
    %133 = vector.broadcast %107 : vector<1x16xf32> to vector<16x16xf32>
    %134 = arith.addf %132, %133 : vector<16x16xf32>
    %cst_46 = arith.constant dense<0xFF800000> : vector<16xf32>
    %135 = vector.multi_reduction <maximumf>, %134, %cst_46 [1] : vector<16x16xf32> to vector<16xf32>
    %136 = vector.shape_cast %135 : vector<16xf32> to vector<16x1xf32>
    %137 = vector.broadcast %136 : vector<16x1xf32> to vector<16x16xf32>
    %138 = arith.subf %134, %137 : vector<16x16xf32>
    %139 = math.exp %138 : vector<16x16xf32>
    %cst_47 = arith.constant dense<0.000000e+00> : vector<16xf32>
    %140 = vector.multi_reduction <add>, %139, %cst_47 [1] : vector<16x16xf32> to vector<16xf32>
    %141 = vector.shape_cast %140 : vector<16xf32> to vector<16x1xf32>
    %142 = tpu.reciprocal %141 {approx = true} : vector<16x1xf32> -> vector<16x1xf32>
    %143 = vector.broadcast %142 : vector<16x1xf32> to vector<16x16xf32>
    %144 = arith.mulf %139, %143 : vector<16x16xf32>
    %cst_48 = arith.constant dense<0.000000e+00> : vector<16x8xf32>
    %145 = tpu.matmul %144, %129, %cst_48 {dimension_numbers = #tpu.dot_dimension_numbers<[1], [0], [0], [1], [0, 0, 1, 1], [], []>} : vector<16x16xf32>, vector<16x8xf32>, vector<16x8xf32> -> vector<16x8xf32>
    %146 = vector.extract_strided_slice %28 {offsets = [16, 16], sizes = [16, 8], strides = [1, 1]} : vector<32x96xf32> to vector<16x8xf32>
    %147 = vector.extract_strided_slice %28 {offsets = [16, 48], sizes = [16, 8], strides = [1, 1]} : vector<32x96xf32> to vector<16x8xf32>
    %148 = vector.extract_strided_slice %28 {offsets = [16, 80], sizes = [16, 8], strides = [1, 1]} : vector<32x96xf32> to vector<16x8xf32>
    %cst_49 = arith.constant dense<0.000000e+00> : vector<16x16xf32>
    %149 = tpu.matmul %146, %147, %cst_49 {dimension_numbers = #tpu.dot_dimension_numbers<[1], [1], [0], [0], [0, 0, 1, 0], [], []>} : vector<16x8xf32>, vector<16x8xf32>, vector<16x16xf32> -> vector<16x16xf32>
    %150 = vector.broadcast %1 : f32 to vector<16x16xf32>
    %151 = arith.mulf %149, %150 : vector<16x16xf32>
    %152 = vector.broadcast %107 : vector<1x16xf32> to vector<16x16xf32>
    %153 = arith.addf %151, %152 : vector<16x16xf32>
    %cst_50 = arith.constant dense<0xFF800000> : vector<16xf32>
    %154 = vector.multi_reduction <maximumf>, %153, %cst_50 [1] : vector<16x16xf32> to vector<16xf32>
    %155 = vector.shape_cast %154 : vector<16xf32> to vector<16x1xf32>
    %156 = vector.broadcast %155 : vector<16x1xf32> to vector<16x16xf32>
    %157 = arith.subf %153, %156 : vector<16x16xf32>
    %158 = math.exp %157 : vector<16x16xf32>
    %cst_51 = arith.constant dense<0.000000e+00> : vector<16xf32>
    %159 = vector.multi_reduction <add>, %158, %cst_51 [1] : vector<16x16xf32> to vector<16xf32>
    %160 = vector.shape_cast %159 : vector<16xf32> to vector<16x1xf32>
    %161 = tpu.reciprocal %160 {approx = true} : vector<16x1xf32> -> vector<16x1xf32>
    %162 = vector.broadcast %161 : vector<16x1xf32> to vector<16x16xf32>
    %163 = arith.mulf %158, %162 : vector<16x16xf32>
    %cst_52 = arith.constant dense<0.000000e+00> : vector<16x8xf32>
    %164 = tpu.matmul %163, %148, %cst_52 {dimension_numbers = #tpu.dot_dimension_numbers<[1], [0], [0], [1], [0, 0, 1, 1], [], []>} : vector<16x16xf32>, vector<16x8xf32>, vector<16x8xf32> -> vector<16x8xf32>
    %165 = vector.extract_strided_slice %28 {offsets = [16, 24], sizes = [16, 8], strides = [1, 1]} : vector<32x96xf32> to vector<16x8xf32>
    %166 = vector.extract_strided_slice %28 {offsets = [16, 56], sizes = [16, 8], strides = [1, 1]} : vector<32x96xf32> to vector<16x8xf32>
    %167 = vector.extract_strided_slice %28 {offsets = [16, 88], sizes = [16, 8], strides = [1, 1]} : vector<32x96xf32> to vector<16x8xf32>
    %cst_53 = arith.constant dense<0.000000e+00> : vector<16x16xf32>
    %168 = tpu.matmul %165, %166, %cst_53 {dimension_numbers = #tpu.dot_dimension_numbers<[1], [1], [0], [0], [0, 0, 1, 0], [], []>} : vector<16x8xf32>, vector<16x8xf32>, vector<16x16xf32> -> vector<16x16xf32>
    %169 = vector.broadcast %1 : f32 to vector<16x16xf32>
    %170 = arith.mulf %168, %169 : vector<16x16xf32>
    %171 = vector.broadcast %107 : vector<1x16xf32> to vector<16x16xf32>
    %172 = arith.addf %170, %171 : vector<16x16xf32>
    %cst_54 = arith.constant dense<0xFF800000> : vector<16xf32>
    %173 = vector.multi_reduction <maximumf>, %172, %cst_54 [1] : vector<16x16xf32> to vector<16xf32>
    %174 = vector.shape_cast %173 : vector<16xf32> to vector<16x1xf32>
    %175 = vector.broadcast %174 : vector<16x1xf32> to vector<16x16xf32>
    %176 = arith.subf %172, %175 : vector<16x16xf32>
    %177 = math.exp %176 : vector<16x16xf32>
    %cst_55 = arith.constant dense<0.000000e+00> : vector<16xf32>
    %178 = vector.multi_reduction <add>, %177, %cst_55 [1] : vector<16x16xf32> to vector<16xf32>
    %179 = vector.shape_cast %178 : vector<16xf32> to vector<16x1xf32>
    %180 = tpu.reciprocal %179 {approx = true} : vector<16x1xf32> -> vector<16x1xf32>
    %181 = vector.broadcast %180 : vector<16x1xf32> to vector<16x16xf32>
    %182 = arith.mulf %177, %181 : vector<16x16xf32>
    %cst_56 = arith.constant dense<0.000000e+00> : vector<16x8xf32>
    %183 = tpu.matmul %182, %167, %cst_56 {dimension_numbers = #tpu.dot_dimension_numbers<[1], [0], [0], [1], [0, 0, 1, 1], [], []>} : vector<16x16xf32>, vector<16x8xf32>, vector<16x8xf32> -> vector<16x8xf32>
    %184 = tpu.concatenate %126, %145, %164, %183 in 1 : vector<16x8xf32>, vector<16x8xf32>, vector<16x8xf32>, vector<16x8xf32> -> vector<16x32xf32>
    %185 = tpu.concatenate %106, %184 in 0 : vector<16x32xf32>, vector<16x32xf32> -> vector<32x32xf32>
    %c0_57 = arith.constant 0 : index
    %c0_58 = arith.constant 0 : index
    %c0_59 = arith.constant 0 : index
    %186 = vector.load %arg6[%c0_57, %c0_58, %c0_59] : memref<2x32x32xf32, #tpu.memory_space<vmem>>, vector<1x32x32xf32>
    %187 = vector.shape_cast %186 : vector<1x32x32xf32> to vector<32x32xf32>
    %cst_60 = arith.constant dense<0.000000e+00> : vector<32x32xf32>
    %188 = tpu.matmul %185, %187, %cst_60 {dimension_numbers = #tpu.dot_dimension_numbers<[1], [0], [0], [1], [0, 0, 1, 1], [], []>} : vector<32x32xf32>, vector<32x32xf32>, vector<32x32xf32> -> vector<32x32xf32>
    %c0_61 = arith.constant 0 : index
    %c0_62 = arith.constant 0 : index
    %c0_63 = arith.constant 0 : index
    %189 = vector.load %arg7[%c0_61, %c0_62, %c0_63] : memref<2x1x32xf32, #tpu.memory_space<vmem>>, vector<1x1x32xf32>
    %190 = vector.shape_cast %189 : vector<1x1x32xf32> to vector<1x32xf32>
    %191 = vector.broadcast %190 : vector<1x32xf32> to vector<32x32xf32>
    %192 = arith.addf %188, %191 : vector<32x32xf32>
    %193 = arith.addf %15, %192 : vector<32x32xf32>
    %c0_64 = arith.constant 0 : index
    %c0_65 = arith.constant 0 : index
    %c0_66 = arith.constant 0 : index
    %194 = vector.load %arg8[%c0_64, %c0_65, %c0_66] : memref<2x1x32xf32, #tpu.memory_space<vmem>>, vector<1x1x32xf32>
    %195 = vector.shape_cast %194 : vector<1x1x32xf32> to vector<1x32xf32>
    %c0_67 = arith.constant 0 : index
    %c0_68 = arith.constant 0 : index
    %c0_69 = arith.constant 0 : index
    %196 = vector.load %arg9[%c0_67, %c0_68, %c0_69] : memref<2x1x32xf32, #tpu.memory_space<vmem>>, vector<1x1x32xf32>
    %197 = vector.shape_cast %196 : vector<1x1x32xf32> to vector<1x32xf32>
    %cst_70 = arith.constant dense<0.000000e+00> : vector<32xf32>
    %198 = vector.multi_reduction <add>, %193, %cst_70 [1] : vector<32x32xf32> to vector<32xf32>
    %199 = vector.shape_cast %198 : vector<32xf32> to vector<32x1xf32>
    %cst_71 = arith.constant 3.200000e+01 : f32
    %200 = vector.broadcast %cst_71 : f32 to vector<32x1xf32>
    %201 = arith.divf %199, %200 : vector<32x1xf32>
    %202 = vector.broadcast %201 : vector<32x1xf32> to vector<32x32xf32>
    %203 = arith.subf %193, %202 : vector<32x32xf32>
    %204 = arith.mulf %203, %203 : vector<32x32xf32>
    %cst_72 = arith.constant dense<0.000000e+00> : vector<32xf32>
    %205 = vector.multi_reduction <add>, %204, %cst_72 [1] : vector<32x32xf32> to vector<32xf32>
    %206 = vector.shape_cast %205 : vector<32xf32> to vector<32x1xf32>
    %cst_73 = arith.constant 3.200000e+01 : f32
    %207 = vector.broadcast %cst_73 : f32 to vector<32x1xf32>
    %208 = arith.divf %206, %207 : vector<32x1xf32>
    %209 = vector.broadcast %201 : vector<32x1xf32> to vector<32x32xf32>
    %210 = arith.subf %193, %209 : vector<32x32xf32>
    %cst_74 = arith.constant 9.99999974E-6 : f32
    %211 = vector.broadcast %cst_74 : f32 to vector<32x1xf32>
    %212 = arith.addf %208, %211 : vector<32x1xf32>
    %213 = math.rsqrt %212 : vector<32x1xf32>
    %214 = vector.broadcast %213 : vector<32x1xf32> to vector<32x32xf32>
    %215 = arith.mulf %210, %214 : vector<32x32xf32>
    %216 = vector.broadcast %195 : vector<1x32xf32> to vector<32x32xf32>
    %217 = arith.mulf %215, %216 : vector<32x32xf32>
    %218 = vector.broadcast %197 : vector<1x32xf32> to vector<32x32xf32>
    %219 = arith.addf %217, %218 : vector<32x32xf32>
    %c0_75 = arith.constant 0 : index
    %c0_76 = arith.constant 0 : index
    %c0_77 = arith.constant 0 : index
    %220 = vector.load %arg12[%c0_75, %c0_76, %c0_77] : memref<2x32x64xf32, #tpu.memory_space<vmem>>, vector<1x32x64xf32>
    %221 = vector.shape_cast %220 : vector<1x32x64xf32> to vector<32x64xf32>
    %cst_78 = arith.constant dense<0.000000e+00> : vector<32x64xf32>
    %222 = tpu.matmul %219, %221, %cst_78 {dimension_numbers = #tpu.dot_dimension_numbers<[1], [0], [0], [1], [0, 0, 1, 1], [], []>} : vector<32x32xf32>, vector<32x64xf32>, vector<32x64xf32> -> vector<32x64xf32>
    %c0_79 = arith.constant 0 : index
    %c0_80 = arith.constant 0 : index
    %c0_81 = arith.constant 0 : index
    %223 = vector.load %arg13[%c0_79, %c0_80, %c0_81] : memref<2x1x64xf32, #tpu.memory_space<vmem>>, vector<1x1x64xf32>
    %224 = vector.shape_cast %223 : vector<1x1x64xf32> to vector<1x64xf32>
    %225 = vector.broadcast %224 : vector<1x64xf32> to vector<32x64xf32>
    %226 = arith.addf %222, %225 : vector<32x64xf32>
    %cst_82 = arith.constant 0.000000e+00 : f32
    %227 = vector.broadcast %cst_82 : f32 to vector<32x64xf32>
    %228 = arith.maximumf %226, %227 : vector<32x64xf32>
    %c0_83 = arith.constant 0 : index
    %c0_84 = arith.constant 0 : index
    %c0_85 = arith.constant 0 : index
    %229 = vector.load %arg14[%c0_83, %c0_84, %c0_85] : memref<2x64x32xf32, #tpu.memory_space<vmem>>, vector<1x64x32xf32>
    %230 = vector.shape_cast %229 : vector<1x64x32xf32> to vector<64x32xf32>
    %cst_86 = arith.constant dense<0.000000e+00> : vector<32x32xf32>
    %231 = tpu.matmul %228, %230, %cst_86 {dimension_numbers = #tpu.dot_dimension_numbers<[1], [0], [0], [1], [0, 0, 1, 1], [], []>} : vector<32x64xf32>, vector<64x32xf32>, vector<32x32xf32> -> vector<32x32xf32>
    %c0_87 = arith.constant 0 : index
    %c0_88 = arith.constant 0 : index
    %c0_89 = arith.constant 0 : index
    %232 = vector.load %arg15[%c0_87, %c0_88, %c0_89] : memref<2x1x32xf32, #tpu.memory_space<vmem>>, vector<1x1x32xf32>
    %233 = vector.shape_cast %232 : vector<1x1x32xf32> to vector<1x32xf32>
    %234 = vector.broadcast %233 : vector<1x32xf32> to vector<32x32xf32>
    %235 = arith.addf %231, %234 : vector<32x32xf32>
    %236 = arith.addf %219, %235 : vector<32x32xf32>
    %c0_90 = arith.constant 0 : index
    %c0_91 = arith.constant 0 : index
    %c0_92 = arith.constant 0 : index
    %237 = vector.load %arg10[%c0_90, %c0_91, %c0_92] : memref<2x1x32xf32, #tpu.memory_space<vmem>>, vector<1x1x32xf32>
    %238 = vector.shape_cast %237 : vector<1x1x32xf32> to vector<1x32xf32>
    %c0_93 = arith.constant 0 : index
    %c0_94 = arith.constant 0 : index
    %c0_95 = arith.constant 0 : index
    %239 = vector.load %arg11[%c0_93, %c0_94, %c0_95] : memref<2x1x32xf32, #tpu.memory_space<vmem>>, vector<1x1x32xf32>
    %240 = vector.shape_cast %239 : vector<1x1x32xf32> to vector<1x32xf32>
    %cst_96 = arith.constant dense<0.000000e+00> : vector<32xf32>
    %241 = vector.multi_reduction <add>, %236, %cst_96 [1] : vector<32x32xf32> to vector<32xf32>
    %242 = vector.shape_cast %241 : vector<32xf32> to vector<32x1xf32>
    %cst_97 = arith.constant 3.200000e+01 : f32
    %243 = vector.broadcast %cst_97 : f32 to vector<32x1xf32>
    %244 = arith.divf %242, %243 : vector<32x1xf32>
    %245 = vector.broadcast %244 : vector<32x1xf32> to vector<32x32xf32>
    %246 = arith.subf %236, %245 : vector<32x32xf32>
    %247 = arith.mulf %246, %246 : vector<32x32xf32>
    %cst_98 = arith.constant dense<0.000000e+00> : vector<32xf32>
    %248 = vector.multi_reduction <add>, %247, %cst_98 [1] : vector<32x32xf32> to vector<32xf32>
    %249 = vector.shape_cast %248 : vector<32xf32> to vector<32x1xf32>
    %cst_99 = arith.constant 3.200000e+01 : f32
    %250 = vector.broadcast %cst_99 : f32 to vector<32x1xf32>
    %251 = arith.divf %249, %250 : vector<32x1xf32>
    %252 = vector.broadcast %244 : vector<32x1xf32> to vector<32x32xf32>
    %253 = arith.subf %236, %252 : vector<32x32xf32>
    %cst_100 = arith.constant 9.99999974E-6 : f32
    %254 = vector.broadcast %cst_100 : f32 to vector<32x1xf32>
    %255 = arith.addf %251, %254 : vector<32x1xf32>
    %256 = math.rsqrt %255 : vector<32x1xf32>
    %257 = vector.broadcast %256 : vector<32x1xf32> to vector<32x32xf32>
    %258 = arith.mulf %253, %257 : vector<32x32xf32>
    %259 = vector.broadcast %238 : vector<1x32xf32> to vector<32x32xf32>
    %260 = arith.mulf %258, %259 : vector<32x32xf32>
    %261 = vector.broadcast %240 : vector<1x32xf32> to vector<32x32xf32>
    %262 = arith.addf %260, %261 : vector<32x32xf32>
    %c1_101 = arith.constant 1 : index
    %c0_102 = arith.constant 0 : index
    %c0_103 = arith.constant 0 : index
    %263 = vector.load %arg4[%c1_101, %c0_102, %c0_103] : memref<2x32x96xf32, #tpu.memory_space<vmem>>, vector<1x32x96xf32>
    %264 = vector.shape_cast %263 : vector<1x32x96xf32> to vector<32x96xf32>
    %cst_104 = arith.constant dense<0.000000e+00> : vector<32x96xf32>
    %265 = tpu.matmul %262, %264, %cst_104 {dimension_numbers = #tpu.dot_dimension_numbers<[1], [0], [0], [1], [0, 0, 1, 1], [], []>} : vector<32x32xf32>, vector<32x96xf32>, vector<32x96xf32> -> vector<32x96xf32>
    %c1_105 = arith.constant 1 : index
    %c0_106 = arith.constant 0 : index
    %c0_107 = arith.constant 0 : index
    %266 = vector.load %arg5[%c1_105, %c0_106, %c0_107] : memref<2x1x96xf32, #tpu.memory_space<vmem>>, vector<1x1x96xf32>
    %267 = vector.shape_cast %266 : vector<1x1x96xf32> to vector<1x96xf32>
    %268 = vector.broadcast %267 : vector<1x96xf32> to vector<32x96xf32>
    %269 = arith.addf %265, %268 : vector<32x96xf32>
    %270 = vector.extract_strided_slice %21 {offsets = [0, 0], sizes = [1, 16], strides = [1, 1]} : vector<2x16xf32> to vector<1x16xf32>
    %271 = vector.extract_strided_slice %269 {offsets = [0, 0], sizes = [16, 8], strides = [1, 1]} : vector<32x96xf32> to vector<16x8xf32>
    %272 = vector.extract_strided_slice %269 {offsets = [0, 32], sizes = [16, 8], strides = [1, 1]} : vector<32x96xf32> to vector<16x8xf32>
    %273 = vector.extract_strided_slice %269 {offsets = [0, 64], sizes = [16, 8], strides = [1, 1]} : vector<32x96xf32> to vector<16x8xf32>
    %cst_108 = arith.constant dense<0.000000e+00> : vector<16x16xf32>
    %274 = tpu.matmul %271, %272, %cst_108 {dimension_numbers = #tpu.dot_dimension_numbers<[1], [1], [0], [0], [0, 0, 1, 0], [], []>} : vector<16x8xf32>, vector<16x8xf32>, vector<16x16xf32> -> vector<16x16xf32>
    %275 = vector.broadcast %1 : f32 to vector<16x16xf32>
    %276 = arith.mulf %274, %275 : vector<16x16xf32>
    %277 = vector.broadcast %270 : vector<1x16xf32> to vector<16x16xf32>
    %278 = arith.addf %276, %277 : vector<16x16xf32>
    %cst_109 = arith.constant dense<0xFF800000> : vector<16xf32>
    %279 = vector.multi_reduction <maximumf>, %278, %cst_109 [1] : vector<16x16xf32> to vector<16xf32>
    %280 = vector.shape_cast %279 : vector<16xf32> to vector<16x1xf32>
    %281 = vector.broadcast %280 : vector<16x1xf32> to vector<16x16xf32>
    %282 = arith.subf %278, %281 : vector<16x16xf32>
    %283 = math.exp %282 : vector<16x16xf32>
    %cst_110 = arith.constant dense<0.000000e+00> : vector<16xf32>
    %284 = vector.multi_reduction <add>, %283, %cst_110 [1] : vector<16x16xf32> to vector<16xf32>
    %285 = vector.shape_cast %284 : vector<16xf32> to vector<16x1xf32>
    %286 = tpu.reciprocal %285 {approx = true} : vector<16x1xf32> -> vector<16x1xf32>
    %287 = vector.broadcast %286 : vector<16x1xf32> to vector<16x16xf32>
    %288 = arith.mulf %283, %287 : vector<16x16xf32>
    %cst_111 = arith.constant dense<0.000000e+00> : vector<16x8xf32>
    %289 = tpu.matmul %288, %273, %cst_111 {dimension_numbers = #tpu.dot_dimension_numbers<[1], [0], [0], [1], [0, 0, 1, 1], [], []>} : vector<16x16xf32>, vector<16x8xf32>, vector<16x8xf32> -> vector<16x8xf32>
    %290 = vector.extract_strided_slice %269 {offsets = [0, 8], sizes = [16, 8], strides = [1, 1]} : vector<32x96xf32> to vector<16x8xf32>
    %291 = vector.extract_strided_slice %269 {offsets = [0, 40], sizes = [16, 8], strides = [1, 1]} : vector<32x96xf32> to vector<16x8xf32>
    %292 = vector.extract_strided_slice %269 {offsets = [0, 72], sizes = [16, 8], strides = [1, 1]} : vector<32x96xf32> to vector<16x8xf32>
    %cst_112 = arith.constant dense<0.000000e+00> : vector<16x16xf32>
    %293 = tpu.matmul %290, %291, %cst_112 {dimension_numbers = #tpu.dot_dimension_numbers<[1], [1], [0], [0], [0, 0, 1, 0], [], []>} : vector<16x8xf32>, vector<16x8xf32>, vector<16x16xf32> -> vector<16x16xf32>
    %294 = vector.broadcast %1 : f32 to vector<16x16xf32>
    %295 = arith.mulf %293, %294 : vector<16x16xf32>
    %296 = vector.broadcast %270 : vector<1x16xf32> to vector<16x16xf32>
    %297 = arith.addf %295, %296 : vector<16x16xf32>
    %cst_113 = arith.constant dense<0xFF800000> : vector<16xf32>
    %298 = vector.multi_reduction <maximumf>, %297, %cst_113 [1] : vector<16x16xf32> to vector<16xf32>
    %299 = vector.shape_cast %298 : vector<16xf32> to vector<16x1xf32>
    %300 = vector.broadcast %299 : vector<16x1xf32> to vector<16x16xf32>
    %301 = arith.subf %297, %300 : vector<16x16xf32>
    %302 = math.exp %301 : vector<16x16xf32>
    %cst_114 = arith.constant dense<0.000000e+00> : vector<16xf32>
    %303 = vector.multi_reduction <add>, %302, %cst_114 [1] : vector<16x16xf32> to vector<16xf32>
    %304 = vector.shape_cast %303 : vector<16xf32> to vector<16x1xf32>
    %305 = tpu.reciprocal %304 {approx = true} : vector<16x1xf32> -> vector<16x1xf32>
    %306 = vector.broadcast %305 : vector<16x1xf32> to vector<16x16xf32>
    %307 = arith.mulf %302, %306 : vector<16x16xf32>
    %cst_115 = arith.constant dense<0.000000e+00> : vector<16x8xf32>
    %308 = tpu.matmul %307, %292, %cst_115 {dimension_numbers = #tpu.dot_dimension_numbers<[1], [0], [0], [1], [0, 0, 1, 1], [], []>} : vector<16x16xf32>, vector<16x8xf32>, vector<16x8xf32> -> vector<16x8xf32>
    %309 = vector.extract_strided_slice %269 {offsets = [0, 16], sizes = [16, 8], strides = [1, 1]} : vector<32x96xf32> to vector<16x8xf32>
    %310 = vector.extract_strided_slice %269 {offsets = [0, 48], sizes = [16, 8], strides = [1, 1]} : vector<32x96xf32> to vector<16x8xf32>
    %311 = vector.extract_strided_slice %269 {offsets = [0, 80], sizes = [16, 8], strides = [1, 1]} : vector<32x96xf32> to vector<16x8xf32>
    %cst_116 = arith.constant dense<0.000000e+00> : vector<16x16xf32>
    %312 = tpu.matmul %309, %310, %cst_116 {dimension_numbers = #tpu.dot_dimension_numbers<[1], [1], [0], [0], [0, 0, 1, 0], [], []>} : vector<16x8xf32>, vector<16x8xf32>, vector<16x16xf32> -> vector<16x16xf32>
    %313 = vector.broadcast %1 : f32 to vector<16x16xf32>
    %314 = arith.mulf %312, %313 : vector<16x16xf32>
    %315 = vector.broadcast %270 : vector<1x16xf32> to vector<16x16xf32>
    %316 = arith.addf %314, %315 : vector<16x16xf32>
    %cst_117 = arith.constant dense<0xFF800000> : vector<16xf32>
    %317 = vector.multi_reduction <maximumf>, %316, %cst_117 [1] : vector<16x16xf32> to vector<16xf32>
    %318 = vector.shape_cast %317 : vector<16xf32> to vector<16x1xf32>
    %319 = vector.broadcast %318 : vector<16x1xf32> to vector<16x16xf32>
    %320 = arith.subf %316, %319 : vector<16x16xf32>
    %321 = math.exp %320 : vector<16x16xf32>
    %cst_118 = arith.constant dense<0.000000e+00> : vector<16xf32>
    %322 = vector.multi_reduction <add>, %321, %cst_118 [1] : vector<16x16xf32> to vector<16xf32>
    %323 = vector.shape_cast %322 : vector<16xf32> to vector<16x1xf32>
    %324 = tpu.reciprocal %323 {approx = true} : vector<16x1xf32> -> vector<16x1xf32>
    %325 = vector.broadcast %324 : vector<16x1xf32> to vector<16x16xf32>
    %326 = arith.mulf %321, %325 : vector<16x16xf32>
    %cst_119 = arith.constant dense<0.000000e+00> : vector<16x8xf32>
    %327 = tpu.matmul %326, %311, %cst_119 {dimension_numbers = #tpu.dot_dimension_numbers<[1], [0], [0], [1], [0, 0, 1, 1], [], []>} : vector<16x16xf32>, vector<16x8xf32>, vector<16x8xf32> -> vector<16x8xf32>
    %328 = vector.extract_strided_slice %269 {offsets = [0, 24], sizes = [16, 8], strides = [1, 1]} : vector<32x96xf32> to vector<16x8xf32>
    %329 = vector.extract_strided_slice %269 {offsets = [0, 56], sizes = [16, 8], strides = [1, 1]} : vector<32x96xf32> to vector<16x8xf32>
    %330 = vector.extract_strided_slice %269 {offsets = [0, 88], sizes = [16, 8], strides = [1, 1]} : vector<32x96xf32> to vector<16x8xf32>
    %cst_120 = arith.constant dense<0.000000e+00> : vector<16x16xf32>
    %331 = tpu.matmul %328, %329, %cst_120 {dimension_numbers = #tpu.dot_dimension_numbers<[1], [1], [0], [0], [0, 0, 1, 0], [], []>} : vector<16x8xf32>, vector<16x8xf32>, vector<16x16xf32> -> vector<16x16xf32>
    %332 = vector.broadcast %1 : f32 to vector<16x16xf32>
    %333 = arith.mulf %331, %332 : vector<16x16xf32>
    %334 = vector.broadcast %270 : vector<1x16xf32> to vector<16x16xf32>
    %335 = arith.addf %333, %334 : vector<16x16xf32>
    %cst_121 = arith.constant dense<0xFF800000> : vector<16xf32>
    %336 = vector.multi_reduction <maximumf>, %335, %cst_121 [1] : vector<16x16xf32> to vector<16xf32>
    %337 = vector.shape_cast %336 : vector<16xf32> to vector<16x1xf32>
    %338 = vector.broadcast %337 : vector<16x1xf32> to vector<16x16xf32>
    %339 = arith.subf %335, %338 : vector<16x16xf32>
    %340 = math.exp %339 : vector<16x16xf32>
    %cst_122 = arith.constant dense<0.000000e+00> : vector<16xf32>
    %341 = vector.multi_reduction <add>, %340, %cst_122 [1] : vector<16x16xf32> to vector<16xf32>
    %342 = vector.shape_cast %341 : vector<16xf32> to vector<16x1xf32>
    %343 = tpu.reciprocal %342 {approx = true} : vector<16x1xf32> -> vector<16x1xf32>
    %344 = vector.broadcast %343 : vector<16x1xf32> to vector<16x16xf32>
    %345 = arith.mulf %340, %344 : vector<16x16xf32>
    %cst_123 = arith.constant dense<0.000000e+00> : vector<16x8xf32>
    %346 = tpu.matmul %345, %330, %cst_123 {dimension_numbers = #tpu.dot_dimension_numbers<[1], [0], [0], [1], [0, 0, 1, 1], [], []>} : vector<16x16xf32>, vector<16x8xf32>, vector<16x8xf32> -> vector<16x8xf32>
    %347 = tpu.concatenate %289, %308, %327, %346 in 1 : vector<16x8xf32>, vector<16x8xf32>, vector<16x8xf32>, vector<16x8xf32> -> vector<16x32xf32>
    %348 = vector.extract_strided_slice %21 {offsets = [1, 0], sizes = [1, 16], strides = [1, 1]} : vector<2x16xf32> to vector<1x16xf32>
    %349 = vector.extract_strided_slice %269 {offsets = [16, 0], sizes = [16, 8], strides = [1, 1]} : vector<32x96xf32> to vector<16x8xf32>
    %350 = vector.extract_strided_slice %269 {offsets = [16, 32], sizes = [16, 8], strides = [1, 1]} : vector<32x96xf32> to vector<16x8xf32>
    %351 = vector.extract_strided_slice %269 {offsets = [16, 64], sizes = [16, 8], strides = [1, 1]} : vector<32x96xf32> to vector<16x8xf32>
    %cst_124 = arith.constant dense<0.000000e+00> : vector<16x16xf32>
    %352 = tpu.matmul %349, %350, %cst_124 {dimension_numbers = #tpu.dot_dimension_numbers<[1], [1], [0], [0], [0, 0, 1, 0], [], []>} : vector<16x8xf32>, vector<16x8xf32>, vector<16x16xf32> -> vector<16x16xf32>
    %353 = vector.broadcast %1 : f32 to vector<16x16xf32>
    %354 = arith.mulf %352, %353 : vector<16x16xf32>
    %355 = vector.broadcast %348 : vector<1x16xf32> to vector<16x16xf32>
    %356 = arith.addf %354, %355 : vector<16x16xf32>
    %cst_125 = arith.constant dense<0xFF800000> : vector<16xf32>
    %357 = vector.multi_reduction <maximumf>, %356, %cst_125 [1] : vector<16x16xf32> to vector<16xf32>
    %358 = vector.shape_cast %357 : vector<16xf32> to vector<16x1xf32>
    %359 = vector.broadcast %358 : vector<16x1xf32> to vector<16x16xf32>
    %360 = arith.subf %356, %359 : vector<16x16xf32>
    %361 = math.exp %360 : vector<16x16xf32>
    %cst_126 = arith.constant dense<0.000000e+00> : vector<16xf32>
    %362 = vector.multi_reduction <add>, %361, %cst_126 [1] : vector<16x16xf32> to vector<16xf32>
    %363 = vector.shape_cast %362 : vector<16xf32> to vector<16x1xf32>
    %364 = tpu.reciprocal %363 {approx = true} : vector<16x1xf32> -> vector<16x1xf32>
    %365 = vector.broadcast %364 : vector<16x1xf32> to vector<16x16xf32>
    %366 = arith.mulf %361, %365 : vector<16x16xf32>
    %cst_127 = arith.constant dense<0.000000e+00> : vector<16x8xf32>
    %367 = tpu.matmul %366, %351, %cst_127 {dimension_numbers = #tpu.dot_dimension_numbers<[1], [0], [0], [1], [0, 0, 1, 1], [], []>} : vector<16x16xf32>, vector<16x8xf32>, vector<16x8xf32> -> vector<16x8xf32>
    %368 = vector.extract_strided_slice %269 {offsets = [16, 8], sizes = [16, 8], strides = [1, 1]} : vector<32x96xf32> to vector<16x8xf32>
    %369 = vector.extract_strided_slice %269 {offsets = [16, 40], sizes = [16, 8], strides = [1, 1]} : vector<32x96xf32> to vector<16x8xf32>
    %370 = vector.extract_strided_slice %269 {offsets = [16, 72], sizes = [16, 8], strides = [1, 1]} : vector<32x96xf32> to vector<16x8xf32>
    %cst_128 = arith.constant dense<0.000000e+00> : vector<16x16xf32>
    %371 = tpu.matmul %368, %369, %cst_128 {dimension_numbers = #tpu.dot_dimension_numbers<[1], [1], [0], [0], [0, 0, 1, 0], [], []>} : vector<16x8xf32>, vector<16x8xf32>, vector<16x16xf32> -> vector<16x16xf32>
    %372 = vector.broadcast %1 : f32 to vector<16x16xf32>
    %373 = arith.mulf %371, %372 : vector<16x16xf32>
    %374 = vector.broadcast %348 : vector<1x16xf32> to vector<16x16xf32>
    %375 = arith.addf %373, %374 : vector<16x16xf32>
    %cst_129 = arith.constant dense<0xFF800000> : vector<16xf32>
    %376 = vector.multi_reduction <maximumf>, %375, %cst_129 [1] : vector<16x16xf32> to vector<16xf32>
    %377 = vector.shape_cast %376 : vector<16xf32> to vector<16x1xf32>
    %378 = vector.broadcast %377 : vector<16x1xf32> to vector<16x16xf32>
    %379 = arith.subf %375, %378 : vector<16x16xf32>
    %380 = math.exp %379 : vector<16x16xf32>
    %cst_130 = arith.constant dense<0.000000e+00> : vector<16xf32>
    %381 = vector.multi_reduction <add>, %380, %cst_130 [1] : vector<16x16xf32> to vector<16xf32>
    %382 = vector.shape_cast %381 : vector<16xf32> to vector<16x1xf32>
    %383 = tpu.reciprocal %382 {approx = true} : vector<16x1xf32> -> vector<16x1xf32>
    %384 = vector.broadcast %383 : vector<16x1xf32> to vector<16x16xf32>
    %385 = arith.mulf %380, %384 : vector<16x16xf32>
    %cst_131 = arith.constant dense<0.000000e+00> : vector<16x8xf32>
    %386 = tpu.matmul %385, %370, %cst_131 {dimension_numbers = #tpu.dot_dimension_numbers<[1], [0], [0], [1], [0, 0, 1, 1], [], []>} : vector<16x16xf32>, vector<16x8xf32>, vector<16x8xf32> -> vector<16x8xf32>
    %387 = vector.extract_strided_slice %269 {offsets = [16, 16], sizes = [16, 8], strides = [1, 1]} : vector<32x96xf32> to vector<16x8xf32>
    %388 = vector.extract_strided_slice %269 {offsets = [16, 48], sizes = [16, 8], strides = [1, 1]} : vector<32x96xf32> to vector<16x8xf32>
    %389 = vector.extract_strided_slice %269 {offsets = [16, 80], sizes = [16, 8], strides = [1, 1]} : vector<32x96xf32> to vector<16x8xf32>
    %cst_132 = arith.constant dense<0.000000e+00> : vector<16x16xf32>
    %390 = tpu.matmul %387, %388, %cst_132 {dimension_numbers = #tpu.dot_dimension_numbers<[1], [1], [0], [0], [0, 0, 1, 0], [], []>} : vector<16x8xf32>, vector<16x8xf32>, vector<16x16xf32> -> vector<16x16xf32>
    %391 = vector.broadcast %1 : f32 to vector<16x16xf32>
    %392 = arith.mulf %390, %391 : vector<16x16xf32>
    %393 = vector.broadcast %348 : vector<1x16xf32> to vector<16x16xf32>
    %394 = arith.addf %392, %393 : vector<16x16xf32>
    %cst_133 = arith.constant dense<0xFF800000> : vector<16xf32>
    %395 = vector.multi_reduction <maximumf>, %394, %cst_133 [1] : vector<16x16xf32> to vector<16xf32>
    %396 = vector.shape_cast %395 : vector<16xf32> to vector<16x1xf32>
    %397 = vector.broadcast %396 : vector<16x1xf32> to vector<16x16xf32>
    %398 = arith.subf %394, %397 : vector<16x16xf32>
    %399 = math.exp %398 : vector<16x16xf32>
    %cst_134 = arith.constant dense<0.000000e+00> : vector<16xf32>
    %400 = vector.multi_reduction <add>, %399, %cst_134 [1] : vector<16x16xf32> to vector<16xf32>
    %401 = vector.shape_cast %400 : vector<16xf32> to vector<16x1xf32>
    %402 = tpu.reciprocal %401 {approx = true} : vector<16x1xf32> -> vector<16x1xf32>
    %403 = vector.broadcast %402 : vector<16x1xf32> to vector<16x16xf32>
    %404 = arith.mulf %399, %403 : vector<16x16xf32>
    %cst_135 = arith.constant dense<0.000000e+00> : vector<16x8xf32>
    %405 = tpu.matmul %404, %389, %cst_135 {dimension_numbers = #tpu.dot_dimension_numbers<[1], [0], [0], [1], [0, 0, 1, 1], [], []>} : vector<16x16xf32>, vector<16x8xf32>, vector<16x8xf32> -> vector<16x8xf32>
    %406 = vector.extract_strided_slice %269 {offsets = [16, 24], sizes = [16, 8], strides = [1, 1]} : vector<32x96xf32> to vector<16x8xf32>
    %407 = vector.extract_strided_slice %269 {offsets = [16, 56], sizes = [16, 8], strides = [1, 1]} : vector<32x96xf32> to vector<16x8xf32>
    %408 = vector.extract_strided_slice %269 {offsets = [16, 88], sizes = [16, 8], strides = [1, 1]} : vector<32x96xf32> to vector<16x8xf32>
    %cst_136 = arith.constant dense<0.000000e+00> : vector<16x16xf32>
    %409 = tpu.matmul %406, %407, %cst_136 {dimension_numbers = #tpu.dot_dimension_numbers<[1], [1], [0], [0], [0, 0, 1, 0], [], []>} : vector<16x8xf32>, vector<16x8xf32>, vector<16x16xf32> -> vector<16x16xf32>
    %410 = vector.broadcast %1 : f32 to vector<16x16xf32>
    %411 = arith.mulf %409, %410 : vector<16x16xf32>
    %412 = vector.broadcast %348 : vector<1x16xf32> to vector<16x16xf32>
    %413 = arith.addf %411, %412 : vector<16x16xf32>
    %cst_137 = arith.constant dense<0xFF800000> : vector<16xf32>
    %414 = vector.multi_reduction <maximumf>, %413, %cst_137 [1] : vector<16x16xf32> to vector<16xf32>
    %415 = vector.shape_cast %414 : vector<16xf32> to vector<16x1xf32>
    %416 = vector.broadcast %415 : vector<16x1xf32> to vector<16x16xf32>
    %417 = arith.subf %413, %416 : vector<16x16xf32>
    %418 = math.exp %417 : vector<16x16xf32>
    %cst_138 = arith.constant dense<0.000000e+00> : vector<16xf32>
    %419 = vector.multi_reduction <add>, %418, %cst_138 [1] : vector<16x16xf32> to vector<16xf32>
    %420 = vector.shape_cast %419 : vector<16xf32> to vector<16x1xf32>
    %421 = tpu.reciprocal %420 {approx = true} : vector<16x1xf32> -> vector<16x1xf32>
    %422 = vector.broadcast %421 : vector<16x1xf32> to vector<16x16xf32>
    %423 = arith.mulf %418, %422 : vector<16x16xf32>
    %cst_139 = arith.constant dense<0.000000e+00> : vector<16x8xf32>
    %424 = tpu.matmul %423, %408, %cst_139 {dimension_numbers = #tpu.dot_dimension_numbers<[1], [0], [0], [1], [0, 0, 1, 1], [], []>} : vector<16x16xf32>, vector<16x8xf32>, vector<16x8xf32> -> vector<16x8xf32>
    %425 = tpu.concatenate %367, %386, %405, %424 in 1 : vector<16x8xf32>, vector<16x8xf32>, vector<16x8xf32>, vector<16x8xf32> -> vector<16x32xf32>
    %426 = tpu.concatenate %347, %425 in 0 : vector<16x32xf32>, vector<16x32xf32> -> vector<32x32xf32>
    %c1_140 = arith.constant 1 : index
    %c0_141 = arith.constant 0 : index
    %c0_142 = arith.constant 0 : index
    %427 = vector.load %arg6[%c1_140, %c0_141, %c0_142] : memref<2x32x32xf32, #tpu.memory_space<vmem>>, vector<1x32x32xf32>
    %428 = vector.shape_cast %427 : vector<1x32x32xf32> to vector<32x32xf32>
    %cst_143 = arith.constant dense<0.000000e+00> : vector<32x32xf32>
    %429 = tpu.matmul %426, %428, %cst_143 {dimension_numbers = #tpu.dot_dimension_numbers<[1], [0], [0], [1], [0, 0, 1, 1], [], []>} : vector<32x32xf32>, vector<32x32xf32>, vector<32x32xf32> -> vector<32x32xf32>
    %c1_144 = arith.constant 1 : index
    %c0_145 = arith.constant 0 : index
    %c0_146 = arith.constant 0 : index
    %430 = vector.load %arg7[%c1_144, %c0_145, %c0_146] : memref<2x1x32xf32, #tpu.memory_space<vmem>>, vector<1x1x32xf32>
    %431 = vector.shape_cast %430 : vector<1x1x32xf32> to vector<1x32xf32>
    %432 = vector.broadcast %431 : vector<1x32xf32> to vector<32x32xf32>
    %433 = arith.addf %429, %432 : vector<32x32xf32>
    %434 = arith.addf %262, %433 : vector<32x32xf32>
    %c1_147 = arith.constant 1 : index
    %c0_148 = arith.constant 0 : index
    %c0_149 = arith.constant 0 : index
    %435 = vector.load %arg8[%c1_147, %c0_148, %c0_149] : memref<2x1x32xf32, #tpu.memory_space<vmem>>, vector<1x1x32xf32>
    %436 = vector.shape_cast %435 : vector<1x1x32xf32> to vector<1x32xf32>
    %c1_150 = arith.constant 1 : index
    %c0_151 = arith.constant 0 : index
    %c0_152 = arith.constant 0 : index
    %437 = vector.load %arg9[%c1_150, %c0_151, %c0_152] : memref<2x1x32xf32, #tpu.memory_space<vmem>>, vector<1x1x32xf32>
    %438 = vector.shape_cast %437 : vector<1x1x32xf32> to vector<1x32xf32>
    %cst_153 = arith.constant dense<0.000000e+00> : vector<32xf32>
    %439 = vector.multi_reduction <add>, %434, %cst_153 [1] : vector<32x32xf32> to vector<32xf32>
    %440 = vector.shape_cast %439 : vector<32xf32> to vector<32x1xf32>
    %cst_154 = arith.constant 3.200000e+01 : f32
    %441 = vector.broadcast %cst_154 : f32 to vector<32x1xf32>
    %442 = arith.divf %440, %441 : vector<32x1xf32>
    %443 = vector.broadcast %442 : vector<32x1xf32> to vector<32x32xf32>
    %444 = arith.subf %434, %443 : vector<32x32xf32>
    %445 = arith.mulf %444, %444 : vector<32x32xf32>
    %cst_155 = arith.constant dense<0.000000e+00> : vector<32xf32>
    %446 = vector.multi_reduction <add>, %445, %cst_155 [1] : vector<32x32xf32> to vector<32xf32>
    %447 = vector.shape_cast %446 : vector<32xf32> to vector<32x1xf32>
    %cst_156 = arith.constant 3.200000e+01 : f32
    %448 = vector.broadcast %cst_156 : f32 to vector<32x1xf32>
    %449 = arith.divf %447, %448 : vector<32x1xf32>
    %450 = vector.broadcast %442 : vector<32x1xf32> to vector<32x32xf32>
    %451 = arith.subf %434, %450 : vector<32x32xf32>
    %cst_157 = arith.constant 9.99999974E-6 : f32
    %452 = vector.broadcast %cst_157 : f32 to vector<32x1xf32>
    %453 = arith.addf %449, %452 : vector<32x1xf32>
    %454 = math.rsqrt %453 : vector<32x1xf32>
    %455 = vector.broadcast %454 : vector<32x1xf32> to vector<32x32xf32>
    %456 = arith.mulf %451, %455 : vector<32x32xf32>
    %457 = vector.broadcast %436 : vector<1x32xf32> to vector<32x32xf32>
    %458 = arith.mulf %456, %457 : vector<32x32xf32>
    %459 = vector.broadcast %438 : vector<1x32xf32> to vector<32x32xf32>
    %460 = arith.addf %458, %459 : vector<32x32xf32>
    %c1_158 = arith.constant 1 : index
    %c0_159 = arith.constant 0 : index
    %c0_160 = arith.constant 0 : index
    %461 = vector.load %arg12[%c1_158, %c0_159, %c0_160] : memref<2x32x64xf32, #tpu.memory_space<vmem>>, vector<1x32x64xf32>
    %462 = vector.shape_cast %461 : vector<1x32x64xf32> to vector<32x64xf32>
    %cst_161 = arith.constant dense<0.000000e+00> : vector<32x64xf32>
    %463 = tpu.matmul %460, %462, %cst_161 {dimension_numbers = #tpu.dot_dimension_numbers<[1], [0], [0], [1], [0, 0, 1, 1], [], []>} : vector<32x32xf32>, vector<32x64xf32>, vector<32x64xf32> -> vector<32x64xf32>
    %c1_162 = arith.constant 1 : index
    %c0_163 = arith.constant 0 : index
    %c0_164 = arith.constant 0 : index
    %464 = vector.load %arg13[%c1_162, %c0_163, %c0_164] : memref<2x1x64xf32, #tpu.memory_space<vmem>>, vector<1x1x64xf32>
    %465 = vector.shape_cast %464 : vector<1x1x64xf32> to vector<1x64xf32>
    %466 = vector.broadcast %465 : vector<1x64xf32> to vector<32x64xf32>
    %467 = arith.addf %463, %466 : vector<32x64xf32>
    %cst_165 = arith.constant 0.000000e+00 : f32
    %468 = vector.broadcast %cst_165 : f32 to vector<32x64xf32>
    %469 = arith.maximumf %467, %468 : vector<32x64xf32>
    %c1_166 = arith.constant 1 : index
    %c0_167 = arith.constant 0 : index
    %c0_168 = arith.constant 0 : index
    %470 = vector.load %arg14[%c1_166, %c0_167, %c0_168] : memref<2x64x32xf32, #tpu.memory_space<vmem>>, vector<1x64x32xf32>
    %471 = vector.shape_cast %470 : vector<1x64x32xf32> to vector<64x32xf32>
    %cst_169 = arith.constant dense<0.000000e+00> : vector<32x32xf32>
    %472 = tpu.matmul %469, %471, %cst_169 {dimension_numbers = #tpu.dot_dimension_numbers<[1], [0], [0], [1], [0, 0, 1, 1], [], []>} : vector<32x64xf32>, vector<64x32xf32>, vector<32x32xf32> -> vector<32x32xf32>
    %c1_170 = arith.constant 1 : index
    %c0_171 = arith.constant 0 : index
    %c0_172 = arith.constant 0 : index
    %473 = vector.load %arg15[%c1_170, %c0_171, %c0_172] : memref<2x1x32xf32, #tpu.memory_space<vmem>>, vector<1x1x32xf32>
    %474 = vector.shape_cast %473 : vector<1x1x32xf32> to vector<1x32xf32>
    %475 = vector.broadcast %474 : vector<1x32xf32> to vector<32x32xf32>
    %476 = arith.addf %472, %475 : vector<32x32xf32>
    %477 = arith.addf %460, %476 : vector<32x32xf32>
    %c1_173 = arith.constant 1 : index
    %c0_174 = arith.constant 0 : index
    %c0_175 = arith.constant 0 : index
    %478 = vector.load %arg10[%c1_173, %c0_174, %c0_175] : memref<2x1x32xf32, #tpu.memory_space<vmem>>, vector<1x1x32xf32>
    %479 = vector.shape_cast %478 : vector<1x1x32xf32> to vector<1x32xf32>
    %c1_176 = arith.constant 1 : index
    %c0_177 = arith.constant 0 : index
    %c0_178 = arith.constant 0 : index
    %480 = vector.load %arg11[%c1_176, %c0_177, %c0_178] : memref<2x1x32xf32, #tpu.memory_space<vmem>>, vector<1x1x32xf32>
    %481 = vector.shape_cast %480 : vector<1x1x32xf32> to vector<1x32xf32>
    %cst_179 = arith.constant dense<0.000000e+00> : vector<32xf32>
    %482 = vector.multi_reduction <add>, %477, %cst_179 [1] : vector<32x32xf32> to vector<32xf32>
    %483 = vector.shape_cast %482 : vector<32xf32> to vector<32x1xf32>
    %cst_180 = arith.constant 3.200000e+01 : f32
    %484 = vector.broadcast %cst_180 : f32 to vector<32x1xf32>
    %485 = arith.divf %483, %484 : vector<32x1xf32>
    %486 = vector.broadcast %485 : vector<32x1xf32> to vector<32x32xf32>
    %487 = arith.subf %477, %486 : vector<32x32xf32>
    %488 = arith.mulf %487, %487 : vector<32x32xf32>
    %cst_181 = arith.constant dense<0.000000e+00> : vector<32xf32>
    %489 = vector.multi_reduction <add>, %488, %cst_181 [1] : vector<32x32xf32> to vector<32xf32>
    %490 = vector.shape_cast %489 : vector<32xf32> to vector<32x1xf32>
    %cst_182 = arith.constant 3.200000e+01 : f32
    %491 = vector.broadcast %cst_182 : f32 to vector<32x1xf32>
    %492 = arith.divf %490, %491 : vector<32x1xf32>
    %493 = vector.broadcast %485 : vector<32x1xf32> to vector<32x32xf32>
    %494 = arith.subf %477, %493 : vector<32x32xf32>
    %cst_183 = arith.constant 9.99999974E-6 : f32
    %495 = vector.broadcast %cst_183 : f32 to vector<32x1xf32>
    %496 = arith.addf %492, %495 : vector<32x1xf32>
    %497 = math.rsqrt %496 : vector<32x1xf32>
    %498 = vector.broadcast %497 : vector<32x1xf32> to vector<32x32xf32>
    %499 = arith.mulf %494, %498 : vector<32x32xf32>
    %500 = vector.broadcast %479 : vector<1x32xf32> to vector<32x32xf32>
    %501 = arith.mulf %499, %500 : vector<32x32xf32>
    %502 = vector.broadcast %481 : vector<1x32xf32> to vector<32x32xf32>
    %503 = arith.addf %501, %502 : vector<32x32xf32>
    %c0_184 = arith.constant 0 : index
    %c0_185 = arith.constant 0 : index
    %504 = vector.load %arg16[%c0_184, %c0_185] : memref<1x32xf32, #tpu.memory_space<vmem>>, vector<1x32xf32>
    %c0_186 = arith.constant 0 : index
    %c0_187 = arith.constant 0 : index
    %505 = vector.load %arg17[%c0_186, %c0_187] : memref<1x32xf32, #tpu.memory_space<vmem>>, vector<1x32xf32>
    %cst_188 = arith.constant dense<0.000000e+00> : vector<32xf32>
    %506 = vector.multi_reduction <add>, %503, %cst_188 [1] : vector<32x32xf32> to vector<32xf32>
    %507 = vector.shape_cast %506 : vector<32xf32> to vector<32x1xf32>
    %cst_189 = arith.constant 3.200000e+01 : f32
    %508 = vector.broadcast %cst_189 : f32 to vector<32x1xf32>
    %509 = arith.divf %507, %508 : vector<32x1xf32>
    %510 = vector.broadcast %509 : vector<32x1xf32> to vector<32x32xf32>
    %511 = arith.subf %503, %510 : vector<32x32xf32>
    %512 = arith.mulf %511, %511 : vector<32x32xf32>
    %cst_190 = arith.constant dense<0.000000e+00> : vector<32xf32>
    %513 = vector.multi_reduction <add>, %512, %cst_190 [1] : vector<32x32xf32> to vector<32xf32>
    %514 = vector.shape_cast %513 : vector<32xf32> to vector<32x1xf32>
    %cst_191 = arith.constant 3.200000e+01 : f32
    %515 = vector.broadcast %cst_191 : f32 to vector<32x1xf32>
    %516 = arith.divf %514, %515 : vector<32x1xf32>
    %517 = vector.broadcast %509 : vector<32x1xf32> to vector<32x32xf32>
    %518 = arith.subf %503, %517 : vector<32x32xf32>
    %cst_192 = arith.constant 9.99999974E-6 : f32
    %519 = vector.broadcast %cst_192 : f32 to vector<32x1xf32>
    %520 = arith.addf %516, %519 : vector<32x1xf32>
    %521 = math.rsqrt %520 : vector<32x1xf32>
    %522 = vector.broadcast %521 : vector<32x1xf32> to vector<32x32xf32>
    %523 = arith.mulf %518, %522 : vector<32x32xf32>
    %524 = vector.broadcast %504 : vector<1x32xf32> to vector<32x32xf32>
    %525 = arith.mulf %523, %524 : vector<32x32xf32>
    %526 = vector.broadcast %505 : vector<1x32xf32> to vector<32x32xf32>
    %527 = arith.addf %525, %526 : vector<32x32xf32>
    %c0_193 = arith.constant 0 : index
    %c0_194 = arith.constant 0 : index
    %528 = vector.load %arg18[%c0_193, %c0_194] : memref<32x32xf32, #tpu.memory_space<vmem>>, vector<32x32xf32>
    tpu.vector_store %arg18[%c0_193, %c0_194], %527 {strides = array<i32>} : memref<32x32xf32, #tpu.memory_space<vmem>>, vector<32x32xf32>,
    return
  }
}

</mosaic_0001>

<bundles_post_ra>
// kernel: transformer_encoder_forward.1
= control target key start
LH: loop header
LB: loop body
LE: loop exit
PB: predicated region body
PF: predicated region fallthrough
CT: control target
= control target key end

     0   :  { %s4710_s0 = inlined_call_operand.hbm [shape: f32[2,8,32], index: 0, kind: input, shape index: {}]   ;;  %s4711_s1 = inlined_call_operand.vmem [shape: f32[2,8], index: 1, kind: input, shape index: {}]   ;;  %s4712_s2 = inlined_call_operand.hbm [shape: f32[16,32], index: 2, kind: input, shape index: {}]   ;;  %s4713_s3 = inlined_call_operand.vmem [shape: f32[1,32], index: 3, kind: input, shape index: {}]   ;;  %s4714_s4 = inlined_call_operand.vmem [shape: f32[2,32,96], index: 4, kind: input, shape index: {}]   ;;  %s4715_s5 = inlined_call_operand.vmem [shape: f32[2,1,96], index: 5, kind: input, shape index: {}]   ;;  %s4716_s6 = inlined_call_operand.vmem [shape: f32[2,32,32], index: 6, kind: input, shape index: {}]   ;;  %s4717_s7 = inlined_call_operand.hbm [shape: f32[2,1,32], index: 7, kind: input, shape index: {}]   ;;  %s4718_s8 = inlined_call_operand.vmem [shape: f32[2,1,32], index: 8, kind: input, shape index: {}]   ;;  %s4719_s9 = inlined_call_operand.hbm [shape: f32[2,1,32], index: 9, kind: input, shape index: {}]   ;;  %s4720_s10 = inlined_call_operand.vmem [shape: f32[2,1,32], index: 10, kind: input, shape index: {}]   ;;  %s4721_s11 = inlined_call_operand.hbm [shape: f32[2,1,32], index: 11, kind: input, shape index: {}]   ;;  %s4722_s12 = inlined_call_operand.vmem [shape: f32[2,32,64], index: 12, kind: input, shape index: {}]   ;;  %s4723_s13 = inlined_call_operand.hbm [shape: f32[2,1,64], index: 13, kind: input, shape index: {}]   ;;  %s4724_s14 = inlined_call_operand.vmem [shape: f32[2,64,32], index: 14, kind: input, shape index: {}]   ;;  %s4725_s15 = inlined_call_operand.hbm [shape: f32[2,1,32], index: 15, kind: input, shape index: {}]   ;;  %s4726_s16 = inlined_call_operand.vmem [shape: f32[1,32], index: 16, kind: input, shape index: {}]   ;;  %s4727_s17 = inlined_call_operand.vmem [shape: f32[1,32], index: 17, kind: input, shape index: {}]   ;;  %s4728_s18 = inlined_call_operand.vmem [shape: f32[32,32], index: 18, kind: output, shape index: {}]  }
   0x1   :  { %4733 = sst [smem:[#allocation17_spill]] %s4710_s0 }
   0x2   :  { %4734 = sst [smem:[#allocation18_spill]] %s4711_s1 }
   0x3   :  { %4735 = sst [smem:[#allocation19_spill]] %s4712_s2 }
   0x4   :  { %23 = vsyncpa [#allocation3], 0 }
   0x5   :  { %24 = vsyncpa [#allocation5], 0 }
   0x6   :  { %25 = vsyncpa [#allocation8], 0 }
   0x7   :  { %26 = vsyncpa [#allocation11], 0  ;;  %s4736_s29 = sld [smem:[#allocation19_spill]]  ;;  %s3509_s0 = smov [#allocation4]  }
   0x8   :  { %s48_s19 = sshll.u32 %s3509_s0, 4  ;;  %s3510_s1 = smov 128   ;;  %s49_s19 = int_to_ptr.vmem [resolvable:$true] %s48_s19 }
   0x9   :  { %s4729_s20 = smov 8   ;;  %s82_s2 = sshll.u32 %s4719_s9, 4  ;;  %s83_s2 = int_to_ptr.hbm [resolvable:$true] %s82_s2 }
   0xa   :  { %s3512_s23 = smov [#allocation7]   ;;  %s112_s27 = sshll.u32 %s4723_s13, 4  ;;  %s113_s27 = int_to_ptr.hbm [resolvable:$true] %s112_s27 }
   0xb   :  { %s84_s24 = sshll.u32 %s3512_s23, 4  ;;  %s3513_s28 = smov 16   ;;  %s85_s24 = int_to_ptr.vmem [resolvable:$true] %s84_s24 }
   0xc   :  { %s3515_s9 = smov [#allocation10]   ;;  %s3516_s13 = smov [#allocation2]  }
   0xd   :  { %s46_s30 = sshll.u32 %s4736_s29, 4  ;;  %s3514_s29 = smov 1   ;;  %s47_s30 = int_to_ptr.hbm [resolvable:$true] %s46_s30 }
   0xe   :  { %54 = dma.hbm_to_vmem [thread:$0]  %s47_s30, 256, %s49_s19, [#allocation5], %s3510_s1, %s3510_s1, %s4729_s20  }
   0xf   :  { %90 = dma.hbm_to_vmem [thread:$0]  %s83_s2, 32, %s85_s24, [#allocation8], %s3513_s28, %s3513_s28, %s3514_s29  }
  0x10   :  { %s4737_s19 = sld [smem:[#allocation17_spill]]  ;;  %s114_s22 = sshll.u32 %s3515_s9, 4  ;;  %s115_s22 = int_to_ptr.vmem [resolvable:$true] %s114_s22 }
  0x11   :  { %120 = dma.hbm_to_vmem [thread:$0]  %s113_s27, 32, %s115_s22, [#allocation11], %s3513_s28, %s3513_s28, %s3514_s29  }
  0x12   :  { %s33_s23 = sshll.u32 %s3516_s13, 4  ;;  %s67_s20 = sshll.u32 %s4717_s7, 4  ;;  %s34_s23 = int_to_ptr.vmem [resolvable:$true] %s33_s23  ;;  %s68_s20 = int_to_ptr.hbm [resolvable:$true] %s67_s20 }
  0x13   :  { %s4738_s2 = smov 8   ;;  %s97_s0 = sshll.u32 %s4721_s11, 4  ;;  %s98_s0 = int_to_ptr.hbm [resolvable:$true] %s97_s0 }
  0x14   :  { %s3518_s27 = smov [#allocation9]   ;;  %s127_s25 = sshll.u32 %s4725_s15, 4  ;;  %s128_s25 = int_to_ptr.hbm [resolvable:$true] %s127_s25 }
  0x15   :  { %s99_s22 = sshll.u32 %s3518_s27, 4  ;;  %s3519_s11 = smov [#allocation12]   ;;  %s100_s22 = int_to_ptr.vmem [resolvable:$true] %s99_s22 }
  0x16   :  { %s31_s21 = sshll.u32 %s4737_s19, 4  ;;  %s3517_s19 = smov [#allocation6]   ;;  %s32_s21 = int_to_ptr.hbm [resolvable:$true] %s31_s21 }
  0x17   :  { %39 = dma.hbm_to_vmem [thread:$0]  %s32_s21, 256, %s34_s23, [#allocation3], %s3510_s1, %s3510_s1, %s4738_s2  }
  0x18   :  { %s69_s9 = sshll.u32 %s3517_s19, 4  ;;  %s129_s1 = sshll.u32 %s3519_s11, 4  ;;  %s70_s9 = int_to_ptr.vmem [resolvable:$true] %s69_s9  ;;  %s130_s1 = int_to_ptr.vmem [resolvable:$true] %s129_s1 }
  0x19   :  { %75 = dma.hbm_to_vmem [thread:$0]  %s68_s20, 32, %s70_s9, [#allocation5], %s3513_s28, %s3513_s28, %s3514_s29  }
  0x1a   :  { %105 = dma.hbm_to_vmem [thread:$0]  %s98_s0, 32, %s100_s22, [#allocation8], %s3513_s28, %s3513_s28, %s3514_s29  }
  0x1b   :  { %135 = dma.hbm_to_vmem [thread:$0]  %s128_s25, 32, %s130_s1, [#allocation11], %s3513_s28, %s3513_s28, %s3514_s29  }
  0x1c   :  { %3501 = dma.done.wait [#allocation3], 256  }
  0x1d   :  { %3502 = vsyncadd [#allocation3], 4294967040 }
  0x1e   :  { %3503 = dma.done.wait [#allocation5], 288  }
  0x1f   :  { %3504 = vsyncadd [#allocation5], 4294967008 }
  0x20   :  { %3505 = dma.done.wait [#allocation8], 64  }
  0x21   :  { %3506 = vsyncadd [#allocation8], 4294967232 }
  0x22   :  { %3507 = dma.done.wait [#allocation11], 64  }
  0x23   :  { %3508 = vsyncadd [#allocation11], 4294967232  ;;  %v199_v0 = vld [vmem:[%s4714_s4 + $0x18] sm:$0xff]  ;;  %v198_v1 = vld [vmem:[%s4714_s4 + $0x10] sm:$0xff]  ;;  %vm175_vm0 = vcmask 1040384   ;;  %vm204_vm1 = vcmask 261120  }
  0x24   :  { %229 = vmatpush.msra.mxu0 %v199_v0  ;;  %v197_v2 = vld [vmem:[%s4714_s4 + $0x8] sm:$0xff]  ;;  %v168_v3 = vld [vmem:[#allocation4] sm:$0xff]  ;;  %v196_v4 = vld [vmem:[%s4714_s4] sm:$0xff]  ;;  %s4739_s22 = sld [smem:[#allocation18_spill]]  ;;  %s3520_s25 = smov 120   ;;  %vm252_vm2 = vcmask 64512  }
  0x25   :  { %v169_v5 = vld [vmem:[%s4713_s3] sm:$0x1]  ;;  %s3521_s11 = smov 96   ;;  %s3523_s1 = smov 56   ;;  %v179_v26 = vld [vmem:[#allocation2 + $0x8] sm:$0xff]  ;;  %vm192_vm3 = vcmask 7168  }
  0x26   :  { %v170_v6 = vld [vmem:[#allocation2] sm:$0xff]  ;;  %230 = vmatpush.msra.mxu0 %v198_v1  ;;  %s3524_s15 = smov 72   ;;  %s3525_s20 = smov 104   ;;  %v180_v28 = vadd.f32 %v179_v26, %v168_v3  ;;  %vm194_vm4 = vcmask 72704   ;;  %vm289_vm5 = vcmask 130048   ;;  %vm675_vm6 = vcmask 195584  }
  0x27   :  { %v171_v7 = vadd.f32 %v170_v6, %v168_v3  ;;  %v3698_v13 = vld [vmem:[%s4715_s5] ss:$0 sm:$0xff]  ;;  %s3526_s21 = smov 80   ;;  %s3527_s23 = smov 112  }
  0x28   :  { %231 = vmatpush.msra.mxu0 %v197_v2  ;;  %v182_v30 = vrot.slane %v180_v28, 7  ;;  %s3528_s26 = smov 48   ;;  %s3529_s24 = smov 64  }
  0x29   :  { %v173_v8 = vrot.slane %v171_v7, 7  ;;  %s3530_s30 = smov 40   ;;  %s4731_s0 = smov 24  }
  0x2a   :  { %232 = vmatpush.msra.mxu0 %v196_v4  ;;  %v186_v11 = vld [vmem:[%s4739_s22] sm:$0x3]  ;;  %v3737_v31 = vsel %vm175_vm0, %v169_v5, %v182_v30  ;;  %v3747_v34 = vsel %vm175_vm0, %v182_v30, 0.0 }
  0x2b   :  { %v3682_v9 = vsel %vm175_vm0, %v169_v5, %v173_v8  ;;  %v3687_v10 = vsel %vm175_vm0, %v173_v8, 0.0  ;;  %v187_v12 = vmul.f32 -1e+30, %v186_v11 }
  0x2c   :  { %2890 = vmatmul.msk.f32.vlgmr.msra.gmra.mxu0 %vm204_vm1, %v3682_v9 }
  0x2d   :  { %189 = vrot.lane.b32.xlu2 %v187_v12, %s3514_s29  ;;  %s3522_s29 = smov 88  }
  0x34   :  { %2891 = vmatmul.msk.f32.gmra.mxu0 %vm204_vm1, %v3687_v10 }
  0x3c   :  { %2892 = vmatmul.msk.f32.gmra.mxu0 %vm204_vm1, %v3737_v31 }
  0x44   :  { %2893 = vmatmul.msk.f32.gmra.mxu0 %vm204_vm1, %v3747_v34 }
  0x87   :  { %v190_v19 = vpop.permute.xlu2 %189 }
  0x88   :  { %v193_v36 = vsel %vm192_vm3, 0.0, %v190_v19 }
  0x89   :  { %v3754_v37 = vsel %vm194_vm4, %v193_v36, -1e+30 }
  0x8a   :  { %v3757_v38 = vperm.slane %v3754_v37, 0 }
  0xa9   :  { %v234_v14 = vpop.f32.mrf.mxu0 }
  0xaa   :  { %v3701_v15 = vadd.f32 %v3698_v13, %v234_v14 }
  0xac   :  { %347 = vrot.lane.b32.xlu1 %v3701_v15, %s3520_s25 }
  0xb1   :  { %v237_v16 = vpop.f32.mrf.mxu0 }
  0xb2   :  { %v3706_v17 = vadd.f32 %v3698_v13, %v237_v16 }
  0xb4   :  { %250 = vrot.lane.b32.xlu2 %v3706_v17, %s3521_s11  ;;  %353 = vrot.lane.b32.xlu0 %v3706_v17, %s3522_s29  ;;  %v3716_v18 = vpack.i.bf16 %v3701_v15, %v3706_v17 }
  0xb5   :  { %349 = vrot.lane.b32.xlu1 %v3706_v17, %s3520_s25 }
  0xb9   :  { %v240_v47 = vpop.f32.mrf.mxu0 }
  0xba   :  { %v3764_v48 = vadd.f32 %v3698_v13, %v240_v47 }
  0xbc   :  { %351 = vrot.lane.b32.xlu0 %v3701_v15, %s3522_s29 }
  0xbd   :  { %3066 = vrot.lane.b32.xlu1 %v3716_v18, %s3523_s1 }
  0xc1   :  { %v243_v49 = vpop.f32.mrf.mxu0 }
  0xc2   :  { %v3769_v50 = vadd.f32 %v3698_v13, %v243_v49 }
  0xc4   :  { %248 = vrot.lane.b32.xlu0 %v3701_v15, %s3521_s11 }
  0xc5   :  { %553 = vrot.lane.b32.xlu1 %v3706_v17, %s3524_s15 }
  0xcd   :  { %551 = vrot.lane.b32.xlu1 %v3701_v15, %s3524_s15 }
  0xd5   :  { %547 = vrot.lane.b32.xlu1 %v3701_v15, %s3525_s20 }
  0xdd   :  { %549 = vrot.lane.b32.xlu1 %v3706_v17, %s3525_s20 }
  0xe5   :  { %680 = vrot.lane.b32.xlu1 %v3764_v48, %s3521_s11 }
  0xed   :  { %777 = vrot.lane.b32.xlu1 %v3764_v48, %s3520_s25 }
  0xf5   :  { %883 = vrot.lane.b32.xlu1 %v3769_v50, %s3526_s21 }
 0x10e   :  { %v251_v20 = vpop.permute.xlu2 %250 }
 0x10f   :  { %2894 = vmatpush.xpose.msk.msra.mxu1 %vm252_vm2, %v251_v20 }
 0x11e   :  { %v348_v21 = vpop.permute.xlu1 %347 }
 0x126   :  { %v354_v22 = vpop.permute.xlu0 %353 }
 0x127   :  { %v350_v23 = vpop.permute.xlu1 %349  ;;  %2900 = vmatpush.xpose.msk.msra.mxu3 %vm252_vm2, %v354_v22 }
 0x12e   :  { %v352_v24 = vpop.permute.xlu0 %351 }
 0x12f   :  { %v3067_v25 = vpop.permute.xlu1 %3066  ;;  %2901 = vmatpush.xpose.msk.msra.mxu3 %vm252_vm2, %v352_v24 }
 0x130   :  { %v3068_v27 = vunpack.i.l.bf16 %v3067_v25  ;;  %v3069_v29 = vunpack.i.h.bf16 %v3067_v25 }
 0x132   :  { %438 = vmatpush.msra.mxu2 %v3068_v27  ;;  %2902 = vmatmul.msk.f32.vlgmr.msra.gmra.mxu3 %vm252_vm2, %v348_v21 }
 0x134   :  { %439 = vmatpush.msra.mxu2 %v3069_v29 }
 0x136   :  { %v249_v32 = vpop.permute.xlu0 %248 }
 0x137   :  { %v554_v33 = vpop.permute.xlu1 %553  ;;  %2895 = vmatpush.xpose.msk.msra.mxu1 %vm252_vm2, %v249_v32 }
 0x138   :  { %2912 = vmatpush.xpose.msk.msrb.mxu2 %vm252_vm2, %v554_v33 }
 0x13a   :  { %2896 = vmatmul.msk.f32.vlgmr.msra.gmra.mxu1 %vm252_vm2, %v3701_v15  ;;  %2903 = vmatmul.msk.f32.gmra.mxu3 %vm252_vm2, %v350_v23 }
 0x13f   :  { %v552_v35 = vpop.permute.xlu1 %551 }
 0x140   :  { %2913 = vmatpush.xpose.msk.msrb.mxu2 %vm252_vm2, %v552_v35 }
 0x142   :  { %2897 = vmatmul.msk.f32.gmra.mxu1 %vm252_vm2, %v3706_v17 }
 0x147   :  { %v548_v61 = vpop.permute.xlu1 %547 }
 0x14f   :  { %v550_v63 = vpop.permute.xlu1 %549 }
 0x157   :  { %v681_v1 = vpop.permute.xlu1 %680 }
 0x15f   :  { %v778_v4 = vpop.permute.xlu1 %777 }
 0x167   :  { %v884_v7 = vpop.permute.xlu1 %883 }
 0x1b5   :  { %v380_v39 = vpop.f32.mrf.mxu3 }
 0x1b6   :  { %v386_v40 = vmul.f32 0.35355338, %v380_v39 }
 0x1b7   :  { %v278_v8 = vpop.f32.mrf.mxu1 }
 0x1b8   :  { %v388_v41 = vadd.f32 %v386_v40, %v3757_v38 }
 0x1ba   :  { %v390_v42 = vsel %vm289_vm5, %v388_v41, -inf }
 0x1bb   :  { %391 = vmax.xlane.f32.xlu2 %v390_v42 }
 0x1bd   :  { %v383_v43 = vpop.f32.mrf.mxu3 }
 0x1be   :  { %v387_v44 = vmul.f32 0.35355338, %v383_v43 }
 0x1bf   :  { %v281_v14 = vpop.f32.mrf.mxu1 }
 0x1c0   :  { %v389_v45 = vadd.f32 %v387_v44, %v3757_v38  ;;  %v285_v16 = vmul.f32 0.35355338, %v281_v14 }
 0x1c2   :  { %v393_v46 = vsel %vm289_vm5, %v389_v45, -inf  ;;  %v3821_v20 = vadd.f32 %v3757_v38, %v285_v16 }
 0x1c3   :  { %394 = vmax.xlane.f32.xlu0 %v393_v46  ;;  %v3844_v46 = vperm.slane %v3754_v37, 1 }
 0x1c4   :  { %v293_v22 = vsel %vm289_vm5, %v3821_v20, -inf }
 0x1d3   :  { %783 = vrot.lane.b32.xlu2 %v3769_v50, %s3522_s29 }
 0x1d7   :  { %453 = vrot.lane.b32.xlu0 %v3706_v17, %s3526_s21 }
 0x1db   :  { %881 = vrot.lane.b32.xlu2 %v3764_v48, %s3526_s21 }
 0x1df   :  { %451 = vrot.lane.b32.xlu0 %v3701_v15, %s3526_s21 }
 0x1e7   :  { %447 = vrot.lane.b32.xlu0 %v3701_v15, %s3527_s23  ;;  %v284_v15 = vmul.f32 0.35355338, %v278_v8 }
 0x1ef   :  { %449 = vrot.lane.b32.xlu0 %v3706_v17, %s3527_s23  ;;  %v287_v17 = vadd.f32 %v3757_v38, %v284_v15 }
 0x1f1   :  { %v290_v21 = vsel %vm289_vm5, %v287_v17, -inf }
 0x1f7   :  { %682 = vrot.lane.b32.xlu0 %v3769_v50, %s3521_s11 }
 0x1ff   :  { %781 = vrot.lane.b32.xlu0 %v3764_v48, %s3522_s29 }
 0x207   :  { %779 = vrot.lane.b32.xlu0 %v3769_v50, %s3520_s25 }
 0x20f   :  { %983 = vrot.lane.b32.xlu0 %v3769_v50, %s3524_s15 }
 0x217   :  { %877 = vrot.lane.b32.xlu0 %v3764_v48, %s3527_s23 }
 0x21f   :  { %979 = vrot.lane.b32.xlu0 %v3769_v50, %s3525_s20 }
 0x22e   :  { %v392_v51 = vpop.xlane.xlu2 %391 }
 0x22f   :  { %v396_v52 = vsub.f32 %v388_v41, %v392_v51 }
 0x231   :  { %v398_v53 = vmul.f32 1.442695, %v396_v52 }
 0x233   :  { %3163 = vpow2.f32 %v398_v53 }
 0x236   :  { %v395_v54 = vpop.xlane.xlu0 %394  ;;  %v784_v5 = vpop.permute.xlu2 %783 }
 0x237   :  { %v397_v55 = vsub.f32 %v389_v45, %v395_v54 }
 0x239   :  { %v3164_v56 = vpop.eup %3163  ;;  %v400_v57 = vmul.f32 1.442695, %v397_v55 }
 0x23a   :  { %v402_v58 = vsel %vm289_vm5, %v3164_v56, 0.0 }
 0x23b   :  { %3165 = vpow2.f32 %v400_v57  ;;  %403 = vadd.xlane.f32.xlu1 %v402_v58 }
 0x23e   :  { %v882_v12 = vpop.permute.xlu2 %881 }
 0x241   :  { %v3166_v59 = vpop.eup %3165 }
 0x242   :  { %v405_v60 = vsel %vm289_vm5, %v3166_v59, 0.0 }
 0x243   :  { %406 = vadd.xlane.f32.xlu2 %v405_v60 }
 0x249   :  { %v454_v62 = vpop.permute.xlu0 %453 }
 0x24a   :  { %2906 = vmatpush.xpose.msk.msrb.mxu1 %vm252_vm2, %v454_v62 }
 0x251   :  { %v452_v0 = vpop.permute.xlu0 %451 }
 0x252   :  { %2907 = vmatpush.xpose.msk.msrb.mxu1 %vm252_vm2, %v452_v0 }
 0x254   :  { %981 = vrot.lane.b32.xlu1 %v3764_v48, %s3524_s15 }
 0x259   :  { %v448_v2 = vpop.permute.xlu0 %447 }
 0x25a   :  { %2908 = vmatmul.msk.f32.vlgmr.msrb.gmra.mxu1 %vm252_vm2, %v448_v2 }
 0x25b   :  { %977 = vrot.lane.b32.xlu2 %v3764_v48, %s3525_s20 }
 0x25c   :  { %879 = vrot.lane.b32.xlu1 %v3769_v50, %s3527_s23 }
 0x261   :  { %v450_v3 = vpop.permute.xlu0 %449 }
 0x262   :  { %2909 = vmatmul.msk.f32.gmra.mxu1 %vm252_vm2, %v450_v3 }
 0x269   :  { %v683_v6 = vpop.permute.xlu0 %682 }
 0x26a   :  { %2918 = vmatpush.xpose.msk.msra.mxu1 %vm252_vm2, %v683_v6 }
 0x26e   :  { %2919 = vmatpush.xpose.msk.msra.mxu1 %vm252_vm2, %v681_v1 }
 0x271   :  { %2920 = vmatmul.msk.f32.vlgmr.msra.gmra.mxu1 %vm252_vm2, %v3764_v48  ;;  %v782_v11 = vpop.permute.xlu0 %781 }
 0x272   :  { %2930 = vmatpush.xpose.msk.msrb.mxu1 %vm252_vm2, %v884_v7 }
 0x276   :  { %2931 = vmatpush.xpose.msk.msrb.mxu1 %vm252_vm2, %v882_v12 }
 0x279   :  { %2921 = vmatmul.msk.f32.gmra.mxu1 %vm252_vm2, %v3769_v50  ;;  %v780_v13 = vpop.permute.xlu0 %779 }
 0x281   :  { %v984_v19 = vpop.permute.xlu0 %983 }
 0x284   :  { %291 = vmax.xlane.f32.xlu2 %v290_v21 }
 0x286   :  { %294 = vmax.xlane.f32.xlu1 %v293_v22 }
 0x289   :  { %v878_v23 = vpop.permute.xlu0 %877 }
 0x28a   :  { %2932 = vmatmul.msk.f32.vlgmr.msrb.gmra.mxu1 %vm252_vm2, %v878_v23 }
 0x291   :  { %v980_v47 = vpop.permute.xlu0 %979 }
 0x2ae   :  { %v404_v24 = vpop.xlane.xlu1 %403 }
 0x2af   :  { %3167 = vrcp.f32 %v404_v24 }
 0x2b5   :  { %v3168_v25 = vpop.eup %3167 }
 0x2b6   :  { %v407_v26 = vpop.xlane.xlu2 %406  ;;  %v410_v27 = vmul.f32 %v3168_v25, %v3164_v56 }
 0x2b7   :  { %3169 = vrcp.f32 %v407_v26 }
 0x2b8   :  { %2904 = vmatmul.msk.f32.vlgmr.msra.gmra.mxu2 %vm289_vm5, %v410_v27 }
 0x2b9   :  { %2924 = vmatpush.xpose.msk.msra.mxu2 %vm252_vm2, %v784_v5 }
 0x2bd   :  { %v3170_v28 = vpop.eup %3169  ;;  %2925 = vmatpush.xpose.msk.msra.mxu2 %vm252_vm2, %v782_v11 }
 0x2be   :  { %v411_v29 = vmul.f32 %v3170_v28, %v3166_v59  ;;  %v978_v44 = vpop.permute.xlu2 %977 }
 0x2c0   :  { %2905 = vmatmul.msk.f32.gmra.mxu2 %vm289_vm5, %v411_v29 }
 0x2c6   :  { %v982_v30 = vpop.permute.xlu1 %981 }
 0x2c8   :  { %2914 = vmatmul.msk.f32.vlgmr.msrb.gmra.mxu2 %vm252_vm2, %v548_v61 }
 0x2c9   :  { %2936 = vmatpush.xpose.msk.msrb.mxu2 %vm252_vm2, %v984_v19 }
 0x2cd   :  { %2937 = vmatpush.xpose.msk.msrb.mxu2 %vm252_vm2, %v982_v30 }
 0x2ce   :  { %v880_v32 = vpop.permute.xlu1 %879 }
 0x2cf   :  { %2933 = vmatmul.msk.f32.gmra.mxu1 %vm252_vm2, %v880_v32 }
 0x2d0   :  { %2915 = vmatmul.msk.f32.gmra.mxu2 %vm252_vm2, %v550_v63 }
 0x2d7   :  { %v480_v33 = vpop.f32.mrf.mxu1 }
 0x2d8   :  { %v486_v35 = vmul.f32 0.35355338, %v480_v33  ;;  %2926 = vmatmul.msk.f32.vlgmr.msra.gmra.mxu2 %vm252_vm2, %v778_v4 }
 0x2da   :  { %v488_v36 = vadd.f32 %v486_v35, %v3757_v38 }
 0x2dc   :  { %v490_v39 = vsel %vm289_vm5, %v488_v36, -inf }
 0x2dd   :  { %491 = vmax.xlane.f32.xlu0 %v490_v39 }
 0x2df   :  { %v483_v40 = vpop.f32.mrf.mxu1 }
 0x2e0   :  { %v487_v41 = vmul.f32 0.35355338, %v483_v40  ;;  %2927 = vmatmul.msk.f32.gmra.mxu2 %vm252_vm2, %v780_v13 }
 0x2e2   :  { %v489_v42 = vadd.f32 %v487_v41, %v3757_v38 }
 0x2e4   :  { %v493_v43 = vsel %vm289_vm5, %v489_v42, -inf }
 0x2e5   :  { %494 = vmax.xlane.f32.xlu1 %v493_v43 }
 0x2e8   :  { %2938 = vmatmul.msk.f32.vlgmr.msrb.gmra.mxu2 %vm252_vm2, %v978_v44 }
 0x2ee   :  { %v709_v45 = vpop.f32.mrf.mxu1 }
 0x2ef   :  { %v715_v49 = vmul.f32 0.35355338, %v709_v45  ;;  %v3911_v45 = vpack.i.bf16 %v3764_v48, %v3769_v50 }
 0x2f0   :  { %2939 = vmatmul.msk.f32.gmra.mxu2 %vm252_vm2, %v980_v47 }
 0x2f1   :  { %v3848_v51 = vadd.f32 %v3844_v46, %v715_v49 }
 0x2f3   :  { %v720_v52 = vsel %vm289_vm5, %v3848_v51, -inf }
 0x2f4   :  { %721 = vmax.xlane.f32.xlu2 %v720_v52 }
 0x2f6   :  { %v712_v53 = vpop.f32.mrf.mxu1 }
 0x2f7   :  { %v716_v54 = vmul.f32 0.35355338, %v712_v53  ;;  %v292_v56 = vpop.xlane.xlu2 %291 }
 0x2f8   :  { %v296_v57 = vsub.f32 %v287_v17, %v292_v56 }
 0x2f9   :  { %v3853_v55 = vadd.f32 %v3844_v46, %v716_v54  ;;  %v295_v60 = vpop.xlane.xlu1 %294 }
 0x2fa   :  { %v298_v58 = vmul.f32 1.442695, %v296_v57  ;;  %v297_v63 = vsub.f32 %v3821_v20, %v295_v60 }
 0x2fb   :  { %v723_v37 = vsel %vm289_vm5, %v3853_v55, -inf }
 0x2fc   :  { %724 = vmax.xlane.f32.xlu0 %v723_v37  ;;  %3171 = vpow2.f32 %v298_v58  ;;  %v300_v1 = vmul.f32 1.442695, %v297_v63 }
 0x2fe   :  { %3173 = vpow2.f32 %v300_v1 }
 0x302   :  { %v3863_v2 = vpop.eup %3171 }
 0x303   :  { %v302_v3 = vsel %vm289_vm5, %v3863_v2, 0.0 }
 0x304   :  { %v3867_v4 = vpop.eup %3173 }
 0x305   :  { %v305_v5 = vsel %vm289_vm5, %v3867_v4, 0.0 }
 0x307   :  { %v910_v59 = vpop.f32.mrf.mxu1 }
 0x308   :  { %v916_v61 = vmul.f32 0.35355338, %v910_v59 }
 0x30a   :  { %v3858_v62 = vadd.f32 %v916_v61, %v3844_v46 }
 0x30c   :  { %v920_v0 = vsel %vm289_vm5, %v3858_v62, -inf }
 0x30d   :  { %921 = vmax.xlane.f32.xlu1 %v920_v0 }
 0x315   :  { %303 = vadd.xlane.f32.xlu1 %v302_v3 }
 0x31d   :  { %306 = vadd.xlane.f32.xlu1 %v305_v5 }
 0x336   :  { %3076 = vrot.lane.b32.xlu1 %v3716_v18, %s3528_s26 }
 0x33b   :  { %v3873_v6 = vpop.f32.mrf.mxu2 }
 0x343   :  { %v3875_v7 = vpop.f32.mrf.mxu2 }
 0x34b   :  { %v580_v8 = vpop.f32.mrf.mxu2 }
 0x34c   :  { %v913_v11 = vpop.f32.mrf.mxu1  ;;  %v586_v52 = vmul.f32 0.35355338, %v580_v8 }
 0x34d   :  { %v917_v12 = vmul.f32 0.35355338, %v913_v11 }
 0x34e   :  { %v3921_v54 = vadd.f32 %v586_v52, %v3757_v38 }
 0x34f   :  { %v3878_v13 = vadd.f32 %v917_v12, %v3844_v46 }
 0x350   :  { %v492_v14 = vpop.xlane.xlu0 %491  ;;  %v590_v50 = vsel %vm289_vm5, %v3921_v54, -inf }
 0x351   :  { %v496_v15 = vsub.f32 %v488_v36, %v492_v14  ;;  %v923_v16 = vsel %vm289_vm5, %v3878_v13, -inf }
 0x352   :  { %924 = vmax.xlane.f32.xlu2 %v923_v16 }
 0x353   :  { %v498_v17 = vmul.f32 1.442695, %v496_v15  ;;  %v583_v19 = vpop.f32.mrf.mxu2 }
 0x354   :  { %v587_v32 = vmul.f32 0.35355338, %v583_v19 }
 0x355   :  { %3175 = vpow2.f32 %v498_v17 }
 0x356   :  { %v3898_v35 = vadd.f32 %v587_v32, %v3757_v38 }
 0x358   :  { %v495_v20 = vpop.xlane.xlu1 %494  ;;  %v593_v40 = vsel %vm289_vm5, %v3898_v35, -inf }
 0x359   :  { %v497_v21 = vsub.f32 %v489_v42, %v495_v20 }
 0x35b   :  { %v3882_v22 = vpop.eup %3175  ;;  %v500_v23 = vmul.f32 1.442695, %v497_v21  ;;  %v810_v24 = vpop.f32.mrf.mxu2 }
 0x35c   :  { %v816_v25 = vmul.f32 0.35355338, %v810_v24  ;;  %v502_v26 = vsel %vm289_vm5, %v3882_v22, 0.0 }
 0x35d   :  { %3177 = vpow2.f32 %v500_v23  ;;  %503 = vadd.xlane.f32.xlu0 %v502_v26 }
 0x35e   :  { %v3887_v27 = vadd.f32 %v816_v25, %v3844_v46 }
 0x360   :  { %v820_v28 = vsel %vm289_vm5, %v3887_v27, -inf }
 0x361   :  { %821 = vmax.xlane.f32.xlu1 %v820_v28 }
 0x363   :  { %v3891_v29 = vpop.eup %3177  ;;  %v3893_v30 = vpop.f32.mrf.mxu2 }
 0x364   :  { %v505_v33 = vsel %vm289_vm5, %v3891_v29, 0.0  ;;  %v817_v21 = vmul.f32 0.35355338, %v3893_v30 }
 0x365   :  { %506 = vadd.xlane.f32.xlu0 %v505_v33 }
 0x367   :  { %v722_v0 = vpop.xlane.xlu2 %721 }
 0x368   :  { %v726_v1 = vsub.f32 %v3848_v51, %v722_v0 }
 0x36a   :  { %3071 = vrot.lane.b32.xlu2 %v3716_v18, %s3529_s24  ;;  %v728_v3 = vmul.f32 1.442695, %v726_v1 }
 0x36b   :  { %v1010_v36 = vpop.f32.mrf.mxu2 }
 0x36c   :  { %v1016_v39 = vmul.f32 0.35355338, %v1010_v36 }
 0x36d   :  { %594 = vmax.xlane.f32.xlu0 %v593_v40 }
 0x36e   :  { %v3905_v41 = vadd.f32 %v1016_v39, %v3844_v46 }
 0x36f   :  { %v725_v37 = vpop.xlane.xlu0 %724 }
 0x370   :  { %v1020_v44 = vsel %vm289_vm5, %v3905_v41, -inf  ;;  %v727_v48 = vsub.f32 %v3853_v55, %v725_v37 }
 0x372   :  { %v730_v56 = vmul.f32 1.442695, %v727_v48 }
 0x373   :  { %v1013_v42 = vpop.f32.mrf.mxu2 }
 0x374   :  { %v1017_v43 = vmul.f32 0.35355338, %v1013_v42  ;;  %3179 = vpow2.f32 %v730_v56 }
 0x375   :  { %1021 = vmax.xlane.f32.xlu0 %v1020_v44 }
 0x376   :  { %v3914_v47 = vadd.f32 %v1017_v43, %v3844_v46 }
 0x378   :  { %v1023_v49 = vsel %vm289_vm5, %v3914_v47, -inf }
 0x37a   :  { %3086 = vrot.lane.b32.xlu1 %v3911_v45, %s3529_s24  ;;  %v3928_v58 = vpop.eup %3179 }
 0x37b   :  { %v735_v60 = vsel %vm289_vm5, %v3928_v58, 0.0 }
 0x37d   :  { %1024 = vmax.xlane.f32.xlu0 %v1023_v49 }
 0x380   :  { %v922_v53 = vpop.xlane.xlu1 %921 }
 0x381   :  { %v926_v51 = vsub.f32 %v3858_v62, %v922_v53  ;;  %v3949_v62 = vadd.f32 %v817_v21, %v3844_v46 }
 0x383   :  { %v928_v24 = vmul.f32 1.442695, %v926_v51  ;;  %v823_v30 = vsel %vm289_vm5, %v3949_v62, -inf }
 0x388   :  { %v304_v57 = vpop.xlane.xlu1 %303 }
 0x389   :  { %3181 = vrcp.f32 %v304_v57 }
 0x38a   :  { %3183 = vpow2.f32 %v728_v3 }
 0x38f   :  { %v3182_v14 = vpop.eup %3181 }
 0x390   :  { %v307_v59 = vpop.xlane.xlu1 %306  ;;  %v3936_v16 = vpop.eup %3183  ;;  %v310_v20 = vmul.f32 %v3182_v14, %v3863_v2 }
 0x391   :  { %3091 = vrot.lane.b32.xlu0 %v3911_v45, %s3523_s1  ;;  %v732_v23 = vsel %vm289_vm5, %v3936_v16, 0.0 }
 0x393   :  { %591 = vmax.xlane.f32.xlu2 %v590_v50 }
 0x3a4   :  { %736 = vadd.xlane.f32.xlu1 %v735_v60 }
 0x3a8   :  { %v3077_v61 = vpop.permute.xlu1 %3076 }
 0x3a9   :  { %v3078_v63 = vunpack.i.l.bf16 %v3077_v61  ;;  %v3079_v55 = vunpack.i.h.bf16 %v3077_v61 }
 0x3ab   :  { %538 = vmatpush.msrb.mxu3 %v3078_v63  ;;  %3081 = vrot.lane.b32.xlu2 %v3716_v18, %s3530_s30 }
 0x3ad   :  { %539 = vmatpush.msrb.mxu3 %v3079_v55 }
 0x3c5   :  { %v925_v5 = vpop.xlane.xlu2 %924 }
 0x3c6   :  { %v927_v8 = vsub.f32 %v3878_v13, %v925_v5 }
 0x3c8   :  { %v930_v11 = vmul.f32 1.442695, %v927_v8 }
 0x3ca   :  { %3185 = vpow2.f32 %v930_v11 }
 0x3cb   :  { %3187 = vrcp.f32 %v307_v59 }
 0x3cd   :  { %v3072_v12 = vpop.permute.xlu2 %3071 }
 0x3ce   :  { %v3073_v15 = vunpack.i.l.bf16 %v3072_v12  ;;  %v3074_v19 = vunpack.i.h.bf16 %v3072_v12 }
 0x3d0   :  { %v3938_v17 = vpop.eup %3185  ;;  %338 = vmatpush.msrb.mxu0 %v3073_v15  ;;  %v504_v18 = vpop.xlane.xlu0 %503 }
 0x3d1   :  { %3189 = vrcp.f32 %v504_v18  ;;  %v935_v13 = vsel %vm289_vm5, %v3938_v17, 0.0  ;;  %v3188_v25 = vpop.eup %3187 }
 0x3d2   :  { %339 = vmatpush.msrb.mxu0 %v3074_v19  ;;  %936 = vadd.xlane.f32.xlu1 %v935_v13  ;;  %3191 = vpow2.f32 %v928_v24  ;;  %v311_v2 = vmul.f32 %v3188_v25, %v3867_v4 }
 0x3d3   :  { %2898 = vmatmul.msk.f32.vlgmr.msrb.gmra.mxu0 %vm289_vm5, %v310_v20 }
 0x3d4   :  { %733 = vadd.xlane.f32.xlu2 %v732_v23 }
 0x3d7   :  { %v3190_v26 = vpop.eup %3189 }
 0x3d8   :  { %v507_v28 = vpop.xlane.xlu0 %506  ;;  %v510_v32 = vmul.f32 %v3190_v26, %v3882_v22  ;;  %v3957_v33 = vpop.eup %3191 }
 0x3d9   :  { %3193 = vrcp.f32 %v507_v28  ;;  %v932_v4 = vsel %vm289_vm5, %v3957_v33, 0.0  ;;  %v822_v22 = vpop.xlane.xlu1 %821 }
 0x3da   :  { %2910 = vmatmul.msk.f32.vlgmr.msrb.gmra.mxu3 %vm289_vm5, %v510_v32  ;;  %v826_v0 = vsub.f32 %v3887_v27, %v822_v22 }
 0x3db   :  { %2899 = vmatmul.msk.f32.gmra.mxu0 %vm289_vm5, %v311_v2 }
 0x3dc   :  { %824 = vmax.xlane.f32.xlu2 %v823_v30 }
 0x3df   :  { %v3194_v36 = vpop.eup %3193 }
 0x3e0   :  { %v595_v39 = vpop.xlane.xlu0 %594  ;;  %v511_v40 = vmul.f32 %v3194_v36, %v3891_v29 }
 0x3e1   :  { %v597_v56 = vsub.f32 %v3898_v35, %v595_v39 }
 0x3e2   :  { %2911 = vmatmul.msk.f32.gmra.mxu3 %vm289_vm5, %v511_v40 }
 0x3e3   :  { %v600_v59 = vmul.f32 1.442695, %v597_v56 }
 0x3e4   :  { %933 = vadd.xlane.f32.xlu2 %v932_v4 }
 0x3e8   :  { %v1022_v42 = vpop.xlane.xlu0 %1021 }
 0x3e9   :  { %v1026_v43 = vsub.f32 %v3905_v41, %v1022_v42 }
 0x3eb   :  { %v1028_v44 = vmul.f32 1.442695, %v1026_v43 }
 0x3ec   :  { %v3087_v49 = vpop.permute.xlu1 %3086 }
 0x3ed   :  { %3195 = vpow2.f32 %v1028_v44  ;;  %v3088_v52 = vunpack.i.l.bf16 %v3087_v49  ;;  %v3089_v53 = vunpack.i.h.bf16 %v3087_v49 }
 0x3ef   :  { %768 = vmatpush.msra.mxu3 %v3088_v52 }
 0x3f0   :  { %v1025_v50 = vpop.xlane.xlu0 %1024 }
 0x3f1   :  { %769 = vmatpush.msra.mxu3 %v3089_v53 }
 0x3f3   :  { %v3964_v37 = vpop.eup %3195 }
 0x3f4   :  { %v1032_v29 = vsel %vm289_vm5, %v3964_v37, 0.0 }
 0x3f5   :  { %1033 = vadd.xlane.f32.xlu1 %v1032_v29 }
 0x3fc   :  { %3096 = vrot.lane.b32.xlu2 %v3911_v45, %s3528_s26 }
 0x403   :  { %v3092_v61 = vpop.permute.xlu0 %3091 }
 0x404   :  { %v3093_v3 = vunpack.i.l.bf16 %v3092_v61  ;;  %v3094_v5 = vunpack.i.h.bf16 %v3092_v61 }
 0x406   :  { %v592_v48 = vpop.xlane.xlu2 %591 }
 0x407   :  { %v596_v41 = vsub.f32 %v3921_v54, %v592_v48  ;;  %v1027_v54 = vsub.f32 %v3914_v47, %v1025_v50 }
 0x409   :  { %v598_v57 = vmul.f32 1.442695, %v596_v41  ;;  %v1030_v11 = vmul.f32 1.442695, %v1027_v54 }
 0x40b   :  { %3197 = vpow2.f32 %v598_v57 }
 0x40c   :  { %3199 = vpow2.f32 %v600_v59 }
 0x40e   :  { %v3082_v60 = vpop.permute.xlu2 %3081  ;;  %3101 = vrot.lane.b32.xlu1 %v3911_v45, %s3530_s30  ;;  %v828_v45 = vmul.f32 1.442695, %v826_v0 }
 0x40f   :  { %v3083_v63 = vunpack.i.l.bf16 %v3082_v60  ;;  %v3084_v1 = vunpack.i.h.bf16 %v3082_v60 }
 0x410   :  { %3201 = vpow2.f32 %v828_v45 }
 0x411   :  { %v3974_v55 = vpop.eup %3197  ;;  %638 = vmatpush.msra.mxu0 %v3083_v63  ;;  %3203 = vpow2.f32 %v1030_v11  ;;  %v1109_v11 = vld [vmem:[%s4716_s6 + $0x10] sm:$0xff] }
 0x412   :  { %v602_v35 = vsel %vm289_vm5, %v3974_v55, 0.0  ;;  %v3980_v8 = vpop.eup %3199 }
 0x413   :  { %639 = vmatpush.msra.mxu0 %v3084_v1  ;;  %603 = vadd.xlane.f32.xlu0 %v602_v35  ;;  %v605_v27 = vsel %vm289_vm5, %v3980_v8, 0.0 }
 0x415   :  { %868 = vmatpush.msrb.mxu0 %v3093_v3 }
 0x416   :  { %v3202_v12 = vpop.eup %3201 }
 0x417   :  { %869 = vmatpush.msrb.mxu0 %v3094_v5  ;;  %v3984_v14 = vpop.eup %3203  ;;  %v832_v47 = vsel %vm289_vm5, %v3202_v12, 0.0  ;;  %v737_v19 = vpop.xlane.xlu1 %736 }
 0x418   :  { %v1035_v15 = vsel %vm289_vm5, %v3984_v14, 0.0 }
 0x41b   :  { %606 = vadd.xlane.f32.xlu0 %v605_v27  ;;  %v1108_v27 = vld [vmem:[%s4716_s6 + $0x8] sm:$0xff] }
 0x423   :  { %833 = vadd.xlane.f32.xlu0 %v832_v47  ;;  %v1107_v47 = vld [vmem:[%s4716_s6] sm:$0xff] }
 0x425   :  { %1036 = vadd.xlane.f32.xlu2 %v1035_v15 }
 0x447   :  { %v734_v18 = vpop.xlane.xlu2 %733 }
 0x448   :  { %3205 = vrcp.f32 %v734_v18 }
 0x449   :  { %3207 = vrcp.f32 %v737_v19 }
 0x44e   :  { %v3206_v51 = vpop.eup %3205 }
 0x44f   :  { %v740_v13 = vmul.f32 %v3206_v51, %v3936_v16  ;;  %v825_v20 = vpop.xlane.xlu2 %824  ;;  %v3208_v24 = vpop.eup %3207 }
 0x450   :  { %v827_v21 = vsub.f32 %v3949_v62, %v825_v20  ;;  %v741_v26 = vmul.f32 %v3208_v24, %v3928_v58  ;;  %v937_v16 = vpop.xlane.xlu1 %936  ;;  %v341_v35 = vpop.f32.mrf.mxu0 }
 0x451   :  { %2922 = vmatmul.msk.f32.vlgmr.msra.gmra.mxu3 %vm289_vm5, %v740_v13 }
 0x452   :  { %v830_v23 = vmul.f32 1.442695, %v827_v21 }
 0x454   :  { %3209 = vpow2.f32 %v830_v23 }
 0x457   :  { %v934_v25 = vpop.xlane.xlu2 %933 }
 0x458   :  { %3211 = vrcp.f32 %v934_v25  ;;  %v344_v54 = vpop.f32.mrf.mxu0 }
 0x459   :  { %2923 = vmatmul.msk.f32.gmra.mxu3 %vm289_vm5, %v741_v26  ;;  %3213 = vrcp.f32 %v937_v16 }
 0x45a   :  { %v3210_v28 = vpop.eup %3209 }
 0x45b   :  { %v835_v32 = vsel %vm289_vm5, %v3210_v28, 0.0 }
 0x45c   :  { %836 = vadd.xlane.f32.xlu0 %v835_v32 }
 0x45d   :  { %v541_v2 = vpop.f32.mrf.mxu3 }
 0x45e   :  { %657 = vrot.lane.b32.xlu1 %v541_v2, %s3513_s28  ;;  %v3212_v30 = vpop.eup %3211 }
 0x45f   :  { %v3097_v62 = vpop.permute.xlu2 %3096  ;;  %v940_v40 = vmul.f32 %v3212_v30, %v3957_v33  ;;  %v3214_v58 = vpop.eup %3213 }
 0x460   :  { %v3098_v36 = vunpack.i.l.bf16 %v3097_v62  ;;  %v3099_v39 = vunpack.i.h.bf16 %v3097_v62  ;;  %v941_v4 = vmul.f32 %v3214_v58, %v3938_v17 }
 0x462   :  { %968 = vmatpush.msrb.mxu3 %v3098_v36 }
 0x464   :  { %969 = vmatpush.msrb.mxu3 %v3099_v39 }
 0x465   :  { %2934 = vmatmul.msk.f32.vlgmr.msrb.gmra.mxu3 %vm289_vm5, %v940_v40  ;;  %v544_v50 = vpop.f32.mrf.mxu3 }
 0x466   :  { %651 = vrot.lane.b32.xlu1 %v3875_v7, %s4738_s2 }
 0x468   :  { %v1034_v22 = vpop.xlane.xlu1 %1033 }
 0x46d   :  { %2935 = vmatmul.msk.f32.gmra.mxu3 %vm289_vm5, %v941_v4 }
 0x470   :  { %649 = vrot.lane.b32.xlu0 %v3873_v6, %s4738_s2 }
 0x480   :  { %v3102_v43 = vpop.permute.xlu1 %3101 }
 0x481   :  { %v3103_v52 = vunpack.i.l.bf16 %v3102_v43  ;;  %v3104_v7 = vunpack.i.h.bf16 %v3102_v43 }
 0x486   :  { %v604_v42 = vpop.xlane.xlu0 %603 }
 0x487   :  { %3215 = vrcp.f32 %v604_v42 }
 0x48d   :  { %v3216_v44 = vpop.eup %3215 }
 0x48e   :  { %v610_v33 = vmul.f32 %v3216_v44, %v3974_v55  ;;  %v607_v49 = vpop.xlane.xlu0 %606 }
 0x48f   :  { %3217 = vrcp.f32 %v607_v49 }
 0x490   :  { %2916 = vmatmul.msk.f32.vlgmr.msra.gmra.mxu0 %vm289_vm5, %v610_v33  ;;  %v3146_v33 = vld [vmem:[#allocation6] ss:$0 sm:$0xff] }
 0x491   :  { %1068 = vmatpush.msra.mxu0 %v3103_v52 }
 0x493   :  { %1069 = vmatpush.msra.mxu0 %v3104_v7 }
 0x495   :  { %v3218_v17 = vpop.eup %3217 }
 0x496   :  { %v834_v53 = vpop.xlane.xlu0 %833  ;;  %v611_v29 = vmul.f32 %v3218_v17, %v3980_v8  ;;  %v1110_v8 = vld [vmem:[%s4716_s6 + $0x18] sm:$0xff] }
 0x497   :  { %3219 = vrcp.f32 %v834_v53  ;;  %1139 = vmatpush.msra.mxu1 %v1110_v8 }
 0x498   :  { %2917 = vmatmul.msk.f32.gmra.mxu0 %vm289_vm5, %v611_v29  ;;  %v1037_v60 = vpop.xlane.xlu2 %1036 }
 0x499   :  { %1140 = vmatpush.msra.mxu1 %v1109_v11 }
 0x49b   :  { %1141 = vmatpush.msra.mxu1 %v1108_v27 }
 0x49d   :  { %v3220_v6 = vpop.eup %3219  ;;  %1142 = vmatpush.msra.mxu1 %v1107_v47 }
 0x49e   :  { %v840_v48 = vmul.f32 %v3220_v6, %v3202_v12 }
 0x4a0   :  { %2928 = vmatmul.msk.f32.vlgmr.msrb.gmra.mxu0 %vm289_vm5, %v840_v48 }
 0x4cf   :  { %v837_v41 = vpop.xlane.xlu0 %836 }
 0x4d0   :  { %3221 = vrcp.f32 %v837_v41  ;;  %v658_v19 = vpop.permute.xlu1 %657 }
 0x4d1   :  { %3223 = vrcp.f32 %v1034_v22 }
 0x4d2   :  { %3225 = vrcp.f32 %v1037_v60 }
 0x4d4   :  { %v771_v57 = vpop.f32.mrf.mxu3 }
 0x4d6   :  { %v3222_v56 = vpop.eup %3221 }
 0x4d7   :  { %v841_v59 = vmul.f32 %v3222_v56, %v3210_v28  ;;  %v3224_v61 = vpop.eup %3223 }
 0x4d8   :  { %v1040_v63 = vmul.f32 %v3224_v61, %v3964_v37  ;;  %v3226_v0 = vpop.eup %3225  ;;  %v652_v20 = vpop.permute.xlu1 %651  ;;  %v3532_v61 = vmov 32.0  }
 0x4d9   :  { %2929 = vmatmul.msk.f32.gmra.mxu0 %vm289_vm5, %v841_v59  ;;  %v1041_v1 = vmul.f32 %v3226_v0, %v3984_v14  ;;  %v672_v25 = vsel %vm252_vm2, %v344_v54, %v652_v20  ;;  %3227 = vrcp.f32 %v3532_v61 }
 0x4dc   :  { %v774_v55 = vpop.f32.mrf.mxu3 }
 0x4e1   :  { %2940 = vmatmul.msk.f32.vlgmr.msra.gmra.mxu0 %vm289_vm5, %v1040_v63 }
 0x4e2   :  { %v650_v51 = vpop.permute.xlu0 %649 }
 0x4e3   :  { %v671_v13 = vsel %vm252_vm2, %v341_v35, %v650_v51 }
 0x4e4   :  { %v673_v21 = vsel %vm289_vm5, %v671_v13, %v658_v19 }
 0x4e8   :  { %v971_v3 = vpop.f32.mrf.mxu3 }
 0x4e9   :  { %1087 = vrot.lane.b32.xlu2 %v971_v3, %s3513_s28  ;;  %2941 = vmatmul.msk.f32.gmra.mxu0 %vm289_vm5, %v1041_v1 }
 0x4f0   :  { %v974_v15 = vpop.f32.mrf.mxu3 }
 0x50d   :  { %v641_v5 = vpop.f32.mrf.mxu0 }
 0x50e   :  { %665 = vrot.lane.b32.xlu0 %v641_v5, %s4731_s0 }
 0x515   :  { %v644_v45 = vpop.f32.mrf.mxu0 }
 0x516   :  { %659 = vrot.lane.b32.xlu0 %v544_v50, %s3513_s28  ;;  %667 = vrot.lane.b32.xlu1 %v644_v45, %s4731_s0 }
 0x51d   :  { %v871_v37 = vpop.f32.mrf.mxu0 }
 0x51e   :  { %1079 = vrot.lane.b32.xlu0 %v871_v37, %s4738_s2 }
 0x543   :  { %v1088_v30 = vpop.permute.xlu2 %1087 }
 0x556   :  { %v874_v12 = vpop.f32.mrf.mxu0 }
 0x557   :  { %1081 = vrot.lane.b32.xlu0 %v874_v12, %s4738_s2 }
 0x55e   :  { %v1071_v14 = vpop.f32.mrf.mxu0 }
 0x55f   :  { %1095 = vrot.lane.b32.xlu1 %v1071_v14, %s4731_s0 }
 0x566   :  { %v1074_v18 = vpop.f32.mrf.mxu0 }
 0x567   :  { %1089 = vrot.lane.b32.xlu1 %v974_v15, %s3513_s28  ;;  %1097 = vrot.lane.b32.xlu0 %v1074_v18, %s4731_s0 }
 0x580   :  { %v666_v23 = vpop.permute.xlu0 %665 }
 0x581   :  { %v676_v24 = vsel %vm675_vm6, %v673_v21, %v666_v23 }
 0x582   :  { %2942 = vmatmul.msk.f32.vlgmr.msra.gmra.mxu1 %vm204_vm1, %v676_v24  ;;  %v1274_v24 = vld [vmem:[%s4722_s12 + $0x18] sm:$0xff] }
 0x583   :  { %1303 = vmatpush.msra.mxu3 %v1274_v24 }
 0x588   :  { %v668_v26 = vpop.permute.xlu1 %667  ;;  %v660_v28 = vpop.permute.xlu0 %659 }
 0x589   :  { %v674_v32 = vsel %vm289_vm5, %v672_v25, %v660_v28  ;;  %v1273_v25 = vld [vmem:[%s4722_s12 + $0x10] sm:$0xff]  ;;  %v1271_v28 = vld [vmem:[%s4722_s12] sm:$0xff] }
 0x58a   :  { %v677_v2 = vsel %vm675_vm6, %v674_v32, %v668_v26  ;;  %1304 = vmatpush.msra.mxu3 %v1273_v25  ;;  %v1272_v26 = vld [vmem:[%s4722_s12 + $0x8] sm:$0xff] }
 0x58b   :  { %2943 = vmatmul.msk.f32.gmra.mxu1 %vm204_vm1, %v677_v2 }
 0x58c   :  { %1305 = vmatpush.msra.mxu3 %v1272_v26 }
 0x58e   :  { %1306 = vmatpush.msra.mxu3 %v1271_v28 }
 0x590   :  { %v1080_v16 = vpop.permute.xlu0 %1079 }
 0x591   :  { %v1101_v62 = vsel %vm252_vm2, %v771_v57, %v1080_v16 }
 0x592   :  { %v1103_v40 = vsel %vm289_vm5, %v1101_v62, %v1088_v30 }
 0x5c9   :  { %v1082_v36 = vpop.permute.xlu0 %1081 }
 0x5ca   :  { %v1102_v4 = vsel %vm252_vm2, %v774_v55, %v1082_v36 }
 0x5d1   :  { %v1096_v39 = vpop.permute.xlu1 %1095 }
 0x5d2   :  { %v1105_v58 = vsel %vm675_vm6, %v1103_v40, %v1096_v39 }
 0x5d3   :  { %2944 = vmatmul.msk.f32.gmra.mxu1 %vm204_vm1, %v1105_v58 }
 0x5d9   :  { %v1090_v22 = vpop.permute.xlu1 %1089  ;;  %v1098_v42 = vpop.permute.xlu0 %1097 }
 0x5da   :  { %v1104_v43 = vsel %vm289_vm5, %v1102_v4, %v1090_v22 }
 0x5db   :  { %v1106_v44 = vsel %vm675_vm6, %v1104_v43, %v1098_v42 }
 0x5dc   :  { %2945 = vmatmul.msk.f32.gmra.mxu1 %vm204_vm1, %v1106_v44  ;;  %v4094_v44 = vld [vmem:[%s4718_s8] ss:$0 sm:$0xff] }
 0x5ff   :  { %v1144_v49 = vpop.f32.mrf.mxu1 }
 0x600   :  { %v1145_v52 = vadd.f32 %v3146_v33, %v1144_v49 }
 0x602   :  { %v1156_v7 = vadd.f32 %v1145_v52, %v3682_v9 }
 0x604   :  { %v1162_v17 = vsel %vm204_vm1, %v1156_v7, 0.0 }
 0x605   :  { %1163 = vadd.xlane.f32.xlu1 %v1162_v17  ;;  %v3148_v17 = vld [vmem:[#allocation7] ss:$0 sm:$0xff] }
 0x608   :  { %v1147_v53 = vpop.f32.mrf.mxu1 }
 0x609   :  { %v1148_v29 = vadd.f32 %v3146_v33, %v1147_v53 }
 0x60b   :  { %v1157_v6 = vadd.f32 %v1148_v29, %v3687_v10  ;;  %v3228_v10 = vpop.eup %3227 }
 0x60c   :  { %v1175_v55 = vmul.f32 32.0, %v3228_v10  ;;  %vm1179_vm7 = vweird.f32 %v3228_v10 }
 0x60d   :  { %v1165_v48 = vsel %vm204_vm1, %v1157_v6, 0.0 }
 0x60e   :  { %1166 = vadd.xlane.f32.xlu0 %v1165_v48  ;;  %v1176_v0 = vsub.f32 1.0, %v1175_v55  ;;  %v1329_v55 = vld [vmem:[%s4724_s14 + $0x28] sm:$0xff] }
 0x610   :  { %v1177_v1 = vmul.f32 %v3228_v10, %v1176_v0 }
 0x612   :  { %v1178_v3 = vadd.f32 %v3228_v10, %v1177_v1 }
 0x614   :  { %v4059_v35 = vsel %vm1179_vm7, %v3228_v10, %v1178_v3  ;;  %v1330_v10 = vld [vmem:[%s4724_s14 + $0x30] sm:$0xff]  ;;  %v1328_v3 = vld [vmem:[%s4724_s14 + $0x20] sm:$0xff] }
 0x650   :  { %v1150_v50 = vpop.f32.mrf.mxu1 }
 0x651   :  { %v1151_v41 = vadd.f32 %v3146_v33, %v1150_v50 }
 0x653   :  { %v1158_v56 = vadd.f32 %v1151_v41, %v3737_v31 }
 0x655   :  { %v1168_v57 = vsel %vm204_vm1, %v1158_v56, 0.0 }
 0x656   :  { %1169 = vadd.xlane.f32.xlu2 %v1168_v57 }
 0x659   :  { %v1153_v59 = vpop.f32.mrf.mxu1 }
 0x65a   :  { %v1154_v60 = vadd.f32 %v3146_v33, %v1153_v59 }
 0x65c   :  { %v1159_v9 = vadd.f32 %v1154_v60, %v3747_v34 }
 0x65e   :  { %v1171_v63 = vsel %vm204_vm1, %v1159_v9, 0.0 }
 0x65f   :  { %1172 = vadd.xlane.f32.xlu1 %v1171_v63  ;;  %v1331_v63 = vld [vmem:[%s4724_s14 + $0x38] sm:$0xff] }
 0x660   :  { %1357 = vmatpush.msra.mxu2 %v1331_v63 }
 0x662   :  { %1358 = vmatpush.msra.mxu2 %v1330_v10 }
 0x664   :  { %1359 = vmatpush.msra.mxu2 %v1329_v55 }
 0x666   :  { %1360 = vmatpush.msra.mxu2 %v1328_v3 }
 0x678   :  { %v1164_v31 = vpop.xlane.xlu1 %1163 }
 0x679   :  { %v1181_v54 = vmul.f32 %v4059_v35, %v1164_v31 }
 0x67b   :  { %v1185_v5 = vsub.f32 %v1156_v7, %v1181_v54 }
 0x67d   :  { %v1189_v45 = vmul.f32 %v1185_v5, %v1185_v5 }
 0x67f   :  { %v1193_v34 = vsel %vm204_vm1, %v1189_v45, 0.0  ;;  %v1327_v45 = vld [vmem:[%s4724_s14 + $0x18] sm:$0xff] }
 0x680   :  { %1194 = vadd.xlane.f32.xlu0 %v1193_v34  ;;  %1361 = vmatpush.msra.mxu2 %v1327_v45 }
 0x681   :  { %v1167_v37 = vpop.xlane.xlu0 %1166 }
 0x682   :  { %v1182_v8 = vmul.f32 %v4059_v35, %v1167_v37 }
 0x684   :  { %v1186_v11 = vsub.f32 %v1157_v6, %v1182_v8 }
 0x686   :  { %v1190_v27 = vmul.f32 %v1186_v11, %v1186_v11 }
 0x688   :  { %v1196_v12 = vsel %vm204_vm1, %v1190_v27, 0.0 }
 0x689   :  { %1197 = vadd.xlane.f32.xlu2 %v1196_v12 }
 0x6c9   :  { %v1170_v14 = vpop.xlane.xlu2 %1169 }
 0x6ca   :  { %v1183_v47 = vmul.f32 %v4059_v35, %v1170_v14 }
 0x6cc   :  { %v4066_v15 = vsub.f32 %v1158_v56, %v1183_v47 }
 0x6ce   :  { %v1191_v18 = vmul.f32 %v4066_v15, %v4066_v15 }
 0x6d0   :  { %v1199_v19 = vsel %vm204_vm1, %v1191_v18, 0.0 }
 0x6d1   :  { %1200 = vadd.xlane.f32.xlu1 %v1199_v19 }
 0x6d2   :  { %v1173_v51 = vpop.xlane.xlu1 %1172 }
 0x6d3   :  { %v1184_v13 = vmul.f32 %v4059_v35, %v1173_v51 }
 0x6d5   :  { %v4072_v20 = vsub.f32 %v1159_v9, %v1184_v13 }
 0x6d7   :  { %v1192_v21 = vmul.f32 %v4072_v20, %v4072_v20 }
 0x6d9   :  { %v1202_v23 = vsel %vm204_vm1, %v1192_v21, 0.0 }
 0x6da   :  { %1203 = vadd.xlane.f32.xlu0 %v1202_v23 }
 0x6f3   :  { %v1195_v32 = vpop.xlane.xlu0 %1194 }
 0x6f4   :  { %v1205_v2 = vmul.f32 %v1195_v32, %v4059_v35  ;;  %v1325_v32 = vld [vmem:[%s4724_s14 + $0x8] sm:$0xff] }
 0x6f6   :  { %v1209_v16 = vadd.f32 1e-05, %v1205_v2  ;;  %v1324_v2 = vld [vmem:[%s4724_s14] sm:$0xff] }
 0x6f8   :  { %3229 = vrsqrt.f32 %v1209_v16  ;;  %vm1219_vm9 = vweird.f32 %v1209_v16 }
 0x6fc   :  { %v1198_v62 = vpop.xlane.xlu2 %1197 }
 0x6fd   :  { %v1206_v30 = vmul.f32 %v1198_v62, %v4059_v35 }
 0x6fe   :  { %v3230_v36 = vpop.eup %3229 }
 0x6ff   :  { %v1214_v39 = vmul.f32 %v3230_v36, %v1209_v16  ;;  %v1210_v40 = vadd.f32 1e-05, %v1206_v30  ;;  %vm1220_vm8 = vweird.f32 %v3230_v36 }
 0x700   :  { %vm1221_vm10 = vmor %vm1219_vm9, %vm1220_vm8  ;;  %vm1336_vm8 = vcmask 523264  }
 0x701   :  { %v1215_v58 = vmul.f32 %v3230_v36, %v1214_v39  ;;  %3231 = vrsqrt.f32 %v1210_v40  ;;  %vm1229_vm12 = vweird.f32 %v1210_v40 }
 0x703   :  { %v1216_v4 = vmul.f32 0.5, %v1215_v58 }
 0x705   :  { %v1217_v22 = vsub.f32 1.5, %v1216_v4 }
 0x707   :  { %v3232_v42 = vpop.eup %3231  ;;  %v1218_v43 = vmul.f32 %v3230_v36, %v1217_v22 }
 0x708   :  { %v1224_v33 = vmul.f32 %v3232_v42, %v1210_v40  ;;  %vm1230_vm11 = vweird.f32 %v3232_v42 }
 0x709   :  { %v1222_v49 = vsel %vm1221_vm10, %v3230_v36, %v1218_v43  ;;  %vm1231_vm13 = vmor %vm1229_vm12, %vm1230_vm11 }
 0x70a   :  { %v1253_v52 = vmul.f32 %v1222_v49, %v1185_v5  ;;  %v1225_v7 = vmul.f32 %v3232_v42, %v1224_v33  ;;  %v3150_v33 = vld [vmem:[#allocation12] ss:$0 sm:$0xff] }
 0x70c   :  { %v1260_v53 = vmul.f32 %v4094_v44, %v1253_v52  ;;  %v1226_v29 = vmul.f32 0.5, %v1225_v7 }
 0x70e   :  { %v1227_v6 = vsub.f32 1.5, %v1226_v29  ;;  %v4097_v48 = vadd.f32 %v3148_v17, %v1260_v53 }
 0x710   :  { %v1228_v50 = vmul.f32 %v3232_v42, %v1227_v6  ;;  %2946 = vmatmul.msk.f32.vlgmr.msra.gmra.mxu3 %vm204_vm1, %v4097_v48 }
 0x712   :  { %v1232_v41 = vsel %vm1231_vm13, %v3232_v42, %v1228_v50 }
 0x713   :  { %v1254_v56 = vmul.f32 %v1232_v41, %v1186_v11 }
 0x715   :  { %v1261_v57 = vmul.f32 %v4094_v44, %v1254_v56 }
 0x717   :  { %v4102_v59 = vadd.f32 %v3148_v17, %v1261_v57 }
 0x719   :  { %2947 = vmatmul.msk.f32.gmra.mxu3 %vm204_vm1, %v4102_v59 }
 0x744   :  { %v1201_v60 = vpop.xlane.xlu1 %1200 }
 0x745   :  { %v1207_v9 = vmul.f32 %v1201_v60, %v4059_v35 }
 0x747   :  { %v1211_v61 = vadd.f32 1e-05, %v1207_v9 }
 0x749   :  { %3233 = vrsqrt.f32 %v1211_v61  ;;  %vm1239_vm15 = vweird.f32 %v1211_v61 }
 0x74d   :  { %v1204_v0 = vpop.xlane.xlu0 %1203 }
 0x74e   :  { %v1208_v1 = vmul.f32 %v1204_v0, %v4059_v35 }
 0x74f   :  { %v3234_v31 = vpop.eup %3233 }
 0x750   :  { %v1234_v54 = vmul.f32 %v3234_v31, %v1211_v61  ;;  %v1212_v5 = vadd.f32 1e-05, %v1208_v1  ;;  %vm1240_vm14 = vweird.f32 %v3234_v31 }
 0x751   :  { %vm1241_vm0 = vmor %vm1239_vm15, %vm1240_vm14 }
 0x752   :  { %v1235_v34 = vmul.f32 %v3234_v31, %v1234_v54  ;;  %3235 = vrsqrt.f32 %v1212_v5  ;;  %vm1249_vm4 = vweird.f32 %v1212_v5 }
 0x754   :  { %v1236_v37 = vmul.f32 0.5, %v1235_v34 }
 0x756   :  { %v1237_v8 = vsub.f32 1.5, %v1236_v37 }
 0x758   :  { %v3236_v11 = vpop.eup %3235  ;;  %v1238_v27 = vmul.f32 %v3234_v31, %v1237_v8 }
 0x759   :  { %v1244_v12 = vmul.f32 %v3236_v11, %v1212_v5  ;;  %vm1250_vm3 = vweird.f32 %v3236_v11 }
 0x75a   :  { %v1242_v14 = vsel %vm1241_vm0, %v3234_v31, %v1238_v27  ;;  %vm1251_vm7 = vmor %vm1249_vm4, %vm1250_vm3 }
 0x75b   :  { %v1245_v47 = vmul.f32 %v3236_v11, %v1244_v12  ;;  %v1255_v18 = vmul.f32 %v1242_v14, %v4066_v15  ;;  %v1326_v15 = vld [vmem:[%s4724_s14 + $0x10] sm:$0xff] }
 0x75c   :  { %1362 = vmatpush.msra.mxu2 %v1326_v15 }
 0x75d   :  { %v1246_v19 = vmul.f32 0.5, %v1245_v47  ;;  %v1262_v51 = vmul.f32 %v4094_v44, %v1255_v18 }
 0x75e   :  { %1363 = vmatpush.msra.mxu2 %v1325_v32 }
 0x75f   :  { %v1247_v13 = vsub.f32 1.5, %v1246_v19  ;;  %v1269_v21 = vadd.f32 %v3148_v17, %v1262_v51  ;;  %v2957_v51 = vld [vmem:[%s4714_s4 + $0x38] sm:$0xff] }
 0x760   :  { %1364 = vmatpush.msra.mxu2 %v1324_v2  ;;  %1520 = vmatpush.msrb.mxu0 %v2957_v51 }
 0x761   :  { %v1248_v23 = vmul.f32 %v3236_v11, %v1247_v13  ;;  %2948 = vmatmul.msk.f32.gmra.mxu3 %vm204_vm1, %v1269_v21  ;;  %v2956_v13 = vld [vmem:[%s4714_s4 + $0x30] sm:$0xff] }
 0x762   :  { %1521 = vmatpush.msrb.mxu0 %v2956_v13 }
 0x763   :  { %v1252_v24 = vsel %vm1251_vm7, %v3236_v11, %v1248_v23  ;;  %v2954_v23 = vld [vmem:[%s4714_s4 + $0x20] sm:$0xff] }
 0x764   :  { %v1256_v25 = vmul.f32 %v1252_v24, %v4072_v20  ;;  %v3149_v20 = vld [vmem:[#allocation10] ss:$0 sm:$0xff] }
 0x766   :  { %v1263_v26 = vmul.f32 %v4094_v44, %v1256_v25 }
 0x768   :  { %v1270_v28 = vadd.f32 %v3148_v17, %v1263_v26 }
 0x76a   :  { %2949 = vmatmul.msk.f32.gmra.mxu3 %vm204_vm1, %v1270_v28 }
 0x793   :  { %v1308_v16 = vpop.f32.mrf.mxu3 }
 0x794   :  { %v1309_v62 = vadd.f32 %v3149_v20, %v1308_v16 }
 0x796   :  { %v1320_v30 = vmax.f32 %v1309_v62, 0.0 }
 0x798   :  { %2950 = vmatmul.msk.f32.vlgmr.msra.gmra.mxu2 %vm1336_vm8, %v1320_v30 }
 0x79c   :  { %v1311_v36 = vpop.f32.mrf.mxu3 }
 0x79d   :  { %v1312_v39 = vadd.f32 %v3149_v20, %v1311_v36 }
 0x79f   :  { %v1321_v40 = vmax.f32 %v1312_v39, 0.0 }
 0x7a1   :  { %2951 = vmatmul.msk.f32.gmra.mxu2 %vm1336_vm8, %v1321_v40  ;;  %v3151_v40 = vld [vmem:[%s4720_s10] ss:$0 sm:$0xff] }
 0x7e4   :  { %v1314_v58 = vpop.f32.mrf.mxu3 }
 0x7e5   :  { %v1315_v4 = vadd.f32 %v3149_v20, %v1314_v58 }
 0x7e7   :  { %v1322_v22 = vmax.f32 %v1315_v4, 0.0 }
 0x7e9   :  { %2952 = vmatmul.msk.f32.gmra.mxu2 %vm1336_vm8, %v1322_v22 }
 0x7ed   :  { %v1317_v42 = vpop.f32.mrf.mxu3 }
 0x7ee   :  { %v1318_v43 = vadd.f32 %v3149_v20, %v1317_v42 }
 0x7f0   :  { %v1323_v44 = vmax.f32 %v1318_v43, 0.0  ;;  %v3152_v43 = vld [vmem:[#allocation9] ss:$0 sm:$0xff] }
 0x7f2   :  { %2953 = vmatmul.msk.f32.gmra.mxu2 %vm1336_vm8, %v1323_v44 }
 0x81b   :  { %v1366_v49 = vpop.f32.mrf.mxu2 }
 0x81c   :  { %v1367_v52 = vadd.f32 %v3150_v33, %v1366_v49 }
 0x81e   :  { %v1378_v7 = vadd.f32 %v1367_v52, %v4097_v48 }
 0x820   :  { %v1384_v17 = vsel %vm204_vm1, %v1378_v7, 0.0 }
 0x821   :  { %1385 = vadd.xlane.f32.xlu2 %v1384_v17 }
 0x824   :  { %v1369_v53 = vpop.f32.mrf.mxu2 }
 0x825   :  { %v1370_v29 = vadd.f32 %v3150_v33, %v1369_v53 }
 0x827   :  { %v1379_v6 = vadd.f32 %v1370_v29, %v4102_v59 }
 0x829   :  { %v1387_v50 = vsel %vm204_vm1, %v1379_v6, 0.0 }
 0x82a   :  { %1388 = vadd.xlane.f32.xlu1 %v1387_v50 }
 0x86c   :  { %v1372_v41 = vpop.f32.mrf.mxu2 }
 0x86d   :  { %v1373_v56 = vadd.f32 %v3150_v33, %v1372_v41 }
 0x86f   :  { %v1380_v57 = vadd.f32 %v1373_v56, %v1269_v21  ;;  %v2955_v21 = vld [vmem:[%s4714_s4 + $0x28] sm:$0xff] }
 0x870   :  { %1522 = vmatpush.msrb.mxu0 %v2955_v21 }
 0x871   :  { %v1390_v60 = vsel %vm204_vm1, %v1380_v57, 0.0 }
 0x872   :  { %1391 = vadd.xlane.f32.xlu0 %v1390_v60  ;;  %1523 = vmatpush.msrb.mxu0 %v2954_v23 }
 0x875   :  { %v1375_v9 = vpop.f32.mrf.mxu2 }
 0x876   :  { %v1376_v61 = vadd.f32 %v3150_v33, %v1375_v9 }
 0x878   :  { %v1381_v63 = vadd.f32 %v1376_v61, %v1270_v28 }
 0x87a   :  { %v1393_v48 = vsel %vm204_vm1, %v1381_v63, 0.0 }
 0x87b   :  { %1394 = vadd.xlane.f32.xlu2 %v1393_v48 }
 0x894   :  { %v1386_v10 = vpop.xlane.xlu2 %1385 }
 0x895   :  { %v1396_v55 = vmul.f32 %v1386_v10, %v4059_v35 }
 0x897   :  { %v1400_v0 = vsub.f32 %v1378_v7, %v1396_v55 }
 0x899   :  { %v1404_v59 = vmul.f32 %v1400_v0, %v1400_v0 }
 0x89b   :  { %v1408_v1 = vsel %vm204_vm1, %v1404_v59, 0.0 }
 0x89c   :  { %1409 = vadd.xlane.f32.xlu1 %v1408_v1 }
 0x89d   :  { %v1389_v3 = vpop.xlane.xlu1 %1388 }
 0x89e   :  { %v1397_v31 = vmul.f32 %v1389_v3, %v4059_v35 }
 0x8a0   :  { %v1401_v54 = vsub.f32 %v1379_v6, %v1397_v31 }
 0x8a2   :  { %v1405_v5 = vmul.f32 %v1401_v54, %v1401_v54 }
 0x8a4   :  { %v1411_v45 = vsel %vm204_vm1, %v1405_v5, 0.0 }
 0x8a5   :  { %1412 = vadd.xlane.f32.xlu0 %v1411_v45 }
 0x8e5   :  { %v1392_v34 = vpop.xlane.xlu0 %1391 }
 0x8e6   :  { %v1398_v37 = vmul.f32 %v1392_v34, %v4059_v35 }
 0x8e8   :  { %v4153_v8 = vsub.f32 %v1380_v57, %v1398_v37 }
 0x8ea   :  { %v1406_v11 = vmul.f32 %v4153_v8, %v4153_v8 }
 0x8ec   :  { %v1414_v27 = vsel %vm204_vm1, %v1406_v11, 0.0 }
 0x8ed   :  { %1415 = vadd.xlane.f32.xlu2 %v1414_v27 }
 0x8ee   :  { %v1395_v12 = vpop.xlane.xlu2 %1394 }
 0x8ef   :  { %v1399_v14 = vmul.f32 %v1395_v12, %v4059_v35 }
 0x8f1   :  { %v4159_v47 = vsub.f32 %v1381_v63, %v1399_v14 }
 0x8f3   :  { %v1407_v18 = vmul.f32 %v4159_v47, %v4159_v47 }
 0x8f5   :  { %v1417_v19 = vsel %vm204_vm1, %v1407_v18, 0.0 }
 0x8f6   :  { %1418 = vadd.xlane.f32.xlu1 %v1417_v19 }
 0x90f   :  { %v1410_v24 = vpop.xlane.xlu1 %1409 }
 0x910   :  { %v1420_v25 = vmul.f32 %v1410_v24, %v4059_v35 }
 0x912   :  { %v1424_v26 = vadd.f32 1e-05, %v1420_v25 }
 0x914   :  { %3237 = vrsqrt.f32 %v1424_v26  ;;  %vm1434_vm10 = vweird.f32 %v1424_v26 }
 0x918   :  { %v1413_v28 = vpop.xlane.xlu0 %1412 }
 0x919   :  { %v1421_v15 = vmul.f32 %v1413_v28, %v4059_v35 }
 0x91a   :  { %v3238_v32 = vpop.eup %3237 }
 0x91b   :  { %v1429_v2 = vmul.f32 %v3238_v32, %v1424_v26  ;;  %v1425_v20 = vadd.f32 1e-05, %v1421_v15  ;;  %vm1435_vm9 = vweird.f32 %v3238_v32 }
 0x91c   :  { %vm1436_vm11 = vmor %vm1434_vm10, %vm1435_vm9 }
 0x91d   :  { %v1430_v16 = vmul.f32 %v3238_v32, %v1429_v2  ;;  %3239 = vrsqrt.f32 %v1425_v20  ;;  %vm1444_vm13 = vweird.f32 %v1425_v20 }
 0x91f   :  { %v1431_v62 = vmul.f32 0.5, %v1430_v16 }
 0x921   :  { %v1432_v30 = vsub.f32 1.5, %v1431_v62 }
 0x923   :  { %v3240_v36 = vpop.eup %3239  ;;  %v1433_v39 = vmul.f32 %v3238_v32, %v1432_v30 }
 0x924   :  { %v1439_v58 = vmul.f32 %v3240_v36, %v1425_v20  ;;  %vm1445_vm12 = vweird.f32 %v3240_v36 }
 0x925   :  { %v1437_v4 = vsel %vm1436_vm11, %v3238_v32, %v1433_v39  ;;  %vm1446_vm14 = vmor %vm1444_vm13, %vm1445_vm12 }
 0x926   :  { %v1468_v22 = vmul.f32 %v1437_v4, %v1400_v0  ;;  %v1440_v42 = vmul.f32 %v3240_v36, %v1439_v58 }
 0x928   :  { %v1475_v44 = vmul.f32 %v3151_v40, %v1468_v22  ;;  %v1441_v33 = vmul.f32 0.5, %v1440_v42 }
 0x92a   :  { %v1442_v49 = vsub.f32 1.5, %v1441_v33  ;;  %v4181_v52 = vadd.f32 %v3152_v43, %v1475_v44 }
 0x92c   :  { %v1443_v7 = vmul.f32 %v3240_v36, %v1442_v49  ;;  %2959 = vmatmul.msk.f32.vlgmr.msrb.gmra.mxu0 %vm204_vm1, %v4181_v52 }
 0x92e   :  { %v1447_v17 = vsel %vm1446_vm14, %v3240_v36, %v1443_v7 }
 0x92f   :  { %v1469_v53 = vmul.f32 %v1447_v17, %v1401_v54 }
 0x931   :  { %v1476_v29 = vmul.f32 %v3151_v40, %v1469_v53 }
 0x933   :  { %v4185_v6 = vadd.f32 %v3152_v43, %v1476_v29 }
 0x935   :  { %2960 = vmatmul.msk.f32.gmra.mxu0 %vm204_vm1, %v4185_v6 }
 0x960   :  { %v1416_v50 = vpop.xlane.xlu2 %1415 }
 0x961   :  { %v1422_v41 = vmul.f32 %v1416_v50, %v4059_v35 }
 0x963   :  { %v1426_v56 = vadd.f32 1e-05, %v1422_v41 }
 0x965   :  { %3241 = vrsqrt.f32 %v1426_v56  ;;  %vm1454_vm0 = vweird.f32 %v1426_v56 }
 0x969   :  { %v1419_v57 = vpop.xlane.xlu1 %1418 }
 0x96a   :  { %v1423_v60 = vmul.f32 %v1419_v57, %v4059_v35 }
 0x96b   :  { %v3242_v9 = vpop.eup %3241 }
 0x96c   :  { %v1449_v61 = vmul.f32 %v3242_v9, %v1426_v56  ;;  %v1427_v63 = vadd.f32 1e-05, %v1423_v60  ;;  %vm1455_vm15 = vweird.f32 %v3242_v9 }
 0x96d   :  { %vm1456_vm3 = vmor %vm1454_vm0, %vm1455_vm15 }
 0x96e   :  { %v1450_v48 = vmul.f32 %v3242_v9, %v1449_v61  ;;  %3243 = vrsqrt.f32 %v1427_v63  ;;  %vm1464_vm7 = vweird.f32 %v1427_v63 }
 0x970   :  { %v1451_v10 = vmul.f32 0.5, %v1450_v48 }
 0x972   :  { %v1452_v55 = vsub.f32 1.5, %v1451_v10 }
 0x974   :  { %v3244_v0 = vpop.eup %3243  ;;  %v1453_v59 = vmul.f32 %v3242_v9, %v1452_v55 }
 0x975   :  { %v1459_v1 = vmul.f32 %v3244_v0, %v1427_v63  ;;  %vm1465_vm4 = vweird.f32 %v3244_v0 }
 0x976   :  { %v1457_v3 = vsel %vm1456_vm3, %v3242_v9, %v1453_v59  ;;  %vm1466_vm9 = vmor %vm1464_vm7, %vm1465_vm4 }
 0x977   :  { %v1460_v31 = vmul.f32 %v3244_v0, %v1459_v1  ;;  %v1470_v54 = vmul.f32 %v1457_v3, %v4153_v8  ;;  %v3153_v8 = vld [vmem:[%s4715_s5 + $0x1] ss:$0 sm:$0xff]  ;;  %s4740_s5 = smov 24  }
 0x979   :  { %v1461_v5 = vmul.f32 0.5, %v1460_v31  ;;  %v1477_v45 = vmul.f32 %v3151_v40, %v1470_v54 }
 0x97b   :  { %v1462_v34 = vsub.f32 1.5, %v1461_v5  ;;  %v4192_v37 = vadd.f32 %v3152_v43, %v1477_v45 }
 0x97d   :  { %v1463_v11 = vmul.f32 %v3244_v0, %v1462_v34  ;;  %2961 = vmatmul.msk.f32.gmra.mxu0 %vm204_vm1, %v4192_v37 }
 0x97f   :  { %v1467_v27 = vsel %vm1466_vm9, %v3244_v0, %v1463_v11 }
 0x980   :  { %v1471_v12 = vmul.f32 %v1467_v27, %v4159_v47 }
 0x982   :  { %v1478_v14 = vmul.f32 %v3151_v40, %v1471_v12 }
 0x984   :  { %v4197_v18 = vadd.f32 %v3152_v43, %v1478_v14 }
 0x986   :  { %2962 = vmatmul.msk.f32.gmra.mxu0 %vm204_vm1, %v4197_v18 }
 0x9a9   :  { %v1525_v19 = vpop.f32.mrf.mxu0 }
 0x9aa   :  { %v1526_v51 = vadd.f32 %v3153_v8, %v1525_v19 }
 0x9ac   :  { %1639 = vrot.lane.b32.xlu0 %v1526_v51, %s3522_s29  ;;  %1539 = vrot.lane.b32.xlu1 %v1526_v51, %s3521_s11 }
 0x9ad   :  { %1635 = vrot.lane.b32.xlu2 %v1526_v51, %s3520_s25 }
 0x9b2   :  { %v1528_v13 = vpop.f32.mrf.mxu0 }
 0x9b3   :  { %v1529_v47 = vadd.f32 %v3153_v8, %v1528_v13 }
 0x9b4   :  { %1839 = vrot.lane.b32.xlu1 %v1526_v51, %s3524_s15 }
 0x9b5   :  { %1641 = vrot.lane.b32.xlu2 %v1529_v47, %s3522_s29  ;;  %1541 = vrot.lane.b32.xlu0 %v1529_v47, %s3521_s11  ;;  %v4243_v32 = vpack.i.bf16 %v1526_v51, %v1529_v47 }
 0x9bc   :  { %1741 = vrot.lane.b32.xlu1 %v1529_v47, %s3526_s21 }
 0x9bd   :  { %1735 = vrot.lane.b32.xlu2 %v1526_v51, %s3527_s23  ;;  %1739 = vrot.lane.b32.xlu0 %v1526_v51, %s3526_s21 }
 0x9c4   :  { %1737 = vrot.lane.b32.xlu1 %v1529_v47, %s3527_s23 }
 0x9c5   :  { %1841 = vrot.lane.b32.xlu2 %v1529_v47, %s3524_s15  ;;  %1637 = vrot.lane.b32.xlu0 %v1529_v47, %s3520_s25 }
 0x9cd   :  { %1837 = vrot.lane.b32.xlu2 %v1529_v47, %s3525_s20  ;;  %1835 = vrot.lane.b32.xlu0 %v1526_v51, %s3525_s20 }
 0x9fa   :  { %v1531_v21 = vpop.f32.mrf.mxu0 }
 0x9fb   :  { %v4218_v23 = vadd.f32 %v3153_v8, %v1531_v21 }
 0x9fd   :  { %1967 = vrot.lane.b32.xlu2 %v4218_v23, %s3521_s11 }
 0xa03   :  { %v1534_v24 = vpop.f32.mrf.mxu0 }
 0xa04   :  { %v4222_v25 = vadd.f32 %v3153_v8, %v1534_v24 }
 0xa05   :  { %2167 = vrot.lane.b32.xlu2 %v4218_v23, %s3526_s21 }
 0xa06   :  { %2069 = vrot.lane.b32.xlu1 %v4222_v25, %s3522_s29  ;;  %1969 = vrot.lane.b32.xlu0 %v4222_v25, %s3521_s11 }
 0xa07   :  { %v1636_v26 = vpop.permute.xlu2 %1635 }
 0xa0d   :  { %2065 = vrot.lane.b32.xlu2 %v4222_v25, %s3520_s25 }
 0xa0e   :  { %2063 = vrot.lane.b32.xlu1 %v4218_v23, %s3520_s25  ;;  %2067 = vrot.lane.b32.xlu0 %v4218_v23, %s3522_s29 }
 0xa0f   :  { %v1642_v28 = vpop.permute.xlu2 %1641 }
 0xa10   :  { %2969 = vmatpush.xpose.msk.msrb.mxu2 %vm252_vm2, %v1642_v28 }
 0xa15   :  { %2263 = vrot.lane.b32.xlu2 %v4218_v23, %s3525_s20 }
 0xa16   :  { %2269 = vrot.lane.b32.xlu1 %v4222_v25, %s3524_s15  ;;  %2169 = vrot.lane.b32.xlu0 %v4222_v25, %s3526_s21 }
 0xa17   :  { %v1736_v15 = vpop.permute.xlu2 %1735 }
 0xa1d   :  { %3111 = vrot.lane.b32.xlu2 %v4243_v32, %s3523_s1 }
 0xa1e   :  { %v1540_v2 = vpop.permute.xlu1 %1539  ;;  %2163 = vrot.lane.b32.xlu1 %v4218_v23, %s3527_s23  ;;  %2267 = vrot.lane.b32.xlu0 %v4218_v23, %s3524_s15  ;;  %v1640_v20 = vpop.permute.xlu0 %1639 }
 0xa1f   :  { %v1842_v16 = vpop.permute.xlu2 %1841  ;;  %2970 = vmatpush.xpose.msk.msrb.mxu2 %vm252_vm2, %v1640_v20 }
 0xa22   :  { %2971 = vmatmul.msk.f32.vlgmr.msrb.gmra.mxu2 %vm252_vm2, %v1636_v26  ;;  %v4316_v26 = vpack.i.bf16 %v4218_v23, %v4222_v25 }
 0xa23   :  { %2981 = vmatpush.xpose.msk.msra.mxu2 %vm252_vm2, %v1842_v16 }
 0xa26   :  { %v1840_v62 = vpop.permute.xlu1 %1839  ;;  %2265 = vrot.lane.b32.xlu1 %v4222_v25, %s3525_s20  ;;  %2165 = vrot.lane.b32.xlu0 %v4222_v25, %s3527_s23 }
 0xa27   :  { %2982 = vmatpush.xpose.msk.msra.mxu2 %vm252_vm2, %v1840_v62  ;;  %v1542_v30 = vpop.permute.xlu0 %1541  ;;  %v1838_v22 = vpop.permute.xlu2 %1837 }
 0xa28   :  { %2963 = vmatpush.xpose.msk.msrb.mxu1 %vm252_vm2, %v1542_v30 }
 0xa2c   :  { %2964 = vmatpush.xpose.msk.msrb.mxu1 %vm252_vm2, %v1540_v2 }
 0xa2e   :  { %3116 = vrot.lane.b32.xlu1 %v4243_v32, %s3528_s26  ;;  %v1742_v36 = vpop.permute.xlu1 %1741  ;;  %3106 = vrot.lane.b32.xlu0 %v4243_v32, %s3529_s24 }
 0xa2f   :  { %2965 = vmatmul.msk.f32.vlgmr.msrb.gmra.mxu1 %vm252_vm2, %v1526_v51  ;;  %v1740_v39 = vpop.permute.xlu0 %1739 }
 0xa30   :  { %2975 = vmatpush.xpose.msk.msra.mxu1 %vm252_vm2, %v1742_v36 }
 0xa34   :  { %2976 = vmatpush.xpose.msk.msra.mxu1 %vm252_vm2, %v1740_v39 }
 0xa36   :  { %v1738_v4 = vpop.permute.xlu1 %1737 }
 0xa37   :  { %2966 = vmatmul.msk.f32.gmra.mxu1 %vm252_vm2, %v1529_v47  ;;  %v1638_v40 = vpop.permute.xlu0 %1637 }
 0xa38   :  { %2972 = vmatmul.msk.f32.gmra.mxu2 %vm252_vm2, %v1638_v40 }
 0xa3f   :  { %2977 = vmatmul.msk.f32.vlgmr.msra.gmra.mxu1 %vm252_vm2, %v1736_v15  ;;  %v1836_v58 = vpop.permute.xlu0 %1835 }
 0xa40   :  { %2983 = vmatmul.msk.f32.vlgmr.msra.gmra.mxu2 %vm252_vm2, %v1836_v58 }
 0xa47   :  { %2978 = vmatmul.msk.f32.gmra.mxu1 %vm252_vm2, %v1738_v4 }
 0xa48   :  { %2984 = vmatmul.msk.f32.gmra.mxu2 %vm252_vm2, %v1838_v22 }
 0xa57   :  { %v1968_v42 = vpop.permute.xlu2 %1967 }
 0xa5f   :  { %v2168_v43 = vpop.permute.xlu2 %2167 }
 0xa67   :  { %v2066_v44 = vpop.permute.xlu2 %2065 }
 0xa6f   :  { %v2264_v33 = vpop.permute.xlu2 %2263 }
 0xa77   :  { %v3112_v49 = vpop.permute.xlu2 %3111 }
 0xa78   :  { %v3113_v7 = vunpack.i.l.bf16 %v3112_v49  ;;  %v2070_v17 = vpop.permute.xlu1 %2069  ;;  %v1970_v53 = vpop.permute.xlu0 %1969  ;;  %v3114_v29 = vunpack.i.h.bf16 %v3112_v49 }
 0xa79   :  { %2987 = vmatpush.xpose.msk.msrb.mxu1 %vm252_vm2, %v1970_v53  ;;  %2993 = vmatpush.xpose.msk.msrb.mxu2 %vm252_vm2, %v2070_v17 }
 0xa7a   :  { %1726 = vmatpush.msra.mxu0 %v3113_v7 }
 0xa7c   :  { %1727 = vmatpush.msra.mxu0 %v3114_v29 }
 0xa7d   :  { %2988 = vmatpush.xpose.msk.msrb.mxu1 %vm252_vm2, %v1968_v42 }
 0xa80   :  { %v2064_v50 = vpop.permute.xlu1 %2063  ;;  %2989 = vmatmul.msk.f32.vlgmr.msrb.gmra.mxu1 %vm252_vm2, %v4218_v23  ;;  %v2068_v41 = vpop.permute.xlu0 %2067 }
 0xa81   :  { %2994 = vmatpush.xpose.msk.msrb.mxu2 %vm252_vm2, %v2068_v41 }
 0xa84   :  { %2995 = vmatmul.msk.f32.vlgmr.msrb.gmra.mxu2 %vm252_vm2, %v2064_v50 }
 0xa88   :  { %v2270_v56 = vpop.permute.xlu1 %2269  ;;  %2990 = vmatmul.msk.f32.gmra.mxu1 %vm252_vm2, %v4222_v25  ;;  %v2170_v57 = vpop.permute.xlu0 %2169 }
 0xa89   :  { %2999 = vmatpush.xpose.msk.msra.mxu1 %vm252_vm2, %v2170_v57  ;;  %3005 = vmatpush.xpose.msk.msra.mxu2 %vm252_vm2, %v2270_v56 }
 0xa8c   :  { %2996 = vmatmul.msk.f32.gmra.mxu2 %vm252_vm2, %v2066_v44 }
 0xa8d   :  { %3000 = vmatpush.xpose.msk.msra.mxu1 %vm252_vm2, %v2168_v43 }
 0xa90   :  { %v2164_v60 = vpop.permute.xlu1 %2163  ;;  %v2268_v9 = vpop.permute.xlu0 %2267 }
 0xa91   :  { %3001 = vmatmul.msk.f32.vlgmr.msra.gmra.mxu1 %vm252_vm2, %v2164_v60  ;;  %3006 = vmatpush.xpose.msk.msra.mxu2 %vm252_vm2, %v2268_v9 }
 0xa94   :  { %3007 = vmatmul.msk.f32.vlgmr.msra.gmra.mxu2 %vm252_vm2, %v2264_v33 }
 0xa98   :  { %v2266_v61 = vpop.permute.xlu1 %2265  ;;  %v2166_v63 = vpop.permute.xlu0 %2165 }
 0xa99   :  { %3002 = vmatmul.msk.f32.gmra.mxu1 %vm252_vm2, %v2166_v63 }
 0xa9c   :  { %3008 = vmatmul.msk.f32.gmra.mxu2 %vm252_vm2, %v2266_v61 }
 0xaa0   :  { %v3107_v48 = vpop.permute.xlu0 %3106  ;;  %v3117_v10 = vpop.permute.xlu1 %3116 }
 0xaa1   :  { %v3108_v55 = vunpack.i.l.bf16 %v3107_v48  ;;  %v3109_v0 = vunpack.i.h.bf16 %v3107_v48  ;;  %v3118_v59 = vunpack.i.l.bf16 %v3117_v10  ;;  %v3119_v3 = vunpack.i.h.bf16 %v3117_v10 }
 0xaa3   :  { %1626 = vmatpush.msrb.mxu3 %v3108_v55 }
 0xaa5   :  { %1627 = vmatpush.msrb.mxu3 %v3109_v0  ;;  %v1668_v1 = vpop.f32.mrf.mxu2 }
 0xaa6   :  { %v1674_v31 = vmul.f32 0.35355338, %v1668_v1 }
 0xaa7   :  { %1826 = vmatpush.msra.mxu3 %v3118_v59 }
 0xaa8   :  { %v4293_v54 = vadd.f32 %v1674_v31, %v3757_v38 }
 0xaa9   :  { %1827 = vmatpush.msra.mxu3 %v3119_v3 }
 0xaaa   :  { %v1678_v5 = vsel %vm289_vm5, %v4293_v54, -inf }
 0xaab   :  { %1679 = vmax.xlane.f32.xlu0 %v1678_v5 }
 0xaac   :  { %v1568_v45 = vpop.f32.mrf.mxu1 }
 0xaad   :  { %v1574_v34 = vmul.f32 0.35355338, %v1568_v45 }
 0xaaf   :  { %v4298_v11 = vadd.f32 %v1574_v34, %v3757_v38 }
 0xab1   :  { %v1578_v27 = vsel %vm289_vm5, %v4298_v11, -inf }
 0xab2   :  { %1579 = vmax.xlane.f32.xlu2 %v1578_v27 }
 0xab4   :  { %v1571_v12 = vpop.f32.mrf.mxu1 }
 0xab5   :  { %v1575_v14 = vmul.f32 0.35355338, %v1571_v12 }
 0xab7   :  { %v4303_v8 = vadd.f32 %v1575_v14, %v3757_v38 }
 0xab9   :  { %v1581_v19 = vsel %vm289_vm5, %v4303_v8, -inf }
 0xaba   :  { %1582 = vmax.xlane.f32.xlu1 %v1581_v19 }
 0xabb   :  { %v1671_v51 = vpop.f32.mrf.mxu2 }
 0xabc   :  { %v1768_v28 = vpop.f32.mrf.mxu1  ;;  %v1675_v62 = vmul.f32 0.35355338, %v1671_v51 }
 0xabd   :  { %v1774_v15 = vmul.f32 0.35355338, %v1768_v28 }
 0xabe   :  { %v4329_v23 = vadd.f32 %v1675_v62, %v3757_v38 }
 0xabf   :  { %3121 = vrot.lane.b32.xlu0 %v4243_v32, %s3530_s30  ;;  %v4321_v32 = vadd.f32 %v1774_v15, %v3757_v38 }
 0xac0   :  { %v1681_v40 = vsel %vm289_vm5, %v4329_v23, -inf }
 0xac1   :  { %v1778_v16 = vsel %vm289_vm5, %v4321_v32, -inf }
 0xac3   :  { %v1868_v13 = vpop.f32.mrf.mxu2 }
 0xac4   :  { %v1874_v47 = vmul.f32 0.35355338, %v1868_v13  ;;  %v1771_v25 = vpop.f32.mrf.mxu1 }
 0xac5   :  { %v1775_v39 = vmul.f32 0.35355338, %v1771_v25 }
 0xac6   :  { %v4310_v21 = vadd.f32 %v1874_v47, %v3757_v38 }
 0xac7   :  { %v4336_v58 = vadd.f32 %v1775_v39, %v3757_v38 }
 0xac8   :  { %v1878_v24 = vsel %vm289_vm5, %v4310_v21, -inf }
 0xac9   :  { %1879 = vmax.xlane.f32.xlu1 %v1878_v24  ;;  %v1781_v4 = vsel %vm289_vm5, %v4336_v58, -inf }
 0xaca   :  { %3126 = vrot.lane.b32.xlu2 %v4316_v26, %s3529_s24 }
 0xacb   :  { %v1871_v2 = vpop.f32.mrf.mxu2 }
 0xacc   :  { %v1875_v20 = vmul.f32 0.35355338, %v1871_v2 }
 0xace   :  { %v4326_v30 = vadd.f32 %v1875_v20, %v3757_v38 }
 0xad0   :  { %v1881_v36 = vsel %vm289_vm5, %v4326_v30, -inf }
 0xae9   :  { %1779 = vmax.xlane.f32.xlu0 %v1778_v16 }
 0xaf1   :  { %1882 = vmax.xlane.f32.xlu0 %v1881_v36 }
 0xaf3   :  { %1682 = vmax.xlane.f32.xlu2 %v1681_v40 }
 0xafb   :  { %1782 = vmax.xlane.f32.xlu2 %v1781_v4 }
 0xafd   :  { %v1996_v22 = vpop.f32.mrf.mxu1 }
 0xafe   :  { %v2002_v42 = vmul.f32 0.35355338, %v1996_v22 }
 0xb00   :  { %v4341_v43 = vadd.f32 %v2002_v42, %v3844_v46 }
 0xb02   :  { %v2006_v44 = vsel %vm289_vm5, %v4341_v43, -inf }
 0xb03   :  { %2007 = vmax.xlane.f32.xlu1 %v2006_v44 }
 0xb05   :  { %v1999_v33 = vpop.f32.mrf.mxu1 }
 0xb06   :  { %v2003_v49 = vmul.f32 0.35355338, %v1999_v33 }
 0xb07   :  { %v2096_v7 = vpop.f32.mrf.mxu2 }
 0xb08   :  { %v4346_v17 = vadd.f32 %v2003_v49, %v3844_v46  ;;  %v2102_v38 = vmul.f32 0.35355338, %v2096_v7 }
 0xb0a   :  { %v2009_v53 = vsel %vm289_vm5, %v4346_v17, -inf  ;;  %v4351_v29 = vadd.f32 %v2102_v38, %v3844_v46 }
 0xb0b   :  { %2010 = vmax.xlane.f32.xlu0 %v2009_v53 }
 0xb0c   :  { %v2106_v50 = vsel %vm289_vm5, %v4351_v29, -inf }
 0xb0d   :  { %2107 = vmax.xlane.f32.xlu2 %v2106_v50 }
 0xb0e   :  { %v2196_v41 = vpop.f32.mrf.mxu1 }
 0xb0f   :  { %v2202_v56 = vmul.f32 0.35355338, %v2196_v41  ;;  %v2099_v57 = vpop.f32.mrf.mxu2 }
 0xb10   :  { %v2103_v60 = vmul.f32 0.35355338, %v2099_v57 }
 0xb11   :  { %v4356_v9 = vadd.f32 %v2202_v56, %v3844_v46 }
 0xb12   :  { %v4359_v61 = vadd.f32 %v2103_v60, %v3844_v46 }
 0xb13   :  { %v2206_v63 = vsel %vm289_vm5, %v4356_v9, -inf }
 0xb14   :  { %v2109_v48 = vsel %vm289_vm5, %v4359_v61, -inf }
 0xb15   :  { %2110 = vmax.xlane.f32.xlu1 %v2109_v48  ;;  %2207 = vmax.xlane.f32.xlu2 %v2206_v63 }
 0xb16   :  { %v2199_v10 = vpop.f32.mrf.mxu1 }
 0xb17   :  { %v2203_v55 = vmul.f32 0.35355338, %v2199_v10  ;;  %v2296_v0 = vpop.f32.mrf.mxu2 }
 0xb18   :  { %v2302_v59 = vmul.f32 0.35355338, %v2296_v0 }
 0xb19   :  { %v4366_v1 = vadd.f32 %v2203_v55, %v3844_v46 }
 0xb1a   :  { %v4369_v3 = vadd.f32 %v2302_v59, %v3844_v46 }
 0xb1b   :  { %v2209_v31 = vsel %vm289_vm5, %v4366_v1, -inf }
 0xb1c   :  { %v2306_v5 = vsel %vm289_vm5, %v4369_v3, -inf }
 0xb1d   :  { %2307 = vmax.xlane.f32.xlu1 %v2306_v5  ;;  %2210 = vmax.xlane.f32.xlu2 %v2209_v31 }
 0xb1e   :  { %v1680_v45 = vpop.xlane.xlu0 %1679 }
 0xb1f   :  { %v1684_v34 = vsub.f32 %v4293_v54, %v1680_v45  ;;  %v2299_v27 = vpop.f32.mrf.mxu2 }
 0xb20   :  { %v2303_v12 = vmul.f32 0.35355338, %v2299_v27 }
 0xb21   :  { %v1686_v14 = vmul.f32 1.442695, %v1684_v34 }
 0xb22   :  { %v4377_v19 = vadd.f32 %v2303_v12, %v3844_v46 }
 0xb23   :  { %3245 = vpow2.f32 %v1686_v14 }
 0xb24   :  { %v2309_v51 = vsel %vm289_vm5, %v4377_v19, -inf }
 0xb25   :  { %v1580_v13 = vpop.xlane.xlu2 %1579  ;;  %2310 = vmax.xlane.f32.xlu1 %v2309_v51 }
 0xb26   :  { %v1584_v47 = vsub.f32 %v4298_v11, %v1580_v13 }
 0xb28   :  { %v1586_v24 = vmul.f32 1.442695, %v1584_v47 }
 0xb29   :  { %v4382_v28 = vpop.eup %3245 }
 0xb2a   :  { %3247 = vpow2.f32 %v1586_v24  ;;  %v1690_v54 = vsel %vm289_vm5, %v4382_v28, 0.0 }
 0xb2d   :  { %v1583_v15 = vpop.xlane.xlu1 %1582  ;;  %1691 = vadd.xlane.f32.xlu1 %v1690_v54  ;;  %v4401_v49 = vpop.permute.xlu2 %3126 }
 0xb2e   :  { %v1585_v46 = vsub.f32 %v4303_v8, %v1583_v15 }
 0xb30   :  { %v4387_v2 = vpop.eup %3247  ;;  %v1588_v20 = vmul.f32 1.442695, %v1585_v46 }
 0xb31   :  { %v3122_v16 = vpop.permute.xlu0 %3121  ;;  %v1590_v62 = vsel %vm289_vm5, %v4387_v2, 0.0 }
 0xb32   :  { %3249 = vpow2.f32 %v1588_v20  ;;  %v3123_v11 = vunpack.i.l.bf16 %v3122_v16  ;;  %1591 = vadd.xlane.f32.xlu0 %v1590_v62  ;;  %v3124_v25 = vunpack.i.h.bf16 %v3122_v16 }
 0xb34   :  { %1926 = vmatpush.msrb.mxu0 %v3123_v11 }
 0xb36   :  { %1927 = vmatpush.msrb.mxu0 %v3124_v25 }
 0xb38   :  { %v4391_v36 = vpop.eup %3249 }
 0xb39   :  { %v1593_v39 = vsel %vm289_vm5, %v4391_v36, 0.0 }
 0xb3a   :  { %1594 = vadd.xlane.f32.xlu2 %v1593_v39 }
 0xb3c   :  { %v1880_v8 = vpop.xlane.xlu1 %1879 }
 0xb3d   :  { %v1884_v40 = vsub.f32 %v4310_v21, %v1880_v8 }
 0xb3f   :  { %v1886_v4 = vmul.f32 1.442695, %v1884_v40 }
 0xb41   :  { %3251 = vpow2.f32 %v1886_v4 }
 0xb47   :  { %v4396_v22 = vpop.eup %3251 }
 0xb48   :  { %v1890_v42 = vsel %vm289_vm5, %v4396_v22, 0.0 }
 0xb49   :  { %1891 = vadd.xlane.f32.xlu2 %v1890_v42 }
 0xb5c   :  { %v1780_v44 = vpop.xlane.xlu0 %1779 }
 0xb5d   :  { %v1784_v33 = vsub.f32 %v4321_v32, %v1780_v44 }
 0xb5f   :  { %v1786_v7 = vmul.f32 1.442695, %v1784_v33 }
 0xb61   :  { %3253 = vpow2.f32 %v1786_v7 }
 0xb64   :  { %v1883_v38 = vpop.xlane.xlu0 %1882 }
 0xb65   :  { %v1885_v53 = vsub.f32 %v4326_v30, %v1883_v38 }
 0xb66   :  { %v1683_v50 = vpop.xlane.xlu2 %1682 }
 0xb67   :  { %v4404_v21 = vpop.eup %3253  ;;  %v1888_v41 = vmul.f32 1.442695, %v1885_v53  ;;  %v1685_v56 = vsub.f32 %v4329_v23, %v1683_v50 }
 0xb68   :  { %v1790_v57 = vsel %vm289_vm5, %v4404_v21, 0.0 }
 0xb69   :  { %3255 = vpow2.f32 %v1888_v41  ;;  %v1688_v60 = vmul.f32 1.442695, %v1685_v56  ;;  %1791 = vadd.xlane.f32.xlu1 %v1790_v57 }
 0xb6b   :  { %3257 = vpow2.f32 %v1688_v60 }
 0xb6e   :  { %v1783_v32 = vpop.xlane.xlu2 %1782 }
 0xb6f   :  { %v4409_v63 = vpop.eup %3255  ;;  %v1785_v48 = vsub.f32 %v4336_v58, %v1783_v32  ;;  %v3128_v32 = vunpack.i.l.bf16 %v4401_v49 }
 0xb70   :  { %v1893_v30 = vsel %vm289_vm5, %v4409_v63, 0.0 }
 0xb71   :  { %v4414_v10 = vpop.eup %3257  ;;  %v1788_v55 = vmul.f32 1.442695, %v1785_v48  ;;  %1894 = vadd.xlane.f32.xlu2 %v1893_v30  ;;  %v3129_v48 = vunpack.i.h.bf16 %v4401_v49 }
 0xb72   :  { %v1693_v23 = vsel %vm289_vm5, %v4414_v10, 0.0 }
 0xb73   :  { %3259 = vpow2.f32 %v1788_v55  ;;  %1694 = vadd.xlane.f32.xlu0 %v1693_v23 }
 0xb76   :  { %v2008_v0 = vpop.xlane.xlu1 %2007 }
 0xb77   :  { %v2012_v59 = vsub.f32 %v4341_v43, %v2008_v0 }
 0xb79   :  { %v4419_v31 = vpop.eup %3259  ;;  %v2014_v5 = vmul.f32 1.442695, %v2012_v59 }
 0xb7a   :  { %v1793_v58 = vsel %vm289_vm5, %v4419_v31, 0.0 }
 0xb7b   :  { %3261 = vpow2.f32 %v2014_v5  ;;  %1794 = vadd.xlane.f32.xlu1 %v1793_v58 }
 0xb7e   :  { %v2011_v45 = vpop.xlane.xlu0 %2010 }
 0xb7f   :  { %v2013_v51 = vsub.f32 %v4346_v17, %v2011_v45 }
 0xb80   :  { %v2108_v34 = vpop.xlane.xlu2 %2107 }
 0xb81   :  { %v4423_v27 = vpop.eup %3261  ;;  %v2112_v12 = vsub.f32 %v4351_v29, %v2108_v34  ;;  %v2016_v13 = vmul.f32 1.442695, %v2013_v51 }
 0xb82   :  { %v2018_v14 = vsel %vm289_vm5, %v4423_v27, 0.0 }
 0xb83   :  { %v2114_v43 = vmul.f32 1.442695, %v2112_v12  ;;  %2019 = vadd.xlane.f32.xlu0 %v2018_v14 }
 0xb85   :  { %3263 = vpow2.f32 %v2114_v43 }
 0xb86   :  { %3265 = vpow2.f32 %v2016_v13 }
 0xb88   :  { %v2111_v47 = vpop.xlane.xlu1 %2110  ;;  %v2208_v24 = vpop.xlane.xlu2 %2207 }
 0xb89   :  { %3131 = vrot.lane.b32.xlu2 %v4316_v26, %s3523_s1  ;;  %v2113_v15 = vsub.f32 %v4359_v61, %v2111_v47 }
 0xb8b   :  { %v4431_v54 = vpop.eup %3263  ;;  %v2116_v46 = vmul.f32 1.442695, %v2113_v15 }
 0xb8c   :  { %v2118_v29 = vsel %vm289_vm5, %v4431_v54, 0.0  ;;  %v4436_v16 = vpop.eup %3265 }
 0xb8d   :  { %2119 = vadd.xlane.f32.xlu1 %v2118_v29  ;;  %3267 = vpow2.f32 %v2116_v46  ;;  %v2021_v39 = vsel %vm289_vm5, %v4436_v16, 0.0 }
 0xb90   :  { %v2308_v17 = vpop.xlane.xlu1 %2307  ;;  %v2211_v20 = vpop.xlane.xlu2 %2210 }
 0xb91   :  { %v2312_v62 = vsub.f32 %v4369_v3, %v2308_v17  ;;  %v2213_v25 = vsub.f32 %v4366_v1, %v2211_v20  ;;  %v2212_v1 = vsub.f32 %v4356_v9, %v2208_v24 }
 0xb93   :  { %v2314_v11 = vmul.f32 1.442695, %v2312_v62  ;;  %v2216_v61 = vmul.f32 1.442695, %v2213_v25  ;;  %v4442_v40 = vpop.eup %3267  ;;  %v2214_v7 = vmul.f32 1.442695, %v2212_v1 }
 0xb94   :  { %v2121_v3 = vsel %vm289_vm5, %v4442_v40, 0.0 }
 0xb95   :  { %3269 = vpow2.f32 %v2314_v11  ;;  %2022 = vadd.xlane.f32.xlu1 %v2021_v39 }
 0xb96   :  { %3271 = vpow2.f32 %v2216_v61 }
 0xb98   :  { %v2311_v8 = vpop.xlane.xlu1 %2310 }
 0xb9b   :  { %v4444_v4 = vpop.eup %3269 }
 0xb9c   :  { %v2318_v42 = vsel %vm289_vm5, %v4444_v4, 0.0  ;;  %v4451_v33 = vpop.eup %3271 }
 0xb9d   :  { %2319 = vadd.xlane.f32.xlu0 %v2318_v42  ;;  %2122 = vadd.xlane.f32.xlu1 %v2121_v3  ;;  %v2221_v38 = vsel %vm289_vm5, %v4451_v33, 0.0 }
 0xba0   :  { %v1692_v44 = vpop.xlane.xlu1 %1691 }
 0xba1   :  { %3273 = vrcp.f32 %v1692_v44 }
 0xba5   :  { %2222 = vadd.xlane.f32.xlu0 %v2221_v38  ;;  %v1592_v53 = vpop.xlane.xlu0 %1591 }
 0xba6   :  { %3275 = vrcp.f32 %v1592_v53 }
 0xba7   :  { %v3274_v50 = vpop.eup %3273  ;;  %3277 = vpow2.f32 %v2214_v7 }
 0xba8   :  { %v1698_v41 = vmul.f32 %v3274_v50, %v4382_v28 }
 0xbaa   :  { %2973 = vmatmul.msk.f32.vlgmr.msra.gmra.mxu0 %vm289_vm5, %v1698_v41 }
 0xbac   :  { %v3276_v56 = vpop.eup %3275 }
 0xbad   :  { %v1598_v9 = vmul.f32 %v3276_v56, %v4387_v2  ;;  %v1595_v57 = vpop.xlane.xlu2 %1594  ;;  %v4458_v60 = vpop.eup %3277  ;;  %v2313_v2 = vsub.f32 %v4377_v19, %v2311_v8 }
 0xbae   :  { %3279 = vrcp.f32 %v1595_v57  ;;  %v2218_v30 = vsel %vm289_vm5, %v4458_v60, 0.0 }
 0xbaf   :  { %2967 = vmatmul.msk.f32.vlgmr.msrb.gmra.mxu3 %vm289_vm5, %v1598_v9  ;;  %v2316_v49 = vmul.f32 1.442695, %v2313_v2 }
 0xbb0   :  { %2054 = vmatpush.msrb.mxu3 %v3128_v32 }
 0xbb1   :  { %3281 = vpow2.f32 %v2316_v49 }
 0xbb2   :  { %2055 = vmatpush.msrb.mxu3 %v3129_v48  ;;  %2219 = vadd.xlane.f32.xlu2 %v2218_v30 }
 0xbb4   :  { %v3280_v28 = vpop.eup %3279 }
 0xbb5   :  { %v1599_v55 = vmul.f32 %v3280_v28, %v4391_v36 }
 0xbb6   :  { %3136 = vrot.lane.b32.xlu1 %v4316_v26, %s3528_s26 }
 0xbb7   :  { %2968 = vmatmul.msk.f32.gmra.mxu3 %vm289_vm5, %v1599_v55  ;;  %v4472_v23 = vpop.eup %3281 }
 0xbb8   :  { %v2321_v36 = vsel %vm289_vm5, %v4472_v23, 0.0 }
 0xbb9   :  { %3141 = vrot.lane.b32.xlu0 %v4316_v26, %s3530_s30 }
 0xbbc   :  { %v1892_v0 = vpop.xlane.xlu2 %1891 }
 0xbdc   :  { %v1792_v59 = vpop.xlane.xlu1 %1791 }
 0xbdd   :  { %3283 = vrcp.f32 %v1792_v59 }
 0xbe0   :  { %2322 = vadd.xlane.f32.xlu1 %v2321_v36 }
 0xbe3   :  { %v3284_v5 = vpop.eup %3283 }
 0xbe4   :  { %v1798_v58 = vmul.f32 %v3284_v5, %v4404_v21  ;;  %v1895_v45 = vpop.xlane.xlu2 %1894 }
 0xbe6   :  { %v1695_v34 = vpop.xlane.xlu0 %1694  ;;  %2979 = vmatmul.msk.f32.vlgmr.msra.gmra.mxu3 %vm289_vm5, %v1798_v58 }
 0xbe7   :  { %3285 = vrcp.f32 %v1695_v34  ;;  %v3013_v34 = vld [vmem:[%s4716_s6 + $0x30] sm:$0xff] }
 0xbe8   :  { %3287 = vrcp.f32 %v1892_v0 }
 0xbec   :  { %v3132_v26 = vpop.permute.xlu2 %3131 }
 0xbed   :  { %v3286_v19 = vpop.eup %3285  ;;  %v3133_v12 = vunpack.i.l.bf16 %v3132_v26  ;;  %v3134_v43 = vunpack.i.h.bf16 %v3132_v26  ;;  %v3012_v26 = vld [vmem:[%s4716_s6 + $0x28] sm:$0xff] }
 0xbee   :  { %v1795_v14 = vpop.xlane.xlu1 %1794  ;;  %v1699_v51 = vmul.f32 %v3286_v19, %v4414_v10  ;;  %v3288_v13 = vpop.eup %3287  ;;  %v3011_v19 = vld [vmem:[%s4716_s6 + $0x20] sm:$0xff] }
 0xbef   :  { %3289 = vrcp.f32 %v1795_v14  ;;  %2154 = vmatpush.msra.mxu0 %v3133_v12  ;;  %v1898_v47 = vmul.f32 %v3288_v13, %v4396_v22 }
 0xbf0   :  { %2974 = vmatmul.msk.f32.gmra.mxu0 %vm289_vm5, %v1699_v51  ;;  %3291 = vrcp.f32 %v1895_v45  ;;  %v3014_v45 = vld [vmem:[%s4716_s6 + $0x38] sm:$0xff] }
 0xbf1   :  { %2155 = vmatpush.msra.mxu0 %v3134_v43  ;;  %2427 = vmatpush.msrb.mxu1 %v3014_v45 }
 0xbf3   :  { %2428 = vmatpush.msrb.mxu1 %v3013_v34 }
 0xbf5   :  { %v3290_v21 = vpop.eup %3289  ;;  %2429 = vmatpush.msrb.mxu1 %v3012_v26 }
 0xbf6   :  { %v2020_v24 = vpop.xlane.xlu0 %2019  ;;  %v1799_v15 = vmul.f32 %v3290_v21, %v4419_v31  ;;  %v3292_v10 = vpop.eup %3291 }
 0xbf7   :  { %3293 = vrcp.f32 %v2020_v24  ;;  %v1899_v17 = vmul.f32 %v3292_v10, %v4409_v63  ;;  %2430 = vmatpush.msrb.mxu1 %v3011_v19  ;;  %v3023_v19 = vld [vmem:[%s4722_s12 + $0x38] sm:$0xff] }
 0xbf8   :  { %2980 = vmatmul.msk.f32.gmra.mxu3 %vm289_vm5, %v1799_v15  ;;  %2985 = vmatmul.msk.f32.vlgmr.msrb.gmra.mxu0 %vm289_vm5, %v1898_v47 }
 0xbfd   :  { %v3294_v29 = vpop.eup %3293 }
 0xbfe   :  { %v2026_v46 = vmul.f32 %v3294_v29, %v4423_v27 }
 0xc00   :  { %v2120_v20 = vpop.xlane.xlu1 %2119  ;;  %2986 = vmatmul.msk.f32.gmra.mxu0 %vm289_vm5, %v1899_v17  ;;  %2991 = vmatmul.msk.f32.vlgmr.msrb.gmra.mxu3 %vm289_vm5, %v2026_v46 }
 0xc01   :  { %3295 = vrcp.f32 %v2120_v20 }
 0xc07   :  { %v3296_v22 = vpop.eup %3295 }
 0xc08   :  { %v2126_v31 = vmul.f32 %v3296_v22, %v4431_v54  ;;  %v2023_v62 = vpop.xlane.xlu1 %2022 }
 0xc09   :  { %3297 = vrcp.f32 %v2023_v62 }
 0xc0a   :  { %2997 = vmatmul.msk.f32.vlgmr.msra.gmra.mxu0 %vm289_vm5, %v2126_v31 }
 0xc0f   :  { %v3298_v11 = vpop.eup %3297 }
 0xc10   :  { %v2123_v25 = vpop.xlane.xlu1 %2122  ;;  %v2027_v39 = vmul.f32 %v3298_v11, %v4436_v16  ;;  %v2320_v61 = vpop.xlane.xlu0 %2319 }
 0xc11   :  { %3299 = vrcp.f32 %v2123_v25 }
 0xc12   :  { %2992 = vmatmul.msk.f32.gmra.mxu3 %vm289_vm5, %v2027_v39  ;;  %3301 = vrcp.f32 %v2320_v61 }
 0xc17   :  { %v3300_v63 = vpop.eup %3299 }
 0xc18   :  { %v2127_v27 = vmul.f32 %v3300_v63, %v4442_v40  ;;  %v2223_v8 = vpop.xlane.xlu0 %2222  ;;  %v3302_v44 = vpop.eup %3301 }
 0xc19   :  { %v2326_v41 = vmul.f32 %v3302_v44, %v4444_v4 }
 0xc1a   :  { %2998 = vmatmul.msk.f32.gmra.mxu0 %vm289_vm5, %v2127_v27 }
 0xc25   :  { %v2220_v54 = vpop.xlane.xlu2 %2219 }
 0xc26   :  { %3303 = vrcp.f32 %v2220_v54 }
 0xc27   :  { %v1729_v42 = vpop.f32.mrf.mxu0  ;;  %3305 = vrcp.f32 %v2223_v8 }
 0xc28   :  { %1937 = vrot.lane.b32.xlu2 %v1729_v42, %s4738_s2  ;;  %v3137_v3 = vpop.permute.xlu1 %3136  ;;  %v3154_v42 = vld [vmem:[#allocation6 + $0x1] ss:$0 sm:$0xff] }
 0xc29   :  { %v3138_v1 = vunpack.i.l.bf16 %v3137_v3  ;;  %v3139_v16 = vunpack.i.h.bf16 %v3137_v3 }
 0xc2b   :  { %v3142_v7 = vpop.permute.xlu0 %3141  ;;  %2254 = vmatpush.msra.mxu3 %v3138_v1 }
 0xc2c   :  { %v3304_v38 = vpop.eup %3303  ;;  %v3143_v53 = vunpack.i.l.bf16 %v3142_v7  ;;  %v3144_v50 = vunpack.i.h.bf16 %v3142_v7 }
 0xc2d   :  { %v2226_v40 = vmul.f32 %v3304_v38, %v4458_v60  ;;  %2255 = vmatpush.msra.mxu3 %v3139_v16  ;;  %v3306_v56 = vpop.eup %3305 }
 0xc2e   :  { %2354 = vmatpush.msrb.mxu0 %v3143_v53  ;;  %v2227_v9 = vmul.f32 %v3306_v56, %v4451_v33 }
 0xc2f   :  { %3003 = vmatmul.msk.f32.vlgmr.msra.gmra.mxu3 %vm289_vm5, %v2226_v40 }
 0xc30   :  { %2355 = vmatpush.msrb.mxu0 %v3144_v50  ;;  %2588 = vmatpush.msrb.mxu3 %v3023_v19 }
 0xc31   :  { %3009 = vmatmul.msk.f32.vlgmr.msrb.gmra.mxu0 %vm289_vm5, %v2326_v41 }
 0xc32   :  { %v1629_v48 = vpop.f32.mrf.mxu3 }
 0xc37   :  { %3004 = vmatmul.msk.f32.gmra.mxu3 %vm289_vm5, %v2227_v9 }
 0xc3a   :  { %v1632_v30 = vpop.f32.mrf.mxu3 }
 0xc53   :  { %v2323_v57 = vpop.xlane.xlu1 %2322 }
 0xc54   :  { %3307 = vrcp.f32 %v2323_v57 }
 0xc5a   :  { %v3308_v32 = vpop.eup %3307 }
 0xc5b   :  { %v2327_v60 = vmul.f32 %v3308_v32, %v4472_v23 }
 0xc5d   :  { %3010 = vmatmul.msk.f32.gmra.mxu0 %vm289_vm5, %v2327_v60 }
 0xc69   :  { %v1829_v28 = vpop.f32.mrf.mxu3 }
 0xc6d   :  { %v1732_v4 = vpop.f32.mrf.mxu0 }
 0xc6e   :  { %1939 = vrot.lane.b32.xlu0 %v1732_v4, %s4738_s2 }
 0xc75   :  { %v1929_v55 = vpop.f32.mrf.mxu0 }
 0xc76   :  { %1945 = vrot.lane.b32.xlu0 %v1829_v28, %s3513_s28 }
 0xc7b   :  { %v1832_v2 = vpop.f32.mrf.mxu3 }
 0xc7c   :  { %1947 = vrot.lane.b32.xlu2 %v1832_v2, %s3513_s28 }
 0xc7d   :  { %v1932_v33 = vpop.f32.mrf.mxu0 }
 0xc7e   :  { %1953 = vrot.lane.b32.xlu0 %v1929_v55, %s4740_s5 }
 0xc82   :  { %v1938_v43 = vpop.permute.xlu2 %1937 }
 0xc83   :  { %v2057_v23 = vpop.f32.mrf.mxu3  ;;  %v1959_v13 = vsel %vm252_vm2, %v1629_v48, %v1938_v43 }
 0xc86   :  { %1955 = vrot.lane.b32.xlu0 %v1932_v33, %s4740_s5 }
 0xc87   :  { %v2157_v49 = vpop.f32.mrf.mxu0 }
 0xc88   :  { %2365 = vrot.lane.b32.xlu1 %v2157_v49, %s4738_s2 }
 0xc95   :  { %v2060_v59 = vpop.f32.mrf.mxu3 }
 0xc97   :  { %v2160_v0 = vpop.f32.mrf.mxu0 }
 0xcae   :  { %v2357_v36 = vpop.f32.mrf.mxu0 }
 0xcaf   :  { %2381 = vrot.lane.b32.xlu0 %v2357_v36, %s4740_s5 }
 0xcb2   :  { %v2257_v5 = vpop.f32.mrf.mxu3 }
 0xcb3   :  { %2373 = vrot.lane.b32.xlu2 %v2257_v5, %s3513_s28 }
 0xcba   :  { %v2260_v58 = vpop.f32.mrf.mxu3 }
 0xcbb   :  { %2367 = vrot.lane.b32.xlu2 %v2160_v0, %s4738_s2  ;;  %2375 = vrot.lane.b32.xlu0 %v2260_v58, %s3513_s28 }
 0xcd6   :  { %v1948_v10 = vpop.permute.xlu2 %1947 }
 0xcda   :  { %v2360_v12 = vpop.f32.mrf.mxu0 }
 0xcdb   :  { %2383 = vrot.lane.b32.xlu2 %v2360_v12, %s4740_s5  ;;  %v3022_v12 = vld [vmem:[%s4722_s12 + $0x30] sm:$0xff] }
 0xcdc   :  { %2589 = vmatpush.msrb.mxu3 %v3022_v12  ;;  %v3030_v12 = vld [vmem:[%s4724_s14 + $0x50] sm:$0xff] }
 0xce0   :  { %v1940_v14 = vpop.permute.xlu0 %1939 }
 0xce1   :  { %v1960_v15 = vsel %vm252_vm2, %v1632_v30, %v1940_v14  ;;  %v3021_v14 = vld [vmem:[%s4722_s12 + $0x28] sm:$0xff] }
 0xce2   :  { %v1962_v46 = vsel %vm289_vm5, %v1960_v15, %v1948_v10  ;;  %2590 = vmatpush.msrb.mxu3 %v3021_v14  ;;  %v3029_v14 = vld [vmem:[%s4724_s14 + $0x48] sm:$0xff] }
 0xce8   :  { %v1946_v51 = vpop.permute.xlu0 %1945 }
 0xce9   :  { %v1961_v21 = vsel %vm289_vm5, %v1959_v13, %v1946_v51  ;;  %v3020_v51 = vld [vmem:[%s4722_s12 + $0x20] sm:$0xff] }
 0xcea   :  { %2591 = vmatpush.msrb.mxu3 %v3020_v51  ;;  %v3028_v51 = vld [vmem:[%s4724_s14 + $0x40] sm:$0xff] }
 0xcf0   :  { %v1954_v47 = vpop.permute.xlu0 %1953 }
 0xcf1   :  { %v1963_v24 = vsel %vm675_vm6, %v1961_v21, %v1954_v47 }
 0xcf2   :  { %3015 = vmatmul.msk.f32.vlgmr.msrb.gmra.mxu1 %vm204_vm1, %v1963_v24 }
 0xcf8   :  { %v1956_v29 = vpop.permute.xlu0 %1955 }
 0xcf9   :  { %v1964_v17 = vsel %vm675_vm6, %v1962_v46, %v1956_v29 }
 0xcfa   :  { %3016 = vmatmul.msk.f32.gmra.mxu1 %vm204_vm1, %v1964_v17  ;;  %v2366_v20 = vpop.permute.xlu1 %2365 }
 0xcfb   :  { %v2387_v31 = vsel %vm252_vm2, %v2057_v23, %v2366_v20 }
 0xd0d   :  { %v2374_v22 = vpop.permute.xlu2 %2373 }
 0xd0e   :  { %v2389_v62 = vsel %vm289_vm5, %v2387_v31, %v2374_v22 }
 0xd15   :  { %v2368_v39 = vpop.permute.xlu2 %2367 }
 0xd16   :  { %v2388_v27 = vsel %vm252_vm2, %v2060_v59, %v2368_v39 }
 0xd21   :  { %v2382_v11 = vpop.permute.xlu0 %2381 }
 0xd22   :  { %v2391_v25 = vsel %vm675_vm6, %v2389_v62, %v2382_v11  ;;  %v4583_v11 = vld [vmem:[%s4718_s8 + $0x1] ss:$0 sm:$0xff] }
 0xd23   :  { %3017 = vmatmul.msk.f32.gmra.mxu1 %vm204_vm1, %v2391_v25 }
 0xd2d   :  { %v2376_v63 = vpop.permute.xlu0 %2375 }
 0xd2e   :  { %v2390_v61 = vsel %vm289_vm5, %v2388_v27, %v2376_v63  ;;  %v3156_v27 = vld [vmem:[#allocation7 + $0x1] ss:$0 sm:$0xff] }
 0xd35   :  { %v2384_v8 = vpop.permute.xlu2 %2383 }
 0xd36   :  { %v2392_v54 = vsel %vm675_vm6, %v2390_v61, %v2384_v8 }
 0xd37   :  { %3018 = vmatmul.msk.f32.gmra.mxu1 %vm204_vm1, %v2392_v54 }
 0xd6f   :  { %v2432_v3 = vpop.f32.mrf.mxu1 }
 0xd70   :  { %v2433_v1 = vadd.f32 %v3154_v42, %v2432_v3 }
 0xd72   :  { %v2444_v44 = vadd.f32 %v2433_v1, %v4181_v52 }
 0xd74   :  { %v2452_v16 = vsel %vm204_vm1, %v2444_v44, 0.0 }
 0xd75   :  { %2453 = vadd.xlane.f32.xlu0 %v2452_v16 }
 0xd77   :  { %v2435_v7 = vpop.f32.mrf.mxu1 }
 0xd78   :  { %v2436_v38 = vadd.f32 %v3154_v42, %v2435_v7 }
 0xd7a   :  { %v2445_v53 = vadd.f32 %v2436_v38, %v4185_v6 }
 0xd7c   :  { %v2455_v40 = vsel %vm204_vm1, %v2445_v53, 0.0 }
 0xd7d   :  { %2456 = vadd.xlane.f32.xlu1 %v2455_v40 }
 0xda0   :  { %v2438_v50 = vpop.f32.mrf.mxu1 }
 0xda1   :  { %v2439_v41 = vadd.f32 %v3154_v42, %v2438_v50 }
 0xda3   :  { %v2446_v56 = vadd.f32 %v2439_v41, %v4192_v37 }
 0xda5   :  { %v2458_v9 = vsel %vm204_vm1, %v2446_v56, 0.0 }
 0xda6   :  { %2459 = vadd.xlane.f32.xlu2 %v2458_v9 }
 0xdb4   :  { %v2441_v57 = vpop.f32.mrf.mxu1 }
 0xdb5   :  { %v2442_v32 = vadd.f32 %v3154_v42, %v2441_v57  ;;  %v3035_v57 = vld [vmem:[%s4724_s14 + $0x78] sm:$0xff] }
 0xdb6   :  { %2643 = vmatpush.msrb.mxu2 %v3035_v57 }
 0xdb7   :  { %v2447_v52 = vadd.f32 %v2442_v32, %v4197_v18  ;;  %v3034_v32 = vld [vmem:[%s4724_s14 + $0x70] sm:$0xff] }
 0xdb8   :  { %2644 = vmatpush.msrb.mxu2 %v3034_v32 }
 0xdb9   :  { %v2461_v60 = vsel %vm204_vm1, %v2447_v52, 0.0 }
 0xdba   :  { %2462 = vadd.xlane.f32.xlu0 %v2461_v60  ;;  %v3033_v60 = vld [vmem:[%s4724_s14 + $0x68] sm:$0xff] }
 0xdbb   :  { %2645 = vmatpush.msrb.mxu2 %v3033_v60 }
 0xde8   :  { %v2454_v48 = vpop.xlane.xlu0 %2453 }
 0xde9   :  { %v2464_v6 = vmul.f32 %v2454_v48, %v4059_v35 }
 0xdeb   :  { %v2468_v30 = vsub.f32 %v2444_v44, %v2464_v6 }
 0xded   :  { %v2472_v4 = vmul.f32 %v2468_v30, %v2468_v30 }
 0xdef   :  { %v2476_v28 = vsel %vm204_vm1, %v2472_v4, 0.0  ;;  %v3032_v4 = vld [vmem:[%s4724_s14 + $0x60] sm:$0xff] }
 0xdf0   :  { %v2457_v55 = vpop.xlane.xlu1 %2456  ;;  %2477 = vadd.xlane.f32.xlu1 %v2476_v28  ;;  %2646 = vmatpush.msrb.mxu2 %v3032_v4 }
 0xdf1   :  { %v2465_v37 = vmul.f32 %v2457_v55, %v4059_v35 }
 0xdf3   :  { %v2469_v2 = vsub.f32 %v2445_v53, %v2465_v37 }
 0xdf5   :  { %v2473_v33 = vmul.f32 %v2469_v2, %v2469_v2 }
 0xdf7   :  { %v2479_v49 = vsel %vm204_vm1, %v2473_v33, 0.0 }
 0xdf8   :  { %2480 = vadd.xlane.f32.xlu2 %v2479_v49 }
 0xe19   :  { %v2460_v18 = vpop.xlane.xlu2 %2459 }
 0xe1a   :  { %v2466_v23 = vmul.f32 %v2460_v18, %v4059_v35 }
 0xe1c   :  { %v4555_v0 = vsub.f32 %v2446_v56, %v2466_v23 }
 0xe1e   :  { %v2474_v59 = vmul.f32 %v4555_v0, %v4555_v0 }
 0xe20   :  { %v2482_v36 = vsel %vm204_vm1, %v2474_v59, 0.0 }
 0xe21   :  { %2483 = vadd.xlane.f32.xlu0 %v2482_v36 }
 0xe2d   :  { %v2463_v5 = vpop.xlane.xlu0 %2462 }
 0xe2e   :  { %v2467_v58 = vmul.f32 %v2463_v5, %v4059_v35 }
 0xe30   :  { %v4561_v45 = vsub.f32 %v2447_v52, %v2467_v58 }
 0xe32   :  { %v2475_v34 = vmul.f32 %v4561_v45, %v4561_v45 }
 0xe34   :  { %v2485_v26 = vsel %vm204_vm1, %v2475_v34, 0.0 }
 0xe35   :  { %2486 = vadd.xlane.f32.xlu1 %v2485_v26 }
 0xe63   :  { %v2478_v43 = vpop.xlane.xlu1 %2477 }
 0xe64   :  { %v2488_v13 = vmul.f32 %v2478_v43, %v4059_v35 }
 0xe66   :  { %v2492_v21 = vadd.f32 1e-05, %v2488_v13 }
 0xe68   :  { %3309 = vrsqrt.f32 %v2492_v21  ;;  %vm2502_vm5 = vweird.f32 %v2492_v21 }
 0xe6b   :  { %v2481_v47 = vpop.xlane.xlu2 %2480 }
 0xe6c   :  { %v2489_v24 = vmul.f32 %v2481_v47, %v4059_v35 }
 0xe6e   :  { %v3310_v15 = vpop.eup %3309  ;;  %v2493_v10 = vadd.f32 1e-05, %v2489_v24 }
 0xe6f   :  { %v2497_v29 = vmul.f32 %v3310_v15, %v2492_v21  ;;  %vm2503_vm2 = vweird.f32 %v3310_v15 }
 0xe70   :  { %3311 = vrsqrt.f32 %v2493_v10  ;;  %vm2504_vm6 = vmor %vm2502_vm5, %vm2503_vm2  ;;  %vm2512_vm11 = vweird.f32 %v2493_v10 }
 0xe71   :  { %v2498_v46 = vmul.f32 %v3310_v15, %v2497_v29 }
 0xe73   :  { %v2499_v17 = vmul.f32 0.5, %v2498_v46 }
 0xe75   :  { %v2500_v20 = vsub.f32 1.5, %v2499_v17 }
 0xe76   :  { %v3312_v22 = vpop.eup %3311 }
 0xe77   :  { %v2501_v31 = vmul.f32 %v3310_v15, %v2500_v20  ;;  %v2507_v62 = vmul.f32 %v3312_v22, %v2493_v10  ;;  %vm2513_vm10 = vweird.f32 %v3312_v22 }
 0xe78   :  { %vm2514_vm12 = vmor %vm2512_vm11, %vm2513_vm10 }
 0xe79   :  { %v2505_v25 = vsel %vm2504_vm6, %v3310_v15, %v2501_v31  ;;  %v2508_v39 = vmul.f32 %v3312_v22, %v2507_v62  ;;  %v3158_v31 = vld [vmem:[#allocation12 + $0x1] ss:$0 sm:$0xff] }
 0xe7a   :  { %v2536_v63 = vmul.f32 %v2505_v25, %v2468_v30 }
 0xe7b   :  { %v2509_v61 = vmul.f32 0.5, %v2508_v39 }
 0xe7c   :  { %v2543_v8 = vmul.f32 %v4583_v11, %v2536_v63 }
 0xe7d   :  { %v2510_v54 = vsub.f32 1.5, %v2509_v61 }
 0xe7e   :  { %v4586_v42 = vadd.f32 %v3156_v27, %v2543_v8 }
 0xe7f   :  { %v2511_v3 = vmul.f32 %v3312_v22, %v2510_v54 }
 0xe80   :  { %3024 = vmatmul.msk.f32.vlgmr.msrb.gmra.mxu3 %vm204_vm1, %v4586_v42 }
 0xe81   :  { %v2515_v1 = vsel %vm2514_vm12, %v3312_v22, %v2511_v3 }
 0xe82   :  { %v2537_v44 = vmul.f32 %v2515_v1, %v2469_v2  ;;  %v3031_v2 = vld [vmem:[%s4724_s14 + $0x58] sm:$0xff] }
 0xe83   :  { %2647 = vmatpush.msrb.mxu2 %v3031_v2 }
 0xe84   :  { %v2544_v16 = vmul.f32 %v4583_v11, %v2537_v44 }
 0xe85   :  { %2648 = vmatpush.msrb.mxu2 %v3030_v12 }
 0xe86   :  { %v4591_v7 = vadd.f32 %v3156_v27, %v2544_v16 }
 0xe87   :  { %2649 = vmatpush.msrb.mxu2 %v3029_v14 }
 0xe88   :  { %3025 = vmatmul.msk.f32.gmra.mxu3 %vm204_vm1, %v4591_v7 }
 0xe89   :  { %2650 = vmatpush.msrb.mxu2 %v3028_v51 }
 0xe94   :  { %v2484_v38 = vpop.xlane.xlu0 %2483 }
 0xe95   :  { %v2490_v53 = vmul.f32 %v2484_v38, %v4059_v35 }
 0xe97   :  { %v2494_v40 = vadd.f32 1e-05, %v2490_v53 }
 0xe99   :  { %3313 = vrsqrt.f32 %v2494_v40  ;;  %vm2522_vm14 = vweird.f32 %v2494_v40 }
 0xe9f   :  { %v3314_v50 = vpop.eup %3313 }
 0xea0   :  { %v2517_v41 = vmul.f32 %v3314_v50, %v2494_v40  ;;  %vm2523_vm13 = vweird.f32 %v3314_v50 }
 0xea1   :  { %vm2524_vm15 = vmor %vm2522_vm14, %vm2523_vm13 }
 0xea2   :  { %v2518_v56 = vmul.f32 %v3314_v50, %v2517_v41 }
 0xea4   :  { %v2519_v9 = vmul.f32 0.5, %v2518_v56 }
 0xea6   :  { %v2520_v52 = vsub.f32 1.5, %v2519_v9 }
 0xea8   :  { %v2521_v48 = vmul.f32 %v3314_v50, %v2520_v52  ;;  %v2487_v6 = vpop.xlane.xlu1 %2486 }
 0xea9   :  { %v2491_v30 = vmul.f32 %v2487_v6, %v4059_v35 }
 0xeaa   :  { %v2525_v28 = vsel %vm2524_vm15, %v3314_v50, %v2521_v48 }
 0xeab   :  { %v2495_v55 = vadd.f32 1e-05, %v2491_v30  ;;  %v2538_v37 = vmul.f32 %v2525_v28, %v4555_v0 }
 0xead   :  { %3315 = vrsqrt.f32 %v2495_v55  ;;  %v2545_v33 = vmul.f32 %v4583_v11, %v2538_v37  ;;  %vm2532_vm3 = vweird.f32 %v2495_v55 }
 0xeaf   :  { %v2552_v49 = vadd.f32 %v3156_v27, %v2545_v33 }
 0xeb1   :  { %3026 = vmatmul.msk.f32.gmra.mxu3 %vm204_vm1, %v2552_v49 }
 0xeb3   :  { %v3316_v18 = vpop.eup %3315 }
 0xeb4   :  { %v2527_v23 = vmul.f32 %v3316_v18, %v2495_v55  ;;  %vm2533_vm0 = vweird.f32 %v3316_v18 }
 0xeb5   :  { %vm2534_vm4 = vmor %vm2532_vm3, %vm2533_vm0 }
 0xeb6   :  { %v2528_v59 = vmul.f32 %v3316_v18, %v2527_v23 }
 0xeb8   :  { %v2529_v36 = vmul.f32 0.5, %v2528_v59 }
 0xeba   :  { %v2530_v5 = vsub.f32 1.5, %v2529_v36 }
 0xebc   :  { %v2531_v58 = vmul.f32 %v3316_v18, %v2530_v5 }
 0xebe   :  { %v2535_v0 = vsel %vm2534_vm4, %v3316_v18, %v2531_v58 }
 0xebf   :  { %v2539_v34 = vmul.f32 %v2535_v0, %v4561_v45  ;;  %v3157_v45 = vld [vmem:[#allocation10 + $0x1] ss:$0 sm:$0xff] }
 0xec1   :  { %v2546_v26 = vmul.f32 %v4583_v11, %v2539_v34 }
 0xec3   :  { %v2553_v19 = vadd.f32 %v3156_v27, %v2546_v26 }
 0xec5   :  { %3027 = vmatmul.msk.f32.gmra.mxu3 %vm204_vm1, %v2553_v19 }
 0xf03   :  { %v2593_v43 = vpop.f32.mrf.mxu3 }
 0xf04   :  { %v2594_v13 = vadd.f32 %v3157_v45, %v2593_v43  ;;  %v3159_v43 = vld [vmem:[%s4720_s10 + $0x1] ss:$0 sm:$0xff] }
 0xf06   :  { %v2605_v21 = vmax.f32 %v2594_v13, 0.0 }
 0xf08   :  { %3036 = vmatmul.msk.f32.vlgmr.msrb.gmra.mxu2 %vm1336_vm8, %v2605_v21 }
 0xf0b   :  { %v2596_v47 = vpop.f32.mrf.mxu3 }
 0xf0c   :  { %v2597_v24 = vadd.f32 %v3157_v45, %v2596_v47 }
 0xf0e   :  { %v2606_v15 = vmax.f32 %v2597_v24, 0.0  ;;  %v3160_v24 = vld [vmem:[#allocation9 + $0x1] ss:$0 sm:$0xff] }
 0xf10   :  { %3037 = vmatmul.msk.f32.gmra.mxu2 %vm1336_vm8, %v2606_v15 }
 0xf34   :  { %v2599_v10 = vpop.f32.mrf.mxu3 }
 0xf35   :  { %v2600_v29 = vadd.f32 %v3157_v45, %v2599_v10 }
 0xf37   :  { %v2607_v46 = vmax.f32 %v2600_v29, 0.0 }
 0xf39   :  { %3038 = vmatmul.msk.f32.gmra.mxu2 %vm1336_vm8, %v2607_v46 }
 0xf48   :  { %v2602_v17 = vpop.f32.mrf.mxu3 }
 0xf49   :  { %v2603_v20 = vadd.f32 %v3157_v45, %v2602_v17 }
 0xf4b   :  { %v2608_v22 = vmax.f32 %v2603_v20, 0.0 }
 0xf4d   :  { %3039 = vmatmul.msk.f32.gmra.mxu2 %vm1336_vm8, %v2608_v22 }
 0xf8b   :  { %v2652_v62 = vpop.f32.mrf.mxu2 }
 0xf8c   :  { %v2653_v11 = vadd.f32 %v3158_v31, %v2652_v62 }
 0xf8e   :  { %v2664_v25 = vadd.f32 %v2653_v11, %v4586_v42 }
 0xf90   :  { %v2672_v39 = vsel %vm204_vm1, %v2664_v25, 0.0 }
 0xf91   :  { %2673 = vadd.xlane.f32.xlu2 %v2672_v39 }
 0xf93   :  { %v2655_v63 = vpop.f32.mrf.mxu2 }
 0xf94   :  { %v2656_v27 = vadd.f32 %v3158_v31, %v2655_v63 }
 0xf96   :  { %v2665_v61 = vadd.f32 %v2656_v27, %v4591_v7 }
 0xf98   :  { %v2675_v8 = vsel %vm204_vm1, %v2665_v61, 0.0 }
 0xf99   :  { %2676 = vadd.xlane.f32.xlu0 %v2675_v8 }
 0xfbc   :  { %v2658_v54 = vpop.f32.mrf.mxu2 }
 0xfbd   :  { %v2659_v3 = vadd.f32 %v3158_v31, %v2658_v54 }
 0xfbf   :  { %v2666_v1 = vadd.f32 %v2659_v3, %v2552_v49 }
 0xfc1   :  { %v2678_v44 = vsel %vm204_vm1, %v2666_v1, 0.0 }
 0xfc2   :  { %2679 = vadd.xlane.f32.xlu1 %v2678_v44 }
 0xfd0   :  { %v2661_v16 = vpop.f32.mrf.mxu2 }
 0xfd1   :  { %v2662_v38 = vadd.f32 %v3158_v31, %v2661_v16 }
 0xfd3   :  { %v2667_v53 = vadd.f32 %v2662_v38, %v2553_v19 }
 0xfd5   :  { %v2681_v42 = vsel %vm204_vm1, %v2667_v53, 0.0 }
 0xfd6   :  { %2682 = vadd.xlane.f32.xlu2 %v2681_v42 }
0x1004   :  { %v2674_v40 = vpop.xlane.xlu2 %2673 }
0x1005   :  { %v2684_v50 = vmul.f32 %v2674_v40, %v4059_v35 }
0x1007   :  { %v2688_v41 = vsub.f32 %v2664_v25, %v2684_v50 }
0x1009   :  { %v2692_v7 = vmul.f32 %v2688_v41, %v2688_v41 }
0x100b   :  { %v2696_v56 = vsel %vm204_vm1, %v2692_v7, 0.0 }
0x100c   :  { %2697 = vadd.xlane.f32.xlu0 %v2696_v56  ;;  %v2677_v9 = vpop.xlane.xlu0 %2676 }
0x100d   :  { %v2685_v57 = vmul.f32 %v2677_v9, %v4059_v35 }
0x100f   :  { %v2689_v32 = vsub.f32 %v2665_v61, %v2685_v57 }
0x1011   :  { %v2693_v52 = vmul.f32 %v2689_v32, %v2689_v32 }
0x1013   :  { %v2699_v60 = vsel %vm204_vm1, %v2693_v52, 0.0 }
0x1014   :  { %2700 = vadd.xlane.f32.xlu1 %v2699_v60 }
0x1035   :  { %v2680_v48 = vpop.xlane.xlu1 %2679 }
0x1036   :  { %v2686_v6 = vmul.f32 %v2680_v48, %v4059_v35 }
0x1038   :  { %v4642_v30 = vsub.f32 %v2666_v1, %v2686_v6 }
0x103a   :  { %v2694_v4 = vmul.f32 %v4642_v30, %v4642_v30 }
0x103c   :  { %v2702_v28 = vsel %vm204_vm1, %v2694_v4, 0.0 }
0x103d   :  { %2703 = vadd.xlane.f32.xlu2 %v2702_v28 }
0x1049   :  { %v2683_v55 = vpop.xlane.xlu2 %2682 }
0x104a   :  { %v2687_v37 = vmul.f32 %v2683_v55, %v4059_v35 }
0x104c   :  { %v4648_v2 = vsub.f32 %v2667_v53, %v2687_v37 }
0x104e   :  { %v2695_v33 = vmul.f32 %v4648_v2, %v4648_v2 }
0x1050   :  { %v2705_v49 = vsel %vm204_vm1, %v2695_v33, 0.0 }
0x1051   :  { %2706 = vadd.xlane.f32.xlu0 %v2705_v49 }
0x107f   :  { %v2698_v18 = vpop.xlane.xlu0 %2697 }
0x1080   :  { %v2708_v23 = vmul.f32 %v2698_v18, %v4059_v35 }
0x1082   :  { %v2712_v59 = vadd.f32 1e-05, %v2708_v23 }
0x1084   :  { %3317 = vrsqrt.f32 %v2712_v59  ;;  %vm2722_vm7 = vweird.f32 %v2712_v59 }
0x1087   :  { %v2701_v36 = vpop.xlane.xlu1 %2700 }
0x1088   :  { %v2709_v5 = vmul.f32 %v2701_v36, %v4059_v35 }
0x108a   :  { %v3318_v58 = vpop.eup %3317  ;;  %v2713_v0 = vadd.f32 1e-05, %v2709_v5 }
0x108b   :  { %v2717_v34 = vmul.f32 %v3318_v58, %v2712_v59  ;;  %vm2723_vm8 = vweird.f32 %v3318_v58 }
0x108c   :  { %3319 = vrsqrt.f32 %v2713_v0  ;;  %vm2724_vm9 = vmor %vm2722_vm7, %vm2723_vm8  ;;  %vm2732_vm5 = vweird.f32 %v2713_v0 }
0x108d   :  { %v2718_v26 = vmul.f32 %v3318_v58, %v2717_v34 }
0x108f   :  { %v2719_v19 = vmul.f32 0.5, %v2718_v26 }
0x1091   :  { %v2720_v12 = vsub.f32 1.5, %v2719_v19 }
0x1092   :  { %v3320_v14 = vpop.eup %3319 }
0x1093   :  { %v2721_v51 = vmul.f32 %v3318_v58, %v2720_v12  ;;  %v2727_v45 = vmul.f32 %v3320_v14, %v2713_v0  ;;  %vm2733_vm2 = vweird.f32 %v3320_v14 }
0x1094   :  { %vm2734_vm6 = vmor %vm2732_vm5, %vm2733_vm2 }
0x1095   :  { %v2728_v13 = vmul.f32 %v3320_v14, %v2727_v45  ;;  %v2725_v21 = vsel %vm2724_vm9, %v3318_v58, %v2721_v51 }
0x1096   :  { %v2756_v47 = vmul.f32 %v2725_v21, %v2688_v41 }
0x1097   :  { %v2729_v15 = vmul.f32 0.5, %v2728_v13 }
0x1098   :  { %v2763_v10 = vmul.f32 %v3159_v43, %v2756_v47 }
0x1099   :  { %v2730_v29 = vsub.f32 1.5, %v2729_v15 }
0x109a   :  { %v2770_v46 = vadd.f32 %v3160_v24, %v2763_v10 }
0x109b   :  { %v2731_v17 = vmul.f32 %v3320_v14, %v2730_v29 }
0x109c   :  { %v2776_v20 = vsel %vm204_vm1, %v2770_v46, 0.0 }
0x109d   :  { %2777 = vadd.xlane.f32.xlu1 %v2776_v20  ;;  %v2735_v22 = vsel %vm2734_vm6, %v3320_v14, %v2731_v17 }
0x109e   :  { %v2757_v31 = vmul.f32 %v2735_v22, %v2689_v32 }
0x10a0   :  { %v2764_v62 = vmul.f32 %v3159_v43, %v2757_v31 }
0x10a2   :  { %v2771_v11 = vadd.f32 %v3160_v24, %v2764_v62 }
0x10a4   :  { %v2779_v25 = vsel %vm204_vm1, %v2771_v11, 0.0 }
0x10a5   :  { %2780 = vadd.xlane.f32.xlu2 %v2779_v25  ;;  %v3161_v25 = vld [vmem:[%s4726_s16] ss:$0 sm:$0xff] }
0x10b0   :  { %v2704_v39 = vpop.xlane.xlu2 %2703 }
0x10b1   :  { %v2710_v63 = vmul.f32 %v2704_v39, %v4059_v35 }
0x10b3   :  { %v2714_v27 = vadd.f32 1e-05, %v2710_v63 }
0x10b5   :  { %3321 = vrsqrt.f32 %v2714_v27  ;;  %vm2742_vm11 = vweird.f32 %v2714_v27 }
0x10bb   :  { %v3322_v61 = vpop.eup %3321 }
0x10bc   :  { %v2737_v8 = vmul.f32 %v3322_v61, %v2714_v27  ;;  %vm2743_vm10 = vweird.f32 %v3322_v61  ;;  %v3162_v27 = vld [vmem:[%s4727_s17] ss:$0 sm:$0xff] }
0x10bd   :  { %vm2744_vm12 = vmor %vm2742_vm11, %vm2743_vm10 }
0x10be   :  { %v2738_v54 = vmul.f32 %v3322_v61, %v2737_v8 }
0x10c0   :  { %v2739_v3 = vmul.f32 0.5, %v2738_v54 }
0x10c2   :  { %v2740_v1 = vsub.f32 1.5, %v2739_v3 }
0x10c4   :  { %v2741_v44 = vmul.f32 %v3322_v61, %v2740_v1  ;;  %v2707_v16 = vpop.xlane.xlu0 %2706 }
0x10c5   :  { %v2711_v38 = vmul.f32 %v2707_v16, %v4059_v35 }
0x10c6   :  { %v2745_v53 = vsel %vm2744_vm12, %v3322_v61, %v2741_v44 }
0x10c7   :  { %v2715_v42 = vadd.f32 1e-05, %v2711_v38  ;;  %v2758_v40 = vmul.f32 %v2745_v53, %v4642_v30 }
0x10c9   :  { %3323 = vrsqrt.f32 %v2715_v42  ;;  %v2765_v50 = vmul.f32 %v3159_v43, %v2758_v40  ;;  %vm2752_vm14 = vweird.f32 %v2715_v42 }
0x10cb   :  { %v2772_v41 = vadd.f32 %v3160_v24, %v2765_v50 }
0x10cd   :  { %v2782_v7 = vsel %vm204_vm1, %v2772_v41, 0.0 }
0x10ce   :  { %2783 = vadd.xlane.f32.xlu0 %v2782_v7 }
0x10cf   :  { %v3324_v56 = vpop.eup %3323 }
0x10d0   :  { %v2747_v9 = vmul.f32 %v3324_v56, %v2715_v42  ;;  %vm2753_vm13 = vweird.f32 %v3324_v56 }
0x10d1   :  { %vm2754_vm15 = vmor %vm2752_vm14, %vm2753_vm13 }
0x10d2   :  { %v2748_v57 = vmul.f32 %v3324_v56, %v2747_v9 }
0x10d4   :  { %v2749_v32 = vmul.f32 0.5, %v2748_v57 }
0x10d6   :  { %v2750_v52 = vsub.f32 1.5, %v2749_v32 }
0x10d8   :  { %v2751_v60 = vmul.f32 %v3324_v56, %v2750_v52 }
0x10da   :  { %v2755_v48 = vsel %vm2754_vm15, %v3324_v56, %v2751_v60 }
0x10db   :  { %v2759_v6 = vmul.f32 %v2755_v48, %v4648_v2 }
0x10dd   :  { %v2766_v4 = vmul.f32 %v3159_v43, %v2759_v6 }
0x10df   :  { %v2773_v30 = vadd.f32 %v3160_v24, %v2766_v4 }
0x10e1   :  { %v2785_v28 = vsel %vm204_vm1, %v2773_v30, 0.0 }
0x10e2   :  { %2786 = vadd.xlane.f32.xlu1 %v2785_v28 }
0x1110   :  { %v2778_v55 = vpop.xlane.xlu1 %2777 }
0x1111   :  { %v2788_v37 = vmul.f32 %v2778_v55, %v4059_v35 }
0x1113   :  { %v2792_v33 = vsub.f32 %v2770_v46, %v2788_v37 }
0x1115   :  { %v2796_v49 = vmul.f32 %v2792_v33, %v2792_v33 }
0x1117   :  { %v2800_v18 = vsel %vm204_vm1, %v2796_v49, 0.0 }
0x1118   :  { %v2781_v23 = vpop.xlane.xlu2 %2780  ;;  %2801 = vadd.xlane.f32.xlu2 %v2800_v18 }
0x1119   :  { %v2789_v59 = vmul.f32 %v2781_v23, %v4059_v35 }
0x111b   :  { %v2793_v36 = vsub.f32 %v2771_v11, %v2789_v59 }
0x111d   :  { %v2797_v5 = vmul.f32 %v2793_v36, %v2793_v36 }
0x111f   :  { %v2803_v2 = vsel %vm204_vm1, %v2797_v5, 0.0 }
0x1120   :  { %2804 = vadd.xlane.f32.xlu0 %v2803_v2 }
0x1141   :  { %v2784_v58 = vpop.xlane.xlu0 %2783 }
0x1142   :  { %v2790_v0 = vmul.f32 %v2784_v58, %v4059_v35 }
0x1144   :  { %v4671_v34 = vsub.f32 %v2772_v41, %v2790_v0 }
0x1146   :  { %v2798_v26 = vmul.f32 %v4671_v34, %v4671_v34 }
0x1148   :  { %v2806_v19 = vsel %vm204_vm1, %v2798_v26, 0.0 }
0x1149   :  { %2807 = vadd.xlane.f32.xlu1 %v2806_v19 }
0x1155   :  { %v2787_v12 = vpop.xlane.xlu1 %2786 }
0x1156   :  { %v2791_v14 = vmul.f32 %v2787_v12, %v4059_v35 }
0x1158   :  { %v4677_v51 = vsub.f32 %v2773_v30, %v2791_v14 }
0x115a   :  { %v2799_v45 = vmul.f32 %v4677_v51, %v4677_v51 }
0x115c   :  { %v2809_v43 = vsel %vm204_vm1, %v2799_v45, 0.0 }
0x115d   :  { %2810 = vadd.xlane.f32.xlu2 %v2809_v43 }
0x118b   :  { %v2802_v13 = vpop.xlane.xlu2 %2801 }
0x118c   :  { %v2812_v21 = vmul.f32 %v2802_v13, %v4059_v35 }
0x118e   :  { %v2816_v47 = vadd.f32 1e-05, %v2812_v21 }
0x1190   :  { %3325 = vrsqrt.f32 %v2816_v47  ;;  %vm2826_vm3 = vweird.f32 %v2816_v47 }
0x1193   :  { %v2805_v24 = vpop.xlane.xlu0 %2804 }
0x1194   :  { %v2813_v15 = vmul.f32 %v2805_v24, %v4059_v35 }
0x1196   :  { %v3326_v10 = vpop.eup %3325  ;;  %v2817_v29 = vadd.f32 1e-05, %v2813_v15 }
0x1197   :  { %v2821_v46 = vmul.f32 %v3326_v10, %v2816_v47  ;;  %vm2827_vm0 = vweird.f32 %v3326_v10 }
0x1198   :  { %3327 = vrsqrt.f32 %v2817_v29  ;;  %vm2828_vm4 = vmor %vm2826_vm3, %vm2827_vm0  ;;  %vm2836_vm7 = vweird.f32 %v2817_v29 }
0x1199   :  { %v2822_v17 = vmul.f32 %v3326_v10, %v2821_v46 }
0x119b   :  { %v2823_v20 = vmul.f32 0.5, %v2822_v17 }
0x119d   :  { %v2824_v22 = vsub.f32 1.5, %v2823_v20 }
0x119e   :  { %v3328_v31 = vpop.eup %3327 }
0x119f   :  { %v2825_v62 = vmul.f32 %v3326_v10, %v2824_v22  ;;  %v2831_v11 = vmul.f32 %v3328_v31, %v2817_v29  ;;  %vm2837_vm8 = vweird.f32 %v3328_v31 }
0x11a0   :  { %vm2838_vm9 = vmor %vm2836_vm7, %vm2837_vm8 }
0x11a1   :  { %v2829_v39 = vsel %vm2828_vm4, %v3326_v10, %v2825_v62  ;;  %v2832_v63 = vmul.f32 %v3328_v31, %v2831_v11 }
0x11a2   :  { %v2860_v61 = vmul.f32 %v2829_v39, %v2792_v33 }
0x11a3   :  { %v2833_v8 = vmul.f32 0.5, %v2832_v63 }
0x11a4   :  { %v2867_v54 = vmul.f32 %v3161_v25, %v2860_v61 }
0x11a5   :  { %v2834_v3 = vsub.f32 1.5, %v2833_v8 }
0x11a6   :  { %v2874_v1 = vadd.f32 %v3162_v27, %v2867_v54 }
0x11a7   :  { %v2835_v44 = vmul.f32 %v3328_v31, %v2834_v3 }
0x11a8   :  { %2878 = vst.msk [vmem:[%s4728_s18] sm:$0xff] %vm204_vm1, %v2874_v1 }
0x11a9   :  { %v2839_v16 = vsel %vm2838_vm9, %v3328_v31, %v2835_v44 }
0x11aa   :  { %v2861_v38 = vmul.f32 %v2839_v16, %v2793_v36 }
0x11ac   :  { %v2868_v53 = vmul.f32 %v3161_v25, %v2861_v38 }
0x11ae   :  { %v2875_v42 = vadd.f32 %v3162_v27, %v2868_v53 }
0x11b0   :  { %2879 = vst.msk [vmem:[%s4728_s18 + $0x8] sm:$0xff] %vm204_vm1, %v2875_v42 }
0x11bc   :  { %v2808_v40 = vpop.xlane.xlu1 %2807 }
0x11bd   :  { %v2814_v50 = vmul.f32 %v2808_v40, %v4059_v35 }
0x11bf   :  { %v2818_v41 = vadd.f32 1e-05, %v2814_v50 }
0x11c1   :  { %3329 = vrsqrt.f32 %v2818_v41  ;;  %vm2846_vm5 = vweird.f32 %v2818_v41 }
0x11c7   :  { %v3330_v7 = vpop.eup %3329 }
0x11c8   :  { %v2841_v56 = vmul.f32 %v3330_v7, %v2818_v41  ;;  %vm2847_vm2 = vweird.f32 %v3330_v7 }
0x11c9   :  { %vm2848_vm6 = vmor %vm2846_vm5, %vm2847_vm2 }
0x11ca   :  { %v2842_v9 = vmul.f32 %v3330_v7, %v2841_v56 }
0x11cc   :  { %v2843_v57 = vmul.f32 0.5, %v2842_v9 }
0x11ce   :  { %v2844_v32 = vsub.f32 1.5, %v2843_v57 }
0x11d0   :  { %v2845_v52 = vmul.f32 %v3330_v7, %v2844_v32  ;;  %v2811_v60 = vpop.xlane.xlu2 %2810 }
0x11d1   :  { %v2815_v48 = vmul.f32 %v2811_v60, %v4059_v35 }
0x11d2   :  { %v2849_v6 = vsel %vm2848_vm6, %v3330_v7, %v2845_v52 }
0x11d3   :  { %v2862_v4 = vmul.f32 %v2849_v6, %v4671_v34  ;;  %v2819_v30 = vadd.f32 1e-05, %v2815_v48 }
0x11d5   :  { %v2869_v28 = vmul.f32 %v3161_v25, %v2862_v4  ;;  %3331 = vrsqrt.f32 %v2819_v30  ;;  %vm2856_vm11 = vweird.f32 %v2819_v30 }
0x11d7   :  { %v2876_v55 = vadd.f32 %v3162_v27, %v2869_v28 }
0x11d9   :  { %2880 = vst.msk [vmem:[%s4728_s18 + $0x10] sm:$0xff] %vm204_vm1, %v2876_v55 }
0x11db   :  { %v3332_v37 = vpop.eup %3331 }
0x11dc   :  { %v2851_v33 = vmul.f32 %v3332_v37, %v2819_v30  ;;  %vm2857_vm10 = vweird.f32 %v3332_v37 }
0x11dd   :  { %vm2858_vm12 = vmor %vm2856_vm11, %vm2857_vm10 }
0x11de   :  { %v2852_v49 = vmul.f32 %v3332_v37, %v2851_v33 }
0x11e0   :  { %v2853_v18 = vmul.f32 0.5, %v2852_v49 }
0x11e2   :  { %v2854_v23 = vsub.f32 1.5, %v2853_v18 }
0x11e4   :  { %v2855_v59 = vmul.f32 %v3332_v37, %v2854_v23 }
0x11e6   :  { %v2859_v35 = vsel %vm2858_vm12, %v3332_v37, %v2855_v59 }
0x11e7   :  { %v2863_v36 = vmul.f32 %v2859_v35, %v4677_v51 }
0x11e9   :  { %v2870_v5 = vmul.f32 %v3161_v25, %v2863_v36 }
0x11eb   :  { %v2877_v2 = vadd.f32 %v3162_v27, %v2870_v5 }
0x11ed   :  { %2881 = vst.msk [vmem:[%s4728_s18 + $0x18] sm:$0xff] %vm204_vm1, %v2877_v2 }
0x11ee   :  { %2886 = vsyncpa [#allocation3], 1 }
0x11ef   :  { %2887 = vsyncpa [#allocation5], 1 }
0x11f0   :  { %2888 = vsyncpa [#allocation8], 1 }
0x11f1   :  { %2889 = vsyncpa [#allocation11], 1 }

</bundles_post_ra>
